<compile_context>
chip_gen: v7x
topology: tpu7x:2x2x1
jax: 0.10.0
libtpu: 0.0.40
codegen_flags: <defaults>
</compile_context>

<pallas_src>
import functools

import jax
import jax.numpy as jnp
from jax.experimental import pallas as pl
from jax.experimental.pallas import tpu as pltpu


def _round_up(x, m):
    return (x + m - 1) // m * m


# ----------------------------------------------------------------------------
# Pallas kernel 1: one stride-2 4x4 conv layer (space-to-depth form) + bias + ReLU
# ----------------------------------------------------------------------------
def _conv_s2d_kernel(s_ref, w_ref, b_ref, o_ref, *, wo, r_out):
    # s_ref: (1, R_in_pad, 4*Cin) f32   (s2d of the zero-padded input, one image)
    # w_ref: (4, 4*Cin, Cout)     bf16  (per (a,b) shift block of the 4x4 kernel)
    # b_ref: (1, Cout)            f32
    # o_ref: (1, R_out, Cout)     f32   with R_out = Ho*(Wo+1) (one junk col / row)
    x = s_ref[0]                                     # (R_in_pad, 4*Cin) f32
    acc = jnp.zeros((r_out, o_ref.shape[-1]), jnp.float32)
    for a in range(2):
        for b in range(2):
            start = a * (wo + 1) + b                 # static contiguous slab
            lhs = x[start:start + r_out, :].astype(jnp.bfloat16)
            acc = acc + jnp.dot(lhs, w_ref[a * 2 + b],
                                preferred_element_type=jnp.float32)
    out = jnp.maximum(acc + b_ref[...], 0.0)
    # NOTE: rows with j == wo are "junk" columns from the s2d flattening; they are
    # finite and are either sliced away or multiplied by zero weights downstream.
    o_ref[0] = out.astype(o_ref.dtype)


def _conv_layer(x_nhwc, w_packed, bias):
    """4x4, stride 2, pad 1 conv + ReLU. Returns (N, Ho*(Wo+1), Co), ho, wo, co."""
    n, h, w, c = x_nhwc.shape
    ho, wo = h // 2, w // 2
    co = w_packed.shape[-1]

    # space-to-depth of the zero-padded input (cheap XLA reshapes on a small tensor)
    xp = jnp.pad(x_nhwc, ((0, 0), (1, 1), (1, 1), (0, 0)))
    s = xp.reshape(n, ho + 1, 2, wo + 1, 2, c).transpose(0, 1, 3, 2, 4, 5)
    s = s.reshape(n, (ho + 1) * (wo + 1), 4 * c)
    r_in = (ho + 1) * (wo + 1)
    r_in_pad = _round_up(r_in + 1, 8)                # +1: last slab reads one row past
    s = jnp.pad(s, ((0, 0), (0, r_in_pad - r_in), (0, 0)))
    r_out = ho * (wo + 1)

    kern = functools.partial(_conv_s2d_kernel, wo=wo, r_out=r_out)
    flat = pl.pallas_call(
        kern,
        out_shape=jax.ShapeDtypeStruct((n, r_out, co), jnp.float32),
        grid=(n,),
        in_specs=[
            pl.BlockSpec((1, r_in_pad, 4 * c), lambda i: (i, 0, 0)),
            pl.BlockSpec((4, 4 * c, co), lambda i: (0, 0, 0)),
            pl.BlockSpec((1, co), lambda i: (0, 0)),
        ],
        out_specs=pl.BlockSpec((1, r_out, co), lambda i: (i, 0, 0)),
        compiler_params=pltpu.CompilerParams(
            dimension_semantics=("parallel",),
            vmem_limit_bytes=32 * 1024 * 1024),
        cost_estimate=pl.CostEstimate(
            flops=2 * n * r_out * 16 * c * co,
            transcendentals=0,
            bytes_accessed=int(s.size * 4 + w_packed.size * 2 + n * r_out * co * 4)),
    )(s, w_packed, bias.reshape(1, co))
    return flat, ho, wo, co


# ----------------------------------------------------------------------------
# Pallas kernel 2: dense1 + ALL heads (mu / logvar / alphas) fused
# ----------------------------------------------------------------------------
def _dense_heads_kernel(x_ref, w1_ref, b1_ref, wh_ref, bh_ref, h_ref, z_ref, *, segs):
    h = jnp.dot(x_ref[...].astype(jnp.bfloat16), w1_ref[...],
                preferred_element_type=jnp.float32) + b1_ref[...]
    h = jnp.maximum(h, 0.0)
    z = jnp.dot(h.astype(jnp.bfloat16), wh_ref[...],
                preferred_element_type=jnp.float32) + bh_ref[...]
    # per-discrete-segment softmax, done full-width with lane masks
    col = jax.lax.broadcasted_iota(jnp.int32, z.shape, 1)
    for (s0, nseg) in segs:
        m = (col >= s0) & (col < s0 + nseg)
        mx = jnp.max(jnp.where(m, z, -jnp.inf), axis=-1, keepdims=True)
        e = jnp.where(m, jnp.exp(jnp.minimum(z - mx, 0.0)), 0.0)
        denom = jnp.sum(e, axis=-1, keepdims=True)
        z = jnp.where(m, e * pl.reciprocal(denom, approx=True), z)
    h_ref[...] = h
    z_ref[...] = z


def _dense_heads(xflat, w1p, b1, whp, bh, segs):
    batch, feat = xflat.shape
    hd = w1p.shape[1]
    npad = whp.shape[1]
    tb = min(batch, 128)
    kern = functools.partial(_dense_heads_kernel, segs=tuple(segs))
    h, z = pl.pallas_call(
        kern,
        out_shape=(jax.ShapeDtypeStruct((batch, hd), jnp.float32),
                   jax.ShapeDtypeStruct((batch, npad), jnp.float32)),
        grid=(pl.cdiv(batch, tb),),
        in_specs=[
            pl.BlockSpec((tb, feat), lambda i: (i, 0)),
            pl.BlockSpec((feat, hd), lambda i: (0, 0)),
            pl.BlockSpec((1, hd), lambda i: (0, 0)),
            pl.BlockSpec((hd, npad), lambda i: (0, 0)),
            pl.BlockSpec((1, npad), lambda i: (0, 0)),
        ],
        out_specs=(pl.BlockSpec((tb, hd), lambda i: (i, 0)),
                   pl.BlockSpec((tb, npad), lambda i: (i, 0))),
        compiler_params=pltpu.CompilerParams(
            dimension_semantics=("parallel",),
            vmem_limit_bytes=32 * 1024 * 1024),
        cost_estimate=pl.CostEstimate(
            flops=2 * batch * feat * hd + 2 * batch * hd * npad,
            transcendentals=batch * npad,
            bytes_accessed=int(xflat.size * 4 + w1p.size * 2 + whp.size * 2
                               + batch * (hd + npad) * 4)),
    )(xflat, w1p, b1, whp, bh)
    return h, z


# ----------------------------------------------------------------------------
# One-time parameter packing (torch layouts -> kernel layouts)
# ----------------------------------------------------------------------------
def _pack_conv_weight(w):
    """torch OIHW (O, I, 4, 4) -> (4, 4*I, O): block index = a*2+b (2x2 shift),
    row index inside a block = (p*2+q)*I + cin, matching the s2d channel order."""
    o, i, _, _ = w.shape
    blocks = []
    for a in range(2):
        for b in range(2):
            rows = [w[:, :, 2 * a + p, 2 * b + q] for p in range(2) for q in range(2)]
            blocks.append(jnp.concatenate(rows, axis=1).T)      # (4I, O)
    return jnp.stack(blocks, axis=0)                            # (4, 4I, O)


def _pack_dense1(w1, ho, wo, co):
    """Permute dense1 rows from torch's NCHW flatten (c*ho*wo + i*wo + j) to the
    kernel's (i*(wo+1)+j)*co + c order; rows hitting the junk column are zeroed."""
    i = jnp.arange(ho)[:, None, None]
    j = jnp.arange(wo + 1)[None, :, None]
    c = jnp.arange(co)[None, None, :]
    valid = jnp.broadcast_to(j < wo, (ho, wo + 1, co)).reshape(-1)
    old = c * (ho * wo) + i * wo + jnp.minimum(j, wo - 1)
    old = jnp.broadcast_to(old, (ho, wo + 1, co)).reshape(-1)
    w1p = w1[old, :]
    return jnp.where(valid[:, None], w1p, 0.0)


def pack_params(params, input_dim, latent_spec):
    n_convs = 4 if input_dim[1] == input_dim[2] == 64 else 3
    convs = []
    for li in range(1, n_convs + 1):
        convs.append((_pack_conv_weight(params[f"conv{li}_w"]).astype(jnp.bfloat16),
                      params[f"conv{li}_b"].astype(jnp.float32)))
    ho = input_dim[1] // (2 ** n_convs)
    wo = input_dim[2] // (2 ** n_convs)
    co = params[f"conv{n_convs}_w"].shape[0]
    w1p = _pack_dense1(params["dense1_w"], ho, wo, co).astype(jnp.bfloat16)
    b1 = params["dense1_b"].astype(jnp.float32).reshape(1, -1)

    head_ws = [params["mu_w"], params["logvar_w"]]
    head_bs = [params["mu_b"], params["logvar_b"]]
    if "discrete" in latent_spec:
        for (w, b) in params["alphas"]:
            head_ws.append(w)
            head_bs.append(b)
    wh = jnp.concatenate(head_ws, axis=1)
    bh = jnp.concatenate(head_bs, axis=0)
    ntot = wh.shape[1]
    npad = _round_up(max(ntot, 128), 128)
    wh = jnp.pad(wh, ((0, 0), (0, npad - ntot))).astype(jnp.bfloat16)
    bh = jnp.pad(bh, (0, npad - ntot)).astype(jnp.float32).reshape(1, -1)
    return {"convs": convs, "w1": w1p, "b1": b1, "wh": wh, "bh": bh}


# ----------------------------------------------------------------------------
# EncoderVAE_conv forward (NOTE: torch defines self.dense2 but never uses it)
# ----------------------------------------------------------------------------
def encoder_vae_conv_forward(packed, x_nchw, *, input_dim, latent_spec):
    is_discrete = "discrete" in latent_spec
    lc = latent_spec["continuous"]

    act = jnp.transpose(x_nchw, (0, 2, 3, 1))           # NCHW -> NHWC, once
    flat = None
    for (wp, b) in packed["convs"]:
        flat, ho, wo, co = _conv_layer(act, wp, b)
        act = flat.reshape(flat.shape[0], ho, wo + 1, co)[:, :, :wo, :]

    n = flat.shape[0]
    xflat = flat.reshape(n, -1)                          # junk cols hit zero w1 rows

    segs = []
    off = 2 * lc
    if is_discrete:
        for d in latent_spec["discrete"]:
            segs.append((off, d))
            off += d

    h, z = _dense_heads(xflat, packed["w1"], packed["b1"],
                        packed["wh"], packed["bh"], segs)
    mu = z[:, :lc]
    logvar = z[:, lc:2 * lc]
    latent_dist = {"continuous": [mu, logvar], "hidden": h}
    if is_discrete:
        latent_dist["discrete"] = [z[:, s0:s0 + d] for (s0, d) in segs]
    return latent_dist


# ----------------------------------------------------------------------------
# Pure-JAX reference (bf16-matched: rounds operands exactly where the kernels do)
# ----------------------------------------------------------------------------
def _ref_forward(params, x, input_dim, latent_spec):
    bf = jnp.bfloat16

    def conv(x, w, b):
        y = jax.lax.conv_general_dilated(
            x.astype(bf), w.astype(bf), (2, 2), [(1, 1), (1, 1)],
            dimension_numbers=("NCHW", "OIHW", "NCHW"),
            preferred_element_type=jnp.float32)
        return jax.nn.relu(y + b[None, :, None, None])

    x = conv(x, params["conv1_w"], params["conv1_b"])
    x = conv(x, params["conv2_w"], params["conv2_b"])
    x = conv(x, params["conv3_w"], params["conv3_b"])
    if input_dim[1] == input_dim[2] == 64:
        x = conv(x, params["conv4_w"], params["conv4_b"])
    xf = x.reshape(x.shape[0], -1)
    h = jax.nn.relu(jnp.dot(xf.astype(bf), params["dense1_w"].astype(bf),
                            preferred_element_type=jnp.float32) + params["dense1_b"])
    hb = h.astype(bf)

    def head(w, b):
        return jnp.dot(hb, w.astype(bf), preferred_element_type=jnp.float32) + b

    out = {"continuous": [head(params["mu_w"], params["mu_b"]),
                          head(params["logvar_w"], params["logvar_b"])],
           "hidden": h}
    if "discrete" in latent_spec:
        out["discrete"] = [jax.nn.softmax(head(w, b), axis=1)
                           for (w, b) in params["alphas"]]
    return out


# ----------------------------------------------------------------------------
# Deterministic synthetic parameter init (shapes follow the torch __init__)
# ----------------------------------------------------------------------------
def init_params(key, input_dim, latent_spec, hidden_dim):
    im_channels = input_dim[0]
    n_ch1, n_ch2, k = 32, 64, 4
    hidden_channels = 64
    flat = hidden_channels * k * k          # np.product(out_conv_shape) = 1024
    latent_c = latent_spec["continuous"]

    def lin(key, fan_in, fan_out):
        kw_, kb_ = jax.random.split(key)
        scale = 1.0 / jnp.sqrt(fan_in)
        w = jax.random.uniform(kw_, (fan_in, fan_out), jnp.float32, -scale, scale)
        b = jax.random.uniform(kb_, (fan_out,), jnp.float32, -scale, scale)
        return w, b

    def conv(key, cin, cout):
        kw_, kb_ = jax.random.split(key)
        fan_in = cin * k * k
        scale = 1.0 / jnp.sqrt(fan_in)
        w = jax.random.uniform(kw_, (cout, cin, k, k), jnp.float32, -scale, scale)
        b = jax.random.uniform(kb_, (cout,), jnp.float32, -scale, scale)
        return w, b

    keys = jax.random.split(key, 16)
    p = {}
    p["conv1_w"], p["conv1_b"] = conv(keys[0], im_channels, n_ch1)
    p["conv2_w"], p["conv2_b"] = conv(keys[1], n_ch1, n_ch1)
    p["conv3_w"], p["conv3_b"] = conv(keys[2], n_ch1, n_ch2)
    if input_dim[1] == input_dim[2] == 64:
        p["conv4_w"], p["conv4_b"] = conv(keys[3], n_ch2, n_ch2)
    p["dense1_w"], p["dense1_b"] = lin(keys[4], flat, hidden_dim)
    p["mu_w"], p["mu_b"] = lin(keys[5], hidden_dim, latent_c)
    p["logvar_w"], p["logvar_b"] = lin(keys[6], hidden_dim, latent_c)
    if "discrete" in latent_spec:
        p["alphas"] = [lin(keys[7 + i], hidden_dim, a)
                       for i, a in enumerate(latent_spec["discrete"])]
    return p


if __name__ == "__main__":
    # Small but shape-consistent config: 32x32 input -> three stride-2 convs -> 64x4x4.
    input_dim = (3, 32, 32)
    latent_spec = {"continuous": 8, "discrete": [3, 4]}
    hidden_dim = 32
    batch = 4

    key = jax.random.PRNGKey(0)
    kx, kp = jax.random.split(key)
    x = jax.random.normal(kx, (batch,) + input_dim, jnp.float32)
    params = init_params(kp, input_dim, latent_spec, hidden_dim)
    packed = pack_params(params, input_dim, latent_spec)

    fwd = jax.jit(functools.partial(encoder_vae_conv_forward,
                                    input_dim=input_dim, latent_spec=latent_spec))
    out = jax.block_until_ready(fwd(packed, x))
    ref = _ref_forward(params, x, input_dim, latent_spec)

    def _check(a, b):
        assert a.shape == b.shape, (a.shape, b.shape)
        err = float(jnp.max(jnp.abs(a - b)))
        assert jnp.allclose(a, b, atol=1e-2, rtol=1e-2), err

    _check(out["continuous"][0], ref["continuous"][0])
    _check(out["continuous"][1], ref["continuous"][1])
    _check(out["hidden"], ref["hidden"])
    if "discrete" in latent_spec:
        for a, b in zip(out["discrete"], ref["discrete"]):
            _check(a, b)

    print("KERNEL_OK")
</pallas_src>

<mosaic_0001>
module attributes {stable_mosaic.version = 11 : i64} {
  func.func @_conv_s2d_kernel(%arg0: i32, %arg1: memref<1x296x12xf32, #tpu.memory_space<vmem>>, %arg2: memref<4x12x32xbf16, #tpu.memory_space<vmem>>, %arg3: memref<1x32xf32, #tpu.memory_space<vmem>>, %arg4: memref<1x272x32xf32, #tpu.memory_space<vmem>>) attributes {dimension_semantics = [#tpu.dimension_semantics<parallel>], iteration_bounds = array<i64: 4>, scalar_prefetch = 0 : i64, scratch_operands = 0 : i64, tpu.core_type = #tpu.core_type<tc>, window_params = [{transform_indices = @transform_0, window_bounds = array<i64: 1, 296, 12>}, {pipeline_mode = #tpu.pipeline_mode<synchronous>, transform_indices = @transform_1, window_bounds = array<i64: 4, 12, 32>}, {pipeline_mode = #tpu.pipeline_mode<synchronous>, transform_indices = @transform_2, window_bounds = array<i64: 1, 32>}, {transform_indices = @transform_3, window_bounds = array<i64: 1, 272, 32>}]} {
    %c0 = arith.constant 0 : index
    %c0_0 = arith.constant 0 : index
    %c0_1 = arith.constant 0 : index
    %0 = vector.load %arg1[%c0, %c0_0, %c0_1] : memref<1x296x12xf32, #tpu.memory_space<vmem>>, vector<1x296x12xf32>
    %1 = vector.shape_cast %0 : vector<1x296x12xf32> to vector<296x12xf32>
    %cst = arith.constant 0.000000e+00 : f32
    %2 = vector.broadcast %cst : f32 to vector<272x32xf32>
    %3 = vector.extract_strided_slice %1 {offsets = [0, 0], sizes = [272, 12], strides = [1, 1]} : vector<296x12xf32> to vector<272x12xf32>
    %4 = arith.truncf %3 : vector<272x12xf32> to vector<272x12xbf16>
    %c0_2 = arith.constant 0 : index
    %c0_3 = arith.constant 0 : index
    %c0_4 = arith.constant 0 : index
    %5 = vector.load %arg2[%c0_2, %c0_3, %c0_4] : memref<4x12x32xbf16, #tpu.memory_space<vmem>>, vector<1x12x32xbf16>
    %6 = vector.shape_cast %5 : vector<1x12x32xbf16> to vector<12x32xbf16>
    %cst_5 = arith.constant dense<0.000000e+00> : vector<272x32xf32>
    %7 = tpu.matmul %4, %6, %cst_5 {dimension_numbers = #tpu.dot_dimension_numbers<[1], [0], [0], [1], [0, 0, 1, 1], [], []>} : vector<272x12xbf16>, vector<12x32xbf16>, vector<272x32xf32> -> vector<272x32xf32>
    %8 = arith.addf %2, %7 : vector<272x32xf32>
    %9 = vector.extract_strided_slice %1 {offsets = [1, 0], sizes = [272, 12], strides = [1, 1]} : vector<296x12xf32> to vector<272x12xf32>
    %10 = arith.truncf %9 : vector<272x12xf32> to vector<272x12xbf16>
    %c1 = arith.constant 1 : index
    %c0_6 = arith.constant 0 : index
    %c0_7 = arith.constant 0 : index
    %11 = vector.load %arg2[%c1, %c0_6, %c0_7] : memref<4x12x32xbf16, #tpu.memory_space<vmem>>, vector<1x12x32xbf16>
    %12 = vector.shape_cast %11 : vector<1x12x32xbf16> to vector<12x32xbf16>
    %cst_8 = arith.constant dense<0.000000e+00> : vector<272x32xf32>
    %13 = tpu.matmul %10, %12, %cst_8 {dimension_numbers = #tpu.dot_dimension_numbers<[1], [0], [0], [1], [0, 0, 1, 1], [], []>} : vector<272x12xbf16>, vector<12x32xbf16>, vector<272x32xf32> -> vector<272x32xf32>
    %14 = arith.addf %8, %13 : vector<272x32xf32>
    %15 = vector.extract_strided_slice %1 {offsets = [17, 0], sizes = [272, 12], strides = [1, 1]} : vector<296x12xf32> to vector<272x12xf32>
    %16 = arith.truncf %15 : vector<272x12xf32> to vector<272x12xbf16>
    %c2 = arith.constant 2 : index
    %c0_9 = arith.constant 0 : index
    %c0_10 = arith.constant 0 : index
    %17 = vector.load %arg2[%c2, %c0_9, %c0_10] : memref<4x12x32xbf16, #tpu.memory_space<vmem>>, vector<1x12x32xbf16>
    %18 = vector.shape_cast %17 : vector<1x12x32xbf16> to vector<12x32xbf16>
    %cst_11 = arith.constant dense<0.000000e+00> : vector<272x32xf32>
    %19 = tpu.matmul %16, %18, %cst_11 {dimension_numbers = #tpu.dot_dimension_numbers<[1], [0], [0], [1], [0, 0, 1, 1], [], []>} : vector<272x12xbf16>, vector<12x32xbf16>, vector<272x32xf32> -> vector<272x32xf32>
    %20 = arith.addf %14, %19 : vector<272x32xf32>
    %21 = vector.extract_strided_slice %1 {offsets = [18, 0], sizes = [272, 12], strides = [1, 1]} : vector<296x12xf32> to vector<272x12xf32>
    %22 = arith.truncf %21 : vector<272x12xf32> to vector<272x12xbf16>
    %c3 = arith.constant 3 : index
    %c0_12 = arith.constant 0 : index
    %c0_13 = arith.constant 0 : index
    %23 = vector.load %arg2[%c3, %c0_12, %c0_13] : memref<4x12x32xbf16, #tpu.memory_space<vmem>>, vector<1x12x32xbf16>
    %24 = vector.shape_cast %23 : vector<1x12x32xbf16> to vector<12x32xbf16>
    %cst_14 = arith.constant dense<0.000000e+00> : vector<272x32xf32>
    %25 = tpu.matmul %22, %24, %cst_14 {dimension_numbers = #tpu.dot_dimension_numbers<[1], [0], [0], [1], [0, 0, 1, 1], [], []>} : vector<272x12xbf16>, vector<12x32xbf16>, vector<272x32xf32> -> vector<272x32xf32>
    %26 = arith.addf %20, %25 : vector<272x32xf32>
    %c0_15 = arith.constant 0 : index
    %c0_16 = arith.constant 0 : index
    %27 = vector.load %arg3[%c0_15, %c0_16] : memref<1x32xf32, #tpu.memory_space<vmem>>, vector<1x32xf32>
    %28 = vector.broadcast %27 : vector<1x32xf32> to vector<272x32xf32>
    %29 = arith.addf %26, %28 : vector<272x32xf32>
    %cst_17 = arith.constant 0.000000e+00 : f32
    %30 = vector.broadcast %cst_17 : f32 to vector<272x32xf32>
    %31 = arith.maximumf %29, %30 : vector<272x32xf32>
    %c0_18 = arith.constant 0 : index
    %c0_19 = arith.constant 0 : index
    %c0_20 = arith.constant 0 : index
    %32 = vector.load %arg4[%c0_18, %c0_19, %c0_20] : memref<1x272x32xf32, #tpu.memory_space<vmem>>, vector<1x272x32xf32>
    %33 = vector.shape_cast %32 : vector<1x272x32xf32> to vector<272x32xf32>
    %34 = vector.shape_cast %31 : vector<272x32xf32> to vector<1x272x32xf32>
    tpu.vector_store %arg4[%c0_18, %c0_19, %c0_20], %34 {strides = array<i32>} : memref<1x272x32xf32, #tpu.memory_space<vmem>>, vector<1x272x32xf32>,
    return
  }
  func.func @transform_0(%arg0: i32) -> (i32, i32, i32) {
    %c0_i32 = arith.constant 0 : i32
    %c0_i32_0 = arith.constant 0 : i32
    %c0_i32_1 = arith.constant 0 : i32
    return %arg0, %c0_i32, %c0_i32_0 : i32, i32, i32
  }
  func.func @transform_1(%arg0: i32) -> (i32, i32, i32) {
    %c0_i32 = arith.constant 0 : i32
    %c0_i32_0 = arith.constant 0 : i32
    %c0_i32_1 = arith.constant 0 : i32
    %c0_i32_2 = arith.constant 0 : i32
    return %c0_i32, %c0_i32_0, %c0_i32_1 : i32, i32, i32
  }
  func.func @transform_2(%arg0: i32) -> (i32, i32) {
    %c0_i32 = arith.constant 0 : i32
    %c0_i32_0 = arith.constant 0 : i32
    %c0_i32_1 = arith.constant 0 : i32
    return %c0_i32, %c0_i32_0 : i32, i32
  }
  func.func @transform_3(%arg0: i32) -> (i32, i32, i32) {
    %c0_i32 = arith.constant 0 : i32
    %c0_i32_0 = arith.constant 0 : i32
    %c0_i32_1 = arith.constant 0 : i32
    return %arg0, %c0_i32, %c0_i32_0 : i32, i32, i32
  }
}

module attributes {stable_mosaic.version = 11 : i64} {
  func.func @_conv_s2d_kernel(%arg0: i32, %arg1: memref<1x88x128xf32, #tpu.memory_space<vmem>>, %arg2: memref<4x128x32xbf16, #tpu.memory_space<vmem>>, %arg3: memref<1x32xf32, #tpu.memory_space<vmem>>, %arg4: memref<1x72x32xf32, #tpu.memory_space<vmem>>) attributes {dimension_semantics = [#tpu.dimension_semantics<parallel>], iteration_bounds = array<i64: 4>, scalar_prefetch = 0 : i64, scratch_operands = 0 : i64, tpu.core_type = #tpu.core_type<tc>, window_params = [{transform_indices = @transform_0, window_bounds = array<i64: 1, 88, 128>}, {pipeline_mode = #tpu.pipeline_mode<synchronous>, transform_indices = @transform_1, window_bounds = array<i64: 4, 128, 32>}, {pipeline_mode = #tpu.pipeline_mode<synchronous>, transform_indices = @transform_2, window_bounds = array<i64: 1, 32>}, {transform_indices = @transform_3, window_bounds = array<i64: 1, 72, 32>}]} {
    %c0 = arith.constant 0 : index
    %c0_0 = arith.constant 0 : index
    %c0_1 = arith.constant 0 : index
    %0 = vector.load %arg1[%c0, %c0_0, %c0_1] : memref<1x88x128xf32, #tpu.memory_space<vmem>>, vector<1x88x128xf32>
    %1 = vector.shape_cast %0 : vector<1x88x128xf32> to vector<88x128xf32>
    %cst = arith.constant 0.000000e+00 : f32
    %2 = vector.broadcast %cst : f32 to vector<72x32xf32>
    %3 = vector.extract_strided_slice %1 {offsets = [0, 0], sizes = [72, 128], strides = [1, 1]} : vector<88x128xf32> to vector<72x128xf32>
    %4 = arith.truncf %3 : vector<72x128xf32> to vector<72x128xbf16>
    %c0_2 = arith.constant 0 : index
    %c0_3 = arith.constant 0 : index
    %c0_4 = arith.constant 0 : index
    %5 = vector.load %arg2[%c0_2, %c0_3, %c0_4] : memref<4x128x32xbf16, #tpu.memory_space<vmem>>, vector<1x128x32xbf16>
    %6 = vector.shape_cast %5 : vector<1x128x32xbf16> to vector<128x32xbf16>
    %cst_5 = arith.constant dense<0.000000e+00> : vector<72x32xf32>
    %7 = tpu.matmul %4, %6, %cst_5 {dimension_numbers = #tpu.dot_dimension_numbers<[1], [0], [0], [1], [0, 0, 1, 1], [], []>} : vector<72x128xbf16>, vector<128x32xbf16>, vector<72x32xf32> -> vector<72x32xf32>
    %8 = arith.addf %2, %7 : vector<72x32xf32>
    %9 = vector.extract_strided_slice %1 {offsets = [1, 0], sizes = [72, 128], strides = [1, 1]} : vector<88x128xf32> to vector<72x128xf32>
    %10 = arith.truncf %9 : vector<72x128xf32> to vector<72x128xbf16>
    %c1 = arith.constant 1 : index
    %c0_6 = arith.constant 0 : index
    %c0_7 = arith.constant 0 : index
    %11 = vector.load %arg2[%c1, %c0_6, %c0_7] : memref<4x128x32xbf16, #tpu.memory_space<vmem>>, vector<1x128x32xbf16>
    %12 = vector.shape_cast %11 : vector<1x128x32xbf16> to vector<128x32xbf16>
    %cst_8 = arith.constant dense<0.000000e+00> : vector<72x32xf32>
    %13 = tpu.matmul %10, %12, %cst_8 {dimension_numbers = #tpu.dot_dimension_numbers<[1], [0], [0], [1], [0, 0, 1, 1], [], []>} : vector<72x128xbf16>, vector<128x32xbf16>, vector<72x32xf32> -> vector<72x32xf32>
    %14 = arith.addf %8, %13 : vector<72x32xf32>
    %15 = vector.extract_strided_slice %1 {offsets = [9, 0], sizes = [72, 128], strides = [1, 1]} : vector<88x128xf32> to vector<72x128xf32>
    %16 = arith.truncf %15 : vector<72x128xf32> to vector<72x128xbf16>
    %c2 = arith.constant 2 : index
    %c0_9 = arith.constant 0 : index
    %c0_10 = arith.constant 0 : index
    %17 = vector.load %arg2[%c2, %c0_9, %c0_10] : memref<4x128x32xbf16, #tpu.memory_space<vmem>>, vector<1x128x32xbf16>
    %18 = vector.shape_cast %17 : vector<1x128x32xbf16> to vector<128x32xbf16>
    %cst_11 = arith.constant dense<0.000000e+00> : vector<72x32xf32>
    %19 = tpu.matmul %16, %18, %cst_11 {dimension_numbers = #tpu.dot_dimension_numbers<[1], [0], [0], [1], [0, 0, 1, 1], [], []>} : vector<72x128xbf16>, vector<128x32xbf16>, vector<72x32xf32> -> vector<72x32xf32>
    %20 = arith.addf %14, %19 : vector<72x32xf32>
    %21 = vector.extract_strided_slice %1 {offsets = [10, 0], sizes = [72, 128], strides = [1, 1]} : vector<88x128xf32> to vector<72x128xf32>
    %22 = arith.truncf %21 : vector<72x128xf32> to vector<72x128xbf16>
    %c3 = arith.constant 3 : index
    %c0_12 = arith.constant 0 : index
    %c0_13 = arith.constant 0 : index
    %23 = vector.load %arg2[%c3, %c0_12, %c0_13] : memref<4x128x32xbf16, #tpu.memory_space<vmem>>, vector<1x128x32xbf16>
    %24 = vector.shape_cast %23 : vector<1x128x32xbf16> to vector<128x32xbf16>
    %cst_14 = arith.constant dense<0.000000e+00> : vector<72x32xf32>
    %25 = tpu.matmul %22, %24, %cst_14 {dimension_numbers = #tpu.dot_dimension_numbers<[1], [0], [0], [1], [0, 0, 1, 1], [], []>} : vector<72x128xbf16>, vector<128x32xbf16>, vector<72x32xf32> -> vector<72x32xf32>
    %26 = arith.addf %20, %25 : vector<72x32xf32>
    %c0_15 = arith.constant 0 : index
    %c0_16 = arith.constant 0 : index
    %27 = vector.load %arg3[%c0_15, %c0_16] : memref<1x32xf32, #tpu.memory_space<vmem>>, vector<1x32xf32>
    %28 = vector.broadcast %27 : vector<1x32xf32> to vector<72x32xf32>
    %29 = arith.addf %26, %28 : vector<72x32xf32>
    %cst_17 = arith.constant 0.000000e+00 : f32
    %30 = vector.broadcast %cst_17 : f32 to vector<72x32xf32>
    %31 = arith.maximumf %29, %30 : vector<72x32xf32>
    %c0_18 = arith.constant 0 : index
    %c0_19 = arith.constant 0 : index
    %c0_20 = arith.constant 0 : index
    %32 = vector.load %arg4[%c0_18, %c0_19, %c0_20] : memref<1x72x32xf32, #tpu.memory_space<vmem>>, vector<1x72x32xf32>
    %33 = vector.shape_cast %32 : vector<1x72x32xf32> to vector<72x32xf32>
    %34 = vector.shape_cast %31 : vector<72x32xf32> to vector<1x72x32xf32>
    tpu.vector_store %arg4[%c0_18, %c0_19, %c0_20], %34 {strides = array<i32>} : memref<1x72x32xf32, #tpu.memory_space<vmem>>, vector<1x72x32xf32>,
    return
  }
  func.func @transform_0(%arg0: i32) -> (i32, i32, i32) {
    %c0_i32 = arith.constant 0 : i32
    %c0_i32_0 = arith.constant 0 : i32
    %c0_i32_1 = arith.constant 0 : i32
    return %arg0, %c0_i32, %c0_i32_0 : i32, i32, i32
  }
  func.func @transform_1(%arg0: i32) -> (i32, i32, i32) {
    %c0_i32 = arith.constant 0 : i32
    %c0_i32_0 = arith.constant 0 : i32
    %c0_i32_1 = arith.constant 0 : i32
    %c0_i32_2 = arith.constant 0 : i32
    return %c0_i32, %c0_i32_0, %c0_i32_1 : i32, i32, i32
  }
  func.func @transform_2(%arg0: i32) -> (i32, i32) {
    %c0_i32 = arith.constant 0 : i32
    %c0_i32_0 = arith.constant 0 : i32
    %c0_i32_1 = arith.constant 0 : i32
    return %c0_i32, %c0_i32_0 : i32, i32
  }
  func.func @transform_3(%arg0: i32) -> (i32, i32, i32) {
    %c0_i32 = arith.constant 0 : i32
    %c0_i32_0 = arith.constant 0 : i32
    %c0_i32_1 = arith.constant 0 : i32
    return %arg0, %c0_i32, %c0_i32_0 : i32, i32, i32
  }
}

module attributes {stable_mosaic.version = 11 : i64} {
  func.func @_conv_s2d_kernel(%arg0: i32, %arg1: memref<1x32x128xf32, #tpu.memory_space<vmem>>, %arg2: memref<4x128x64xbf16, #tpu.memory_space<vmem>>, %arg3: memref<1x64xf32, #tpu.memory_space<vmem>>, %arg4: memref<1x20x64xf32, #tpu.memory_space<vmem>>) attributes {dimension_semantics = [#tpu.dimension_semantics<parallel>], iteration_bounds = array<i64: 4>, scalar_prefetch = 0 : i64, scratch_operands = 0 : i64, tpu.core_type = #tpu.core_type<tc>, window_params = [{transform_indices = @transform_0, window_bounds = array<i64: 1, 32, 128>}, {pipeline_mode = #tpu.pipeline_mode<synchronous>, transform_indices = @transform_1, window_bounds = array<i64: 4, 128, 64>}, {pipeline_mode = #tpu.pipeline_mode<synchronous>, transform_indices = @transform_2, window_bounds = array<i64: 1, 64>}, {transform_indices = @transform_3, window_bounds = array<i64: 1, 20, 64>}]} {
    %c0 = arith.constant 0 : index
    %c0_0 = arith.constant 0 : index
    %c0_1 = arith.constant 0 : index
    %0 = vector.load %arg1[%c0, %c0_0, %c0_1] : memref<1x32x128xf32, #tpu.memory_space<vmem>>, vector<1x32x128xf32>
    %1 = vector.shape_cast %0 : vector<1x32x128xf32> to vector<32x128xf32>
    %cst = arith.constant 0.000000e+00 : f32
    %2 = vector.broadcast %cst : f32 to vector<20x64xf32>
    %3 = vector.extract_strided_slice %1 {offsets = [0, 0], sizes = [20, 128], strides = [1, 1]} : vector<32x128xf32> to vector<20x128xf32>
    %4 = arith.truncf %3 : vector<20x128xf32> to vector<20x128xbf16>
    %c0_2 = arith.constant 0 : index
    %c0_3 = arith.constant 0 : index
    %c0_4 = arith.constant 0 : index
    %5 = vector.load %arg2[%c0_2, %c0_3, %c0_4] : memref<4x128x64xbf16, #tpu.memory_space<vmem>>, vector<1x128x64xbf16>
    %6 = vector.shape_cast %5 : vector<1x128x64xbf16> to vector<128x64xbf16>
    %cst_5 = arith.constant dense<0.000000e+00> : vector<20x64xf32>
    %7 = tpu.matmul %4, %6, %cst_5 {dimension_numbers = #tpu.dot_dimension_numbers<[1], [0], [0], [1], [0, 0, 1, 1], [], []>} : vector<20x128xbf16>, vector<128x64xbf16>, vector<20x64xf32> -> vector<20x64xf32>
    %8 = arith.addf %2, %7 : vector<20x64xf32>
    %9 = vector.extract_strided_slice %1 {offsets = [1, 0], sizes = [20, 128], strides = [1, 1]} : vector<32x128xf32> to vector<20x128xf32>
    %10 = arith.truncf %9 : vector<20x128xf32> to vector<20x128xbf16>
    %c1 = arith.constant 1 : index
    %c0_6 = arith.constant 0 : index
    %c0_7 = arith.constant 0 : index
    %11 = vector.load %arg2[%c1, %c0_6, %c0_7] : memref<4x128x64xbf16, #tpu.memory_space<vmem>>, vector<1x128x64xbf16>
    %12 = vector.shape_cast %11 : vector<1x128x64xbf16> to vector<128x64xbf16>
    %cst_8 = arith.constant dense<0.000000e+00> : vector<20x64xf32>
    %13 = tpu.matmul %10, %12, %cst_8 {dimension_numbers = #tpu.dot_dimension_numbers<[1], [0], [0], [1], [0, 0, 1, 1], [], []>} : vector<20x128xbf16>, vector<128x64xbf16>, vector<20x64xf32> -> vector<20x64xf32>
    %14 = arith.addf %8, %13 : vector<20x64xf32>
    %15 = vector.extract_strided_slice %1 {offsets = [5, 0], sizes = [20, 128], strides = [1, 1]} : vector<32x128xf32> to vector<20x128xf32>
    %16 = arith.truncf %15 : vector<20x128xf32> to vector<20x128xbf16>
    %c2 = arith.constant 2 : index
    %c0_9 = arith.constant 0 : index
    %c0_10 = arith.constant 0 : index
    %17 = vector.load %arg2[%c2, %c0_9, %c0_10] : memref<4x128x64xbf16, #tpu.memory_space<vmem>>, vector<1x128x64xbf16>
    %18 = vector.shape_cast %17 : vector<1x128x64xbf16> to vector<128x64xbf16>
    %cst_11 = arith.constant dense<0.000000e+00> : vector<20x64xf32>
    %19 = tpu.matmul %16, %18, %cst_11 {dimension_numbers = #tpu.dot_dimension_numbers<[1], [0], [0], [1], [0, 0, 1, 1], [], []>} : vector<20x128xbf16>, vector<128x64xbf16>, vector<20x64xf32> -> vector<20x64xf32>
    %20 = arith.addf %14, %19 : vector<20x64xf32>
    %21 = vector.extract_strided_slice %1 {offsets = [6, 0], sizes = [20, 128], strides = [1, 1]} : vector<32x128xf32> to vector<20x128xf32>
    %22 = arith.truncf %21 : vector<20x128xf32> to vector<20x128xbf16>
    %c3 = arith.constant 3 : index
    %c0_12 = arith.constant 0 : index
    %c0_13 = arith.constant 0 : index
    %23 = vector.load %arg2[%c3, %c0_12, %c0_13] : memref<4x128x64xbf16, #tpu.memory_space<vmem>>, vector<1x128x64xbf16>
    %24 = vector.shape_cast %23 : vector<1x128x64xbf16> to vector<128x64xbf16>
    %cst_14 = arith.constant dense<0.000000e+00> : vector<20x64xf32>
    %25 = tpu.matmul %22, %24, %cst_14 {dimension_numbers = #tpu.dot_dimension_numbers<[1], [0], [0], [1], [0, 0, 1, 1], [], []>} : vector<20x128xbf16>, vector<128x64xbf16>, vector<20x64xf32> -> vector<20x64xf32>
    %26 = arith.addf %20, %25 : vector<20x64xf32>
    %c0_15 = arith.constant 0 : index
    %c0_16 = arith.constant 0 : index
    %27 = vector.load %arg3[%c0_15, %c0_16] : memref<1x64xf32, #tpu.memory_space<vmem>>, vector<1x64xf32>
    %28 = vector.broadcast %27 : vector<1x64xf32> to vector<20x64xf32>
    %29 = arith.addf %26, %28 : vector<20x64xf32>
    %cst_17 = arith.constant 0.000000e+00 : f32
    %30 = vector.broadcast %cst_17 : f32 to vector<20x64xf32>
    %31 = arith.maximumf %29, %30 : vector<20x64xf32>
    %c0_18 = arith.constant 0 : index
    %c0_19 = arith.constant 0 : index
    %c0_20 = arith.constant 0 : index
    %32 = vector.load %arg4[%c0_18, %c0_19, %c0_20] : memref<1x20x64xf32, #tpu.memory_space<vmem>>, vector<1x20x64xf32>
    %33 = vector.shape_cast %32 : vector<1x20x64xf32> to vector<20x64xf32>
    %34 = vector.shape_cast %31 : vector<20x64xf32> to vector<1x20x64xf32>
    tpu.vector_store %arg4[%c0_18, %c0_19, %c0_20], %34 {strides = array<i32>} : memref<1x20x64xf32, #tpu.memory_space<vmem>>, vector<1x20x64xf32>,
    return
  }
  func.func @transform_0(%arg0: i32) -> (i32, i32, i32) {
    %c0_i32 = arith.constant 0 : i32
    %c0_i32_0 = arith.constant 0 : i32
    %c0_i32_1 = arith.constant 0 : i32
    return %arg0, %c0_i32, %c0_i32_0 : i32, i32, i32
  }
  func.func @transform_1(%arg0: i32) -> (i32, i32, i32) {
    %c0_i32 = arith.constant 0 : i32
    %c0_i32_0 = arith.constant 0 : i32
    %c0_i32_1 = arith.constant 0 : i32
    %c0_i32_2 = arith.constant 0 : i32
    return %c0_i32, %c0_i32_0, %c0_i32_1 : i32, i32, i32
  }
  func.func @transform_2(%arg0: i32) -> (i32, i32) {
    %c0_i32 = arith.constant 0 : i32
    %c0_i32_0 = arith.constant 0 : i32
    %c0_i32_1 = arith.constant 0 : i32
    return %c0_i32, %c0_i32_0 : i32, i32
  }
  func.func @transform_3(%arg0: i32) -> (i32, i32, i32) {
    %c0_i32 = arith.constant 0 : i32
    %c0_i32_0 = arith.constant 0 : i32
    %c0_i32_1 = arith.constant 0 : i32
    return %arg0, %c0_i32, %c0_i32_0 : i32, i32, i32
  }
}

module attributes {stable_mosaic.version = 11 : i64} {
  func.func @_dense_heads_kernel(%arg0: i32, %arg1: memref<4x1280xf32, #tpu.memory_space<vmem>>, %arg2: memref<1280x32xbf16, #tpu.memory_space<vmem>>, %arg3: memref<1x32xf32, #tpu.memory_space<vmem>>, %arg4: memref<32x128xbf16, #tpu.memory_space<vmem>>, %arg5: memref<1x128xf32, #tpu.memory_space<vmem>>, %arg6: memref<4x32xf32, #tpu.memory_space<vmem>>, %arg7: memref<4x128xf32, #tpu.memory_space<vmem>>) attributes {dimension_semantics = [#tpu.dimension_semantics<parallel>], iteration_bounds = array<i64: 1>, scalar_prefetch = 0 : i64, scratch_operands = 0 : i64, tpu.core_type = #tpu.core_type<tc>, window_params = [{transform_indices = @transform_0, window_bounds = array<i64: 4, 1280>}, {pipeline_mode = #tpu.pipeline_mode<synchronous>, transform_indices = @transform_1, window_bounds = array<i64: 1280, 32>}, {pipeline_mode = #tpu.pipeline_mode<synchronous>, transform_indices = @transform_2, window_bounds = array<i64: 1, 32>}, {pipeline_mode = #tpu.pipeline_mode<synchronous>, transform_indices = @transform_3, window_bounds = array<i64: 32, 128>}, {pipeline_mode = #tpu.pipeline_mode<synchronous>, transform_indices = @transform_4, window_bounds = array<i64: 1, 128>}, {transform_indices = @transform_5, window_bounds = array<i64: 4, 32>}, {transform_indices = @transform_6, window_bounds = array<i64: 4, 128>}]} {
    %c0 = arith.constant 0 : index
    %c0_0 = arith.constant 0 : index
    %0 = vector.load %arg1[%c0, %c0_0] : memref<4x1280xf32, #tpu.memory_space<vmem>>, vector<4x1280xf32>
    %1 = arith.truncf %0 : vector<4x1280xf32> to vector<4x1280xbf16>
    %c0_1 = arith.constant 0 : index
    %c0_2 = arith.constant 0 : index
    %2 = vector.load %arg2[%c0_1, %c0_2] : memref<1280x32xbf16, #tpu.memory_space<vmem>>, vector<1280x32xbf16>
    %cst = arith.constant dense<0.000000e+00> : vector<4x32xf32>
    %3 = tpu.matmul %1, %2, %cst {dimension_numbers = #tpu.dot_dimension_numbers<[1], [0], [0], [1], [0, 0, 1, 1], [], []>} : vector<4x1280xbf16>, vector<1280x32xbf16>, vector<4x32xf32> -> vector<4x32xf32>
    %c0_3 = arith.constant 0 : index
    %c0_4 = arith.constant 0 : index
    %4 = vector.load %arg3[%c0_3, %c0_4] : memref<1x32xf32, #tpu.memory_space<vmem>>, vector<1x32xf32>
    %5 = vector.broadcast %4 : vector<1x32xf32> to vector<4x32xf32>
    %6 = arith.addf %3, %5 : vector<4x32xf32>
    %cst_5 = arith.constant 0.000000e+00 : f32
    %7 = vector.broadcast %cst_5 : f32 to vector<4x32xf32>
    %8 = arith.maximumf %6, %7 : vector<4x32xf32>
    %9 = arith.truncf %8 : vector<4x32xf32> to vector<4x32xbf16>
    %c0_6 = arith.constant 0 : index
    %c0_7 = arith.constant 0 : index
    %10 = vector.load %arg4[%c0_6, %c0_7] : memref<32x128xbf16, #tpu.memory_space<vmem>>, vector<32x128xbf16>
    %cst_8 = arith.constant dense<0.000000e+00> : vector<4x128xf32>
    %11 = tpu.matmul %9, %10, %cst_8 {dimension_numbers = #tpu.dot_dimension_numbers<[1], [0], [0], [1], [0, 0, 1, 1], [], []>} : vector<4x32xbf16>, vector<32x128xbf16>, vector<4x128xf32> -> vector<4x128xf32>
    %c0_9 = arith.constant 0 : index
    %c0_10 = arith.constant 0 : index
    %12 = vector.load %arg5[%c0_9, %c0_10] : memref<1x128xf32, #tpu.memory_space<vmem>>, vector<1x128xf32>
    %13 = vector.broadcast %12 : vector<1x128xf32> to vector<4x128xf32>
    %14 = arith.addf %11, %13 : vector<4x128xf32>
    %15 = tpu.iota {dimensions = array<i32: 1>} : vector<4x128xi32>
    %c16_i32 = arith.constant 16 : i32
    %16 = vector.broadcast %c16_i32 : i32 to vector<4x128xi32>
    %17 = arith.cmpi sge, %15, %16 : vector<4x128xi32>
    %c19_i32 = arith.constant 19 : i32
    %18 = vector.broadcast %c19_i32 : i32 to vector<4x128xi32>
    %19 = arith.cmpi slt, %15, %18 : vector<4x128xi32>
    %20 = arith.andi %17, %19 : vector<4x128xi1>
    %cst_11 = arith.constant 0xFF800000 : f32
    %21 = vector.broadcast %cst_11 : f32 to vector<4x128xf32>
    %22 = arith.select %20, %14, %21 : vector<4x128xi1>, vector<4x128xf32>
    %cst_12 = arith.constant dense<0xFF800000> : vector<4xf32>
    %23 = vector.multi_reduction <maximumf>, %22, %cst_12 [1] : vector<4x128xf32> to vector<4xf32>
    %24 = vector.shape_cast %23 : vector<4xf32> to vector<4x1xf32>
    %25 = vector.broadcast %24 : vector<4x1xf32> to vector<4x128xf32>
    %26 = arith.subf %14, %25 : vector<4x128xf32>
    %cst_13 = arith.constant 0.000000e+00 : f32
    %27 = vector.broadcast %cst_13 : f32 to vector<4x128xf32>
    %28 = arith.minimumf %26, %27 : vector<4x128xf32>
    %29 = math.exp %28 : vector<4x128xf32>
    %cst_14 = arith.constant 0.000000e+00 : f32
    %30 = vector.broadcast %cst_14 : f32 to vector<4x128xf32>
    %31 = arith.select %20, %29, %30 : vector<4x128xi1>, vector<4x128xf32>
    %cst_15 = arith.constant dense<0.000000e+00> : vector<4xf32>
    %32 = vector.multi_reduction <add>, %31, %cst_15 [1] : vector<4x128xf32> to vector<4xf32>
    %33 = vector.shape_cast %32 : vector<4xf32> to vector<4x1xf32>
    %34 = tpu.reciprocal %33 {approx = true} : vector<4x1xf32> -> vector<4x1xf32>
    %35 = vector.broadcast %34 : vector<4x1xf32> to vector<4x128xf32>
    %36 = arith.mulf %31, %35 : vector<4x128xf32>
    %37 = arith.select %20, %36, %14 : vector<4x128xi1>, vector<4x128xf32>
    %c19_i32_16 = arith.constant 19 : i32
    %38 = vector.broadcast %c19_i32_16 : i32 to vector<4x128xi32>
    %39 = arith.cmpi sge, %15, %38 : vector<4x128xi32>
    %c23_i32 = arith.constant 23 : i32
    %40 = vector.broadcast %c23_i32 : i32 to vector<4x128xi32>
    %41 = arith.cmpi slt, %15, %40 : vector<4x128xi32>
    %42 = arith.andi %39, %41 : vector<4x128xi1>
    %cst_17 = arith.constant 0xFF800000 : f32
    %43 = vector.broadcast %cst_17 : f32 to vector<4x128xf32>
    %44 = arith.select %42, %37, %43 : vector<4x128xi1>, vector<4x128xf32>
    %cst_18 = arith.constant dense<0xFF800000> : vector<4xf32>
    %45 = vector.multi_reduction <maximumf>, %44, %cst_18 [1] : vector<4x128xf32> to vector<4xf32>
    %46 = vector.shape_cast %45 : vector<4xf32> to vector<4x1xf32>
    %47 = vector.broadcast %46 : vector<4x1xf32> to vector<4x128xf32>
    %48 = arith.subf %37, %47 : vector<4x128xf32>
    %cst_19 = arith.constant 0.000000e+00 : f32
    %49 = vector.broadcast %cst_19 : f32 to vector<4x128xf32>
    %50 = arith.minimumf %48, %49 : vector<4x128xf32>
    %51 = math.exp %50 : vector<4x128xf32>
    %cst_20 = arith.constant 0.000000e+00 : f32
    %52 = vector.broadcast %cst_20 : f32 to vector<4x128xf32>
    %53 = arith.select %42, %51, %52 : vector<4x128xi1>, vector<4x128xf32>
    %cst_21 = arith.constant dense<0.000000e+00> : vector<4xf32>
    %54 = vector.multi_reduction <add>, %53, %cst_21 [1] : vector<4x128xf32> to vector<4xf32>
    %55 = vector.shape_cast %54 : vector<4xf32> to vector<4x1xf32>
    %56 = tpu.reciprocal %55 {approx = true} : vector<4x1xf32> -> vector<4x1xf32>
    %57 = vector.broadcast %56 : vector<4x1xf32> to vector<4x128xf32>
    %58 = arith.mulf %53, %57 : vector<4x128xf32>
    %59 = arith.select %42, %58, %37 : vector<4x128xi1>, vector<4x128xf32>
    %c0_22 = arith.constant 0 : index
    %c0_23 = arith.constant 0 : index
    %60 = vector.load %arg6[%c0_22, %c0_23] : memref<4x32xf32, #tpu.memory_space<vmem>>, vector<4x32xf32>
    tpu.vector_store %arg6[%c0_22, %c0_23], %8 {strides = array<i32>} : memref<4x32xf32, #tpu.memory_space<vmem>>, vector<4x32xf32>,
    %c0_24 = arith.constant 0 : index
    %c0_25 = arith.constant 0 : index
    %61 = vector.load %arg7[%c0_24, %c0_25] : memref<4x128xf32, #tpu.memory_space<vmem>>, vector<4x128xf32>
    tpu.vector_store %arg7[%c0_24, %c0_25], %59 {strides = array<i32>} : memref<4x128xf32, #tpu.memory_space<vmem>>, vector<4x128xf32>,
    return
  }
  func.func @transform_0(%arg0: i32) -> (i32, i32) {
    %c0_i32 = arith.constant 0 : i32
    %c0_i32_0 = arith.constant 0 : i32
    return %arg0, %c0_i32 : i32, i32
  }
  func.func @transform_1(%arg0: i32) -> (i32, i32) {
    %c0_i32 = arith.constant 0 : i32
    %c0_i32_0 = arith.constant 0 : i32
    %c0_i32_1 = arith.constant 0 : i32
    return %c0_i32, %c0_i32_0 : i32, i32
  }
  func.func @transform_2(%arg0: i32) -> (i32, i32) {
    %c0_i32 = arith.constant 0 : i32
    %c0_i32_0 = arith.constant 0 : i32
    %c0_i32_1 = arith.constant 0 : i32
    return %c0_i32, %c0_i32_0 : i32, i32
  }
  func.func @transform_3(%arg0: i32) -> (i32, i32) {
    %c0_i32 = arith.constant 0 : i32
    %c0_i32_0 = arith.constant 0 : i32
    %c0_i32_1 = arith.constant 0 : i32
    return %c0_i32, %c0_i32_0 : i32, i32
  }
  func.func @transform_4(%arg0: i32) -> (i32, i32) {
    %c0_i32 = arith.constant 0 : i32
    %c0_i32_0 = arith.constant 0 : i32
    %c0_i32_1 = arith.constant 0 : i32
    return %c0_i32, %c0_i32_0 : i32, i32
  }
  func.func @transform_5(%arg0: i32) -> (i32, i32) {
    %c0_i32 = arith.constant 0 : i32
    %c0_i32_0 = arith.constant 0 : i32
    return %arg0, %c0_i32 : i32, i32
  }
  func.func @transform_6(%arg0: i32) -> (i32, i32) {
    %c0_i32 = arith.constant 0 : i32
    %c0_i32_0 = arith.constant 0 : i32
    return %arg0, %c0_i32 : i32, i32
  }
}

</mosaic_0001>

<bundles_post_ra>
// kernel: encoder_vae_conv_forward.4
= control target key start
LH: loop header
LB: loop body
LE: loop exit
PB: predicated region body
PF: predicated region fallthrough
CT: control target
= control target key end

     0   :  { %s2019_s12 = smov 0   ;;  %s2695_s0 = inlined_call_operand.vmem [shape: f32[4,296,12], index: 0, kind: input, shape index: {}]   ;;  %s2696_s1 = inlined_call_operand.vmem [shape: bf16[4,12,32], index: 1, kind: input, shape index: {}]   ;;  %s2697_s2 = inlined_call_operand.vmem [shape: f32[1,32], index: 2, kind: input, shape index: {}]   ;;  %s2698_s3 = inlined_call_operand.vmem [shape: f32[4,272,32], index: 3, kind: output, shape index: {}]  }
   0x1 LB: > { %s1533_s13 = sadd.s32 4294967295, %s1995_s12   ;;  %p1537_p0 = scmp.ge.s32.totalorder %s1995_s12, 1  ;;  %s1995_s12 = sphi %s2019_s12, %s13_s12  }
   0x2   : > { %p137_p1 = scmp.lt.s32.totalorder %s1995_s12, 5 }
   0x4   : > { %p138_p2 = pnand %p1537_p0, %p137_p1 }
   0x5   : > { %vm430_vm0 = vcmask (!%p138_p2), 1045504   ;;  %v1997_v0 = vmov (!%p138_p2), 0.0   ;;  %v1985_v1 = vld [vmem:[%s2696_s1 + $0x8] sm:$0x3f] (!%p138_p2)   ;;  %v1986_v2 = vld [vmem:[%s2696_s1] sm:$0x3f] (!%p138_p2)  }
   0x6   : > { %141 = sbr.rel (%p138_p2) target bundleno = 514 (0x202), region = 32  ;;  %1693 = vmatprep.subr.bf16.mxu0 (!%p138_p2), %v1997_v0  ;;  %1763 = vmatprep.subr.bf16.mxu1 (!%p138_p2), %v1997_v0  ;;  %p161_p3 = scmp.lt.s32.totalorder (!%p138_p2), %s1533_s13, 3  ;;  %v432_v3 = vsel (!%p138_p2), %vm430_vm0, %v1985_v1, 0  ;;  %vm1998_vm1 = vmmov (!%p138_p2), 0   ;;  %v643_v4 = vsel (!%p138_p2), %vm430_vm0, %v1986_v2, 0  ;;  %vm378_vm2 = vcmask (!%p138_p2), 97280  }
   0x7   : > { %1765 = vmatprep.mubr.msk.bf16.mxu1 (!%p138_p2), %vm1998_vm1, %v1997_v0  ;;  %1695 = vmatprep.mubr.msk.bf16.mxu0 (!%p138_p2), %vm1998_vm1, %v1997_v0  ;;  %v1988_v5 = vld [vmem:[%s2696_s1 + $0x18] sm:$0x3f] (!%p138_p2)   ;;  %v1987_v19 = vld [vmem:[%s2696_s1 + $0x10] sm:$0x3f] (!%p138_p2)   ;;  %vm232_vm3 = vsmask.f32 (!%p138_p2), 7424 }
   0x8   : > { %1694 = vmatpush3.bf16.msra.mxu0 (!%p138_p2), %v432_v3  ;;  %1764 = vmatpush3.bf16.msra.mxu1 (!%p138_p2), %v643_v4  ;;  %v1163_v11 = vsel (!%p138_p2), %vm430_vm0, %v1988_v5, 0  ;;  %v844_v25 = vsel (!%p138_p2), %vm430_vm0, %v1987_v19, 0  ;;  %vm1070_vm4 = vcmask (!%p138_p2), 1046528   ;;  %vm1443_vm5 = vcmask (!%p138_p2), 261120  }
   0x9   : > { %1833 = vmatprep.subr.bf16.mxu0 (!%p138_p2), %v1997_v0  ;;  %1903 = vmatprep.subr.bf16.mxu1 (!%p138_p2), %v1997_v0 }
   0xd   : > { %s2700_s13 = smov (!%p161_p3, %s1533_s13), 3 }
   0xe   : > { %s1973_s18 = smul.u32 296, %s2700_s13 }
   0xf   : > { %s1974_s26 = smul.u32 272, %s2700_s13 }
  0x10   : > { %s2052_s23 = scalar_lea.vmem %s2695_s0, %s1973_s18 }
  0x11   : > { %v172_v6 = vld [vmem:[%s2052_s23] sm:$0xff]  ;;  %v173_v7 = vld [vmem:[%s2052_s23 + $0x8] sm:$0xff]  ;;  %v174_v8 = vld [vmem:[%s2052_s23 + $0x10] sm:$0xff]  ;;  %s2557_s4 = scalar_lea.vmem %s2698_s3, %s1974_s26 }
  0x12   : > { %v209_v9 = vpack.c.bf16 %v173_v7, %v172_v6  ;;  %v175_v10 = vld [vmem:[%s2052_s23 + $0x18] sm:$0xff]  ;;  %v176_v12 = vld [vmem:[%s2052_s23 + $0x20] sm:$0xff]  ;;  %v177_v13 = vld [vmem:[%s2052_s23 + $0x28] sm:$0xff] }
  0x13   : > { %v210_v14 = vpack.c.bf16 %v175_v10, %v174_v8  ;;  %v211_v17 = vpack.c.bf16 %v177_v13, %v176_v12  ;;  %v178_v26 = vld [vmem:[%s2052_s23 + $0x30] sm:$0xff]  ;;  %v179_v27 = vld [vmem:[%s2052_s23 + $0x38] sm:$0xff]  ;;  %v180_v35 = vld [vmem:[%s2052_s23 + $0x40] sm:$0xff] }
  0x14   : > { %1766 = vmatmul.mubr.msk.bf16.vlgmr.msra.gmra.mrb[0].mxu1 %vm378_vm2, %v209_v9  ;;  %v234_v15 = vshrl.u32 %v209_v9, 16  ;;  %v236_v16 = vshll.u32 %v209_v9, 16  ;;  %v212_v31 = vpack.c.bf16 %v179_v27, %v178_v26  ;;  %v181_v36 = vld [vmem:[%s2052_s23 + $0x48] sm:$0xff]  ;;  %v182_v43 = vld [vmem:[%s2052_s23 + $0x50] sm:$0xff]  ;;  %v183_v44 = vld [vmem:[%s2052_s23 + $0x58] sm:$0xff] }
  0x15   : > { %v241_v18 = vshll.u32 %v210_v14, 16  ;;  %1904 = vmatpush3.bf16.msra.mxu1 %v1163_v11  ;;  %1769 = vmatprep.mubr.msk.bf16.mxu1 %vm1998_vm1, %v1997_v0  ;;  %v245_v23 = vshrl.u32 %v210_v14, 16  ;;  %v249_v24 = vshll.u32 %v211_v17, 16  ;;  %v253_v33 = vshrl.u32 %v211_v17, 16  ;;  %v184_v58 = vld [vmem:[%s2052_s23 + $0x60] sm:$0xff]  ;;  %v185_v59 = vld [vmem:[%s2052_s23 + $0x68] sm:$0xff] }
  0x16   : > { %v238_v20 = vrot.slane %v236_v16, 1  ;;  %v257_v34 = vshll.u32 %v212_v31, 16  ;;  %v213_v39 = vpack.c.bf16 %v181_v36, %v180_v35  ;;  %v261_v41 = vshrl.u32 %v212_v31, 16  ;;  %v186_v5 = vld [vmem:[%s2052_s23 + $0x70] sm:$0xff]  ;;  %v187_v6 = vld [vmem:[%s2052_s23 + $0x78] sm:$0xff]  ;;  %v189_v16 = vld [vmem:[%s2052_s23 + $0x88] sm:$0xff] }
  0x17   : > { %v243_v21 = vrot.slane %v241_v18, 1  ;;  %v251_v30 = vrot.slane %v249_v24, 1  ;;  %v214_v45 = vpack.c.bf16 %v183_v44, %v182_v43  ;;  %v1071_v48 = vrot.slane %v210_v14, 1  ;;  %v191_v26 = vld [vmem:[%s2052_s23 + $0x98] sm:$0xff]  ;;  %v192_v36 = vld [vmem:[%s2052_s23 + $0xa0] sm:$0xff] }
  0x18   : > { %v239_v22 = vor.u32 %v238_v20, %v234_v15  ;;  %v259_v38 = vrot.slane %v257_v34, 1  ;;  %v265_v42 = vshll.u32 %v213_v39, 16  ;;  %v1072_v49 = vrot.slane %v211_v17, 1  ;;  %v188_v15 = vld [vmem:[%s2052_s23 + $0x80] sm:$0xff] }
  0x19   : > { %v247_v29 = vor.u32 %v245_v23, %v243_v21  ;;  %v255_v37 = vor.u32 %v253_v33, %v251_v30  ;;  %v1074_v50 = vrot.slane %v212_v31, 1  ;;  %v1076_v51 = vrot.slane %v213_v39, 1 }
  0x1a   : > { %v244_v28 = vsel %vm232_vm3, %v239_v22, %v243_v21  ;;  %v263_v46 = vor.u32 %v261_v41, %v259_v38  ;;  %v267_v47 = vrot.slane %v265_v42, 1  ;;  %v2102_v52 = vsel %vm1070_vm4, %v1071_v48, %v1072_v49  ;;  %v195_v48 = vld [vmem:[%s2052_s23 + $0xb8] sm:$0xff] }
  0x1b   : > { %1696 = vmatmul.mubr.msk.bf16.vlgmr.msra.gmra.mrb[0].mxu0 %vm378_vm2, %v244_v28  ;;  %v2078_v32 = vsel %vm232_vm3, %v247_v29, %v251_v30  ;;  %v2090_v40 = vsel %vm232_vm3, %v255_v37, %v259_v38  ;;  %v2105_v53 = vsel %vm1070_vm4, %v1072_v49, %v1074_v50  ;;  %v269_v55 = vshrl.u32 %v213_v39, 16  ;;  %v193_v37 = vld [vmem:[%s2052_s23 + $0xa8] sm:$0xff] }
  0x1c   : > { %1834 = vmatpush3.bf16.msra.mxu0 %v844_v25  ;;  %1699 = vmatprep.mubr.msk.bf16.mxu0 %vm1998_vm1, %v1997_v0  ;;  %v2108_v54 = vsel %vm232_vm3, %v263_v46, %v267_v47  ;;  %v273_v56 = vshll.u32 %v214_v45, 16  ;;  %v2111_v57 = vsel %vm1070_vm4, %v1074_v50, %v1076_v51  ;;  %v215_v62 = vpack.c.bf16 %v185_v59, %v184_v58  ;;  %v190_v25 = vld [vmem:[%s2052_s23 + $0x90] sm:$0xff]  ;;  %v196_v59 = vld [vmem:[%s2052_s23 + $0xc0] sm:$0xff] }
  0x1d   : > { %1770 = vmatmul.mubr.msk.bf16.gmra.mrb[4].mxu1 %vm378_vm2, %v210_v14  ;;  %v271_v60 = vor.u32 %v269_v55, %v267_v47  ;;  %v1078_v63 = vrot.slane %v214_v45, 1  ;;  %v277_v3 = vshrl.u32 %v214_v45, 16  ;;  %v216_v9 = vpack.c.bf16 %v187_v6, %v186_v5  ;;  %v194_v47 = vld [vmem:[%s2052_s23 + $0xb0] sm:$0xff] }
  0x1e   : > { %1773 = vmatprep.mubr.msk.bf16.mxu1 %vm1998_vm1, %v1997_v0  ;;  %v275_v61 = vrot.slane %v273_v56, 1  ;;  %v281_v4 = vshll.u32 %v215_v62, 16  ;;  %v1080_v10 = vrot.slane %v215_v62, 1  ;;  %v285_v13 = vshrl.u32 %v215_v62, 16  ;;  %v198_v6 = vld [vmem:[%s2052_s23 + $0xd0] sm:$0xff] }
  0x1f   : > { %v2123_v1 = vsel %vm1070_vm4, %v1076_v51, %v1078_v63  ;;  %v289_v14 = vshll.u32 %v216_v9, 16  ;;  %v217_v19 = vpack.c.bf16 %v189_v16, %v188_v15  ;;  %v1082_v20 = vrot.slane %v216_v9, 1  ;;  %v200_v16 = vld [vmem:[%s2052_s23 + $0xe0] sm:$0xff] }
  0x20   : > { %v2126_v2 = vsel %vm232_vm3, %v271_v60, %v275_v61  ;;  %v279_v7 = vor.u32 %v277_v3, %v275_v61  ;;  %v283_v8 = vrot.slane %v281_v4, 1  ;;  %v2138_v11 = vsel %vm1070_vm4, %v1078_v63, %v1080_v10  ;;  %v197_v60 = vld [vmem:[%s2052_s23 + $0xc8] sm:$0xff] }
  0x21   : > { %v291_v18 = vrot.slane %v289_v14, 1  ;;  %v2153_v21 = vsel %vm1070_vm4, %v1080_v10, %v1082_v20  ;;  %v293_v23 = vshrl.u32 %v216_v9, 16  ;;  %v297_v24 = vshll.u32 %v217_v19, 16 }
  0x22   : > { %v2141_v12 = vsel %vm232_vm3, %v279_v7, %v283_v8  ;;  %v2164_v29 = vpack.c.bf16 %v191_v26, %v190_v25  ;;  %v1084_v30 = vrot.slane %v217_v19, 1  ;;  %v301_v34 = vshrl.u32 %v217_v19, 16  ;;  %v199_v7 = vld [vmem:[%s2052_s23 + $0xd8] sm:$0xff]  ;;  %v202_v26 = vld [vmem:[%s2052_s23 + $0xf0] sm:$0xff] }
  0x23   : > { %1700 = vmatmul.mubr.msk.bf16.gmra.mrb[4].mxu0 %vm378_vm2, %v2078_v32  ;;  %v295_v27 = vor.u32 %v293_v23, %v291_v18  ;;  %v299_v28 = vrot.slane %v297_v24, 1  ;;  %v2182_v41 = vpack.c.bf16 %v193_v37, %v192_v36  ;;  %v2204_v51 = vpack.c.bf16 %v195_v48, %v194_v47 }
  0x24   : > { %1703 = vmatprep.mubr.msk.bf16.mxu0 %vm1998_vm1, %v1997_v0  ;;  %v305_v35 = vshll.u32 %v2164_v29, 16  ;;  %v1086_v42 = vrot.slane %v2164_v29, 1  ;;  %v2221_v63 = vpack.c.bf16 %v197_v60, %v196_v59  ;;  %v2238_v10 = vpack.c.bf16 %v199_v7, %v198_v6 }
  0x25   : > { %1774 = vmatmul.mubr.msk.bf16.gmra.mrb[8].mxu1 %vm378_vm2, %v211_v17  ;;  %v287_v17 = vor.u32 %v285_v13, %v283_v8  ;;  %v2173_v33 = vsel %vm232_vm3, %v295_v27, %v299_v28  ;;  %v303_v38 = vor.u32 %v301_v34, %v299_v28  ;;  %v313_v46 = vshll.u32 %v2182_v41, 16  ;;  %v203_v27 = vld [vmem:[%s2052_s23 + $0xf8] sm:$0xff] }
  0x26   : > { %1777 = vmatprep.mubr.msk.bf16.mxu1 %vm1998_vm1, %v1997_v0  ;;  %v2191_v43 = vsel %vm1070_vm4, %v1084_v30, %v1086_v42  ;;  %v317_v56 = vshrl.u32 %v2182_v41, 16  ;;  %v321_v58 = vshll.u32 %v2204_v51, 16  ;;  %v325_v4 = vshrl.u32 %v2204_v51, 16 }
  0x27   : > { %v2156_v22 = vsel %vm232_vm3, %v287_v17, %v291_v18  ;;  %v315_v50 = vrot.slane %v313_v46, 1  ;;  %v329_v5 = vshll.u32 %v2221_v63, 16  ;;  %v333_v14 = vshrl.u32 %v2221_v63, 16  ;;  %v201_v17 = vld [vmem:[%s2052_s23 + $0xe8] sm:$0xff] }
  0x28   : > { %v337_v15 = vshll.u32 %v2238_v10, 16  ;;  %v341_v24 = vshrl.u32 %v2238_v10, 16  ;;  %v2272_v34 = vpack.c.bf16 %v203_v27, %v202_v26 }
  0x29   : > { %v319_v61 = vor.u32 %v317_v56, %v315_v50  ;;  %v2301_v56 = vld [vmem:[%s2052_s23 + $0x110] sm:$0xff] }
  0x2a   : > { %v353_v37 = vshll.u32 %v2272_v34, 16  ;;  %v228_v60 = vpack.c.bf16 %v2301_v56, %v2301_v56 }
  0x2b   : > { %1704 = vmatmul.mubr.msk.bf16.gmra.mrb[8].mxu0 %vm378_vm2, %v2090_v40 }
  0x2c   : > { %1707 = vmatprep.mubr.msk.bf16.mxu0 %vm1998_vm1, %v1997_v0  ;;  %v355_v46 = vrot.slane %v353_v37, 1 }
  0x2d   : > { %1778 = vmatmul.mubr.msk.bf16.gmra.mrb[12].mxu1 %vm378_vm2, %v212_v31  ;;  %v2170_v31 = vsel %vm1070_vm4, %v1082_v20, %v1084_v30  ;;  %v2255_v20 = vpack.c.bf16 %v201_v17, %v200_v16 }
  0x2e   : > { %1781 = vmatprep.mubr.msk.bf16.mxu1 %vm1998_vm1, %v1997_v0 }
  0x2f   : > { %v345_v25 = vshll.u32 %v2255_v20, 16  ;;  %v349_v36 = vshrl.u32 %v2255_v20, 16 }
  0x31   : > { %v347_v30 = vrot.slane %v345_v25, 1  ;;  %v1098_v25 = vrot.slane %v2272_v34, 1 }
  0x33   : > { %1708 = vmatmul.mubr.msk.bf16.gmra.mrb[12].mxu0 %vm378_vm2, %v2108_v54 }
  0x34   : > { %1711 = vmatprep.mubr.msk.bf16.mxu0 %vm1998_vm1, %v1997_v0 }
  0x35   : > { %1782 = vmatmul.mubr.msk.bf16.gmra.mrb[16].mxu1 %vm378_vm2, %v213_v39  ;;  %v307_v39 = vrot.slane %v305_v35, 1 }
  0x36   : > { %1785 = vmatprep.mubr.msk.bf16.mxu1 %vm1998_vm1, %v1997_v0 }
  0x37   : > { %v2194_v44 = vsel %vm232_vm3, %v303_v38, %v307_v39  ;;  %v204_v38 = vld [vmem:[%s2052_s23 + $0x100] sm:$0xff] }
  0x3b   : > { %1712 = vmatmul.mubr.msk.bf16.gmra.mrb[16].mxu0 %vm378_vm2, %v2126_v2 }
  0x3c   : > { %1715 = vmatprep.mubr.msk.bf16.mxu0 %vm1998_vm1, %v1997_v0 }
  0x3d   : > { %1786 = vmatmul.mubr.msk.bf16.gmra.mrb[20].mxu1 %vm378_vm2, %v214_v45  ;;  %v309_v45 = vshrl.u32 %v2164_v29, 16 }
  0x3e   : > { %1789 = vmatprep.mubr.msk.bf16.mxu1 %vm1998_vm1, %v1997_v0 }
  0x3f   : > { %v311_v49 = vor.u32 %v309_v45, %v307_v39  ;;  %v205_v39 = vld [vmem:[%s2052_s23 + $0x108] sm:$0xff]  ;;  %v351_v45 = vor.u32 %v349_v36, %v347_v30 }
  0x40   : > { %v2289_v47 = vpack.c.bf16 %v205_v39, %v204_v38 }
  0x41   : > { %v2211_v55 = vsel %vm232_vm3, %v311_v49, %v315_v50  ;;  %v2296_v48 = vsel %vm232_vm3, %v351_v45, %v355_v46  ;;  %v357_v49 = vshrl.u32 %v2272_v34, 16 }
  0x42   : > { %v361_v50 = vshll.u32 %v2289_v47, 16 }
  0x43   : > { %1716 = vmatmul.mubr.msk.bf16.gmra.mrb[20].mxu0 %vm378_vm2, %v2141_v12 }
  0x44   : > { %1719 = vmatprep.mubr.msk.bf16.mxu0 %vm1998_vm1, %v1997_v0  ;;  %v363_v59 = vrot.slane %v361_v50, 1 }
  0x45   : > { %1790 = vmatmul.mubr.msk.bf16.gmra.mrb[24].mxu1 %vm378_vm2, %v215_v62  ;;  %v323_v62 = vrot.slane %v321_v58, 1  ;;  %v359_v58 = vor.u32 %v357_v49, %v355_v46  ;;  %v1100_v46 = vrot.slane %v2289_v47, 1  ;;  %v207_v49 = vld [vmem:[%s2052_s23 + $0x118] sm:$0xff] }
  0x46   : > { %1793 = vmatprep.mubr.msk.bf16.mxu1 %vm1998_vm1, %v1997_v0 }
  0x47   : > { %v2228_v3 = vsel %vm232_vm3, %v319_v61, %v323_v62  ;;  %v327_v8 = vor.u32 %v325_v4, %v323_v62  ;;  %v2314_v61 = vsel %vm232_vm3, %v359_v58, %v363_v59  ;;  %v365_v62 = vshrl.u32 %v2289_v47, 16 }
  0x48   : > { %v369_v4 = vshll.u32 %v228_v60, 16 }
  0x4a   : > { %v371_v6 = vrot.slane %v369_v4, 1 }
  0x4b   : > { %1720 = vmatmul.mubr.msk.bf16.gmra.mrb[24].mxu0 %vm378_vm2, %v2156_v22 }
  0x4c   : > { %1723 = vmatprep.mubr.msk.bf16.mxu0 %vm1998_vm1, %v1997_v0 }
  0x4d   : > { %1794 = vmatmul.mubr.msk.bf16.gmra.mrb[28].mxu1 %vm378_vm2, %v216_v9  ;;  %v331_v9 = vrot.slane %v329_v5, 1  ;;  %v2321_v5 = vor.u32 %v365_v62, %v363_v59 }
  0x4e   : > { %1797 = vmatprep.mubr.msk.bf16.mxu1 %vm1998_vm1, %v1997_v0 }
  0x4f   : > { %v2245_v13 = vsel %vm232_vm3, %v327_v8, %v331_v9  ;;  %v335_v18 = vor.u32 %v333_v14, %v331_v9  ;;  %v372_v7 = vsel %vm232_vm3, %v2321_v5, %v371_v6  ;;  %v1096_v8 = vrot.slane %v2255_v20, 1 }
  0x50   : > { %v814_v6 = vpack.c.bf16 %v207_v49, %v2301_v56 }
  0x51   : > { %v1099_v39 = vsel %vm1070_vm4, %v1096_v8, %v1098_v25 }
  0x53   : > { %1724 = vmatmul.mubr.msk.bf16.gmra.mrb[28].mxu0 %vm378_vm2, %v2173_v33 }
  0x54   : > { %1727 = vmatprep.mubr.msk.bf16.mxu0 %vm1998_vm1, %v1997_v0 }
  0x55   : > { %1798 = vmatmul.mubr.msk.bf16.gmra.mrb[32].mxu1 %vm378_vm2, %v217_v19  ;;  %v339_v19 = vrot.slane %v337_v15, 1 }
  0x56   : > { %1801 = vmatprep.mubr.msk.bf16.mxu1 %vm1998_vm1, %v1997_v0 }
  0x57   : > { %v2262_v23 = vsel %vm232_vm3, %v335_v18, %v339_v19  ;;  %v343_v28 = vor.u32 %v341_v24, %v339_v19 }
  0x59   : > { %v2279_v35 = vsel %vm232_vm3, %v343_v28, %v347_v30 }
  0x5b   : > { %1728 = vmatmul.mubr.msk.bf16.gmra.mrb[32].mxu0 %vm378_vm2, %v2194_v44 }
  0x5c   : > { %1731 = vmatprep.mubr.msk.bf16.mxu0 %vm1998_vm1, %v1997_v0 }
  0x5d   : > { %1802 = vmatmul.mubr.msk.bf16.gmra.mrb[36].mxu1 %vm378_vm2, %v2164_v29 }
  0x5e   : > { %1805 = vmatprep.mubr.msk.bf16.mxu1 %vm1998_vm1, %v1997_v0 }
  0x63   : > { %1732 = vmatmul.mubr.msk.bf16.gmra.mrb[36].mxu0 %vm378_vm2, %v2211_v55 }
  0x64   : > { %1735 = vmatprep.mubr.msk.bf16.mxu0 %vm1998_vm1, %v1997_v0 }
  0x65   : > { %1806 = vmatmul.mubr.msk.bf16.gmra.mrb[40].mxu1 %vm378_vm2, %v2182_v41 }
  0x66   : > { %1809 = vmatprep.mubr.msk.bf16.mxu1 %vm1998_vm1, %v1997_v0 }
  0x6b   : > { %1736 = vmatmul.mubr.msk.bf16.gmra.mrb[40].mxu0 %vm378_vm2, %v2228_v3 }
  0x6c   : > { %1739 = vmatprep.mubr.msk.bf16.mxu0 %vm1998_vm1, %v1997_v0 }
  0x6d   : > { %1810 = vmatmul.mubr.msk.bf16.gmra.mrb[44].mxu1 %vm378_vm2, %v2204_v51 }
  0x6e   : > { %1813 = vmatprep.mubr.msk.bf16.mxu1 %vm1998_vm1, %v1997_v0 }
  0x73   : > { %1740 = vmatmul.mubr.msk.bf16.gmra.mrb[44].mxu0 %vm378_vm2, %v2245_v13 }
  0x74   : > { %1743 = vmatprep.mubr.msk.bf16.mxu0 %vm1998_vm1, %v1997_v0 }
  0x75   : > { %1814 = vmatmul.mubr.msk.bf16.gmra.mrb[48].mxu1 %vm378_vm2, %v2221_v63 }
  0x76   : > { %1817 = vmatprep.mubr.msk.bf16.mxu1 %vm1998_vm1, %v1997_v0 }
  0x7b   : > { %1744 = vmatmul.mubr.msk.bf16.gmra.mrb[48].mxu0 %vm378_vm2, %v2262_v23 }
  0x7c   : > { %1747 = vmatprep.mubr.msk.bf16.mxu0 %vm1998_vm1, %v1997_v0 }
  0x7d   : > { %1818 = vmatmul.mubr.msk.bf16.gmra.mrb[52].mxu1 %vm378_vm2, %v2238_v10 }
  0x7e   : > { %1821 = vmatprep.mubr.msk.bf16.mxu1 %vm1998_vm1, %v1997_v0 }
  0x83   : > { %1748 = vmatmul.mubr.msk.bf16.gmra.mrb[52].mxu0 %vm378_vm2, %v2279_v35 }
  0x84   : > { %1751 = vmatprep.mubr.msk.bf16.mxu0 %vm1998_vm1, %v1997_v0 }
  0x85   : > { %1822 = vmatmul.mubr.msk.bf16.gmra.mrb[56].mxu1 %vm378_vm2, %v2255_v20 }
  0x86   : > { %1825 = vmatprep.mubr.msk.bf16.mxu1 %vm1998_vm1, %v1997_v0 }
  0x8b   : > { %1752 = vmatmul.mubr.msk.bf16.gmra.mrb[56].mxu0 %vm378_vm2, %v2296_v48 }
  0x8c   : > { %1755 = vmatprep.mubr.msk.bf16.mxu0 %vm1998_vm1, %v1997_v0 }
  0x8d   : > { %1826 = vmatmul.mubr.msk.bf16.gmra.mrb[60].mxu1 %vm378_vm2, %v2272_v34 }
  0x8e   : > { %1829 = vmatprep.mubr.msk.bf16.mxu1 %vm1998_vm1, %v1997_v0 }
  0x93   : > { %1756 = vmatmul.mubr.msk.bf16.gmra.mrb[60].mxu0 %vm378_vm2, %v2314_v61 }
  0x94   : > { %1759 = vmatprep.mubr.msk.bf16.mxu0 %vm1998_vm1, %v1997_v0 }
  0x95   : > { %1830 = vmatmul.mubr.msk.bf16.gmra.mrb[64].mxu1 %vm378_vm2, %v2289_v47 }
  0x96   : > { %1905 = vmatprep.mubr.msk.bf16.mxu1 %vm1998_vm1, %v1997_v0 }
  0x9b   : > { %1760 = vmatmul.mubr.msk.bf16.gmra.mrb[64].mxu0 %vm378_vm2, %v372_v7 }
  0x9c   : > { %1835 = vmatprep.mubr.msk.bf16.mxu0 %vm1998_vm1, %v1997_v0 }
  0x9d   : > { %1906 = vmatmul.mubr.msk.bf16.vlgmr.msra.gmra.mrb[68].mxu1 %vm378_vm2, %v2102_v52  ;;  %v1090_v52 = vrot.slane %v2204_v51, 1 }
  0x9e   : > { %1909 = vmatprep.mubr.msk.bf16.mxu1 %vm1998_vm1, %v1997_v0 }
  0xa3   : > { %1836 = vmatmul.mubr.msk.bf16.vlgmr.msra.gmra.mrb[68].mxu0 %vm378_vm2, %v2078_v32  ;;  %v1088_v32 = vrot.slane %v2182_v41, 1 }
  0xa4   : > { %1839 = vmatprep.mubr.msk.bf16.mxu0 %vm1998_vm1, %v1997_v0 }
  0xa5   : > { %1910 = vmatmul.mubr.msk.bf16.gmra.mrb[72].mxu1 %vm378_vm2, %v2105_v53  ;;  %v1091_v53 = vsel %vm1070_vm4, %v1088_v32, %v1090_v52 }
  0xa6   : > { %1913 = vmatprep.mubr.msk.bf16.mxu1 %vm1998_vm1, %v1997_v0 }
  0xab   : > { %1840 = vmatmul.mubr.msk.bf16.gmra.mrb[72].mxu0 %vm378_vm2, %v2090_v40  ;;  %v1089_v40 = vsel %vm1070_vm4, %v1086_v42, %v1088_v32  ;;  %v1101_v32 = vsel %vm1070_vm4, %v1098_v25, %v1100_v46 }
  0xac   : > { %1843 = vmatprep.mubr.msk.bf16.mxu0 %vm1998_vm1, %v1997_v0 }
  0xad   : > { %1914 = vmatmul.mubr.msk.bf16.gmra.mrb[76].mxu1 %vm378_vm2, %v2111_v57 }
  0xae   : > { %1917 = vmatprep.mubr.msk.bf16.mxu1 %vm1998_vm1, %v1997_v0 }
  0xb3   : > { %1844 = vmatmul.mubr.msk.bf16.gmra.mrb[76].mxu0 %vm378_vm2, %v2108_v54  ;;  %v1092_v54 = vrot.slane %v2221_v63, 1 }
  0xb4   : > { %1847 = vmatprep.mubr.msk.bf16.mxu0 %vm1998_vm1, %v1997_v0 }
  0xb5   : > { %1918 = vmatmul.mubr.msk.bf16.gmra.mrb[80].mxu1 %vm378_vm2, %v2123_v1 }
  0xb6   : > { %1921 = vmatprep.mubr.msk.bf16.mxu1 %vm1998_vm1, %v1997_v0 }
  0xbb   : > { %1848 = vmatmul.mubr.msk.bf16.gmra.mrb[80].mxu0 %vm378_vm2, %v2126_v2 }
  0xbc   : > { %1851 = vmatprep.mubr.msk.bf16.mxu0 %vm1998_vm1, %v1997_v0 }
  0xbd   : > { %1922 = vmatmul.mubr.msk.bf16.gmra.mrb[84].mxu1 %vm378_vm2, %v2138_v11 }
  0xbe   : > { %1925 = vmatprep.mubr.msk.bf16.mxu1 %vm1998_vm1, %v1997_v0 }
  0xc3   : > { %1852 = vmatmul.mubr.msk.bf16.gmra.mrb[84].mxu0 %vm378_vm2, %v2141_v12  ;;  %v1093_v12 = vsel %vm1070_vm4, %v1090_v52, %v1092_v54  ;;  %v1102_v52 = vrot.slane %v814_v6, 1 }
  0xc4   : > { %1855 = vmatprep.mubr.msk.bf16.mxu0 %vm1998_vm1, %v1997_v0 }
  0xc5   : > { %1926 = vmatmul.mubr.msk.bf16.gmra.mrb[88].mxu1 %vm378_vm2, %v2153_v21 }
  0xc6   : > { %1929 = vmatprep.mubr.msk.bf16.mxu1 %vm1998_vm1, %v1997_v0 }
  0xcb   : > { %1856 = vmatmul.mubr.msk.bf16.gmra.mrb[88].mxu0 %vm378_vm2, %v2156_v22  ;;  %v1094_v22 = vrot.slane %v2238_v10, 1 }
  0xcc   : > { %1859 = vmatprep.mubr.msk.bf16.mxu0 %vm1998_vm1, %v1997_v0 }
  0xcd   : > { %1930 = vmatmul.mubr.msk.bf16.gmra.mrb[92].mxu1 %vm378_vm2, %v2170_v31  ;;  %v1097_v19 = vsel %vm1070_vm4, %v1094_v22, %v1096_v8  ;;  %v824_v8 = vshrl.u32 %v814_v6, 16 }
  0xce   : > { %1933 = vmatprep.mubr.msk.bf16.mxu1 %vm1998_vm1, %v1997_v0 }
  0xd3   : > { %1860 = vmatmul.mubr.msk.bf16.gmra.mrb[92].mxu0 %vm378_vm2, %v2173_v33 }
  0xd4   : > { %1863 = vmatprep.mubr.msk.bf16.mxu0 %vm1998_vm1, %v1997_v0 }
  0xd5   : > { %1934 = vmatmul.mubr.msk.bf16.gmra.mrb[96].mxu1 %vm378_vm2, %v2191_v43 }
  0xd6   : > { %1937 = vmatprep.mubr.msk.bf16.mxu1 %vm1998_vm1, %v1997_v0 }
  0xdb   : > { %1864 = vmatmul.mubr.msk.bf16.gmra.mrb[96].mxu0 %vm378_vm2, %v2194_v44 }
  0xdc   : > { %1867 = vmatprep.mubr.msk.bf16.mxu0 %vm1998_vm1, %v1997_v0 }
  0xdd   : > { %1938 = vmatmul.mubr.msk.bf16.gmra.mrb[100].mxu1 %vm378_vm2, %v1089_v40 }
  0xde   : > { %1941 = vmatprep.mubr.msk.bf16.mxu1 %vm1998_vm1, %v1997_v0 }
  0xe3   : > { %1868 = vmatmul.mubr.msk.bf16.gmra.mrb[100].mxu0 %vm378_vm2, %v2211_v55  ;;  %v1095_v55 = vsel %vm1070_vm4, %v1092_v54, %v1094_v22  ;;  %v208_v54 = vld [vmem:[%s2052_s23 + $0x120] sm:$0xff]  ;;  %v1103_v22 = vsel %vm1070_vm4, %v1100_v46, %v1102_v52 }
  0xe4   : > { %1871 = vmatprep.mubr.msk.bf16.mxu0 %vm1998_vm1, %v1997_v0 }
  0xe5   : > { %1942 = vmatmul.mubr.msk.bf16.gmra.mrb[104].mxu1 %vm378_vm2, %v1091_v53 }
  0xe6   : > { %1945 = vmatprep.mubr.msk.bf16.mxu1 %vm1998_vm1, %v1997_v0 }
  0xe7   : > { %v679_v57 = vpop.f32.mrb[0].mxu1 }
  0xe8   : > { %v1767_v1 = vpop.f32.mrb[1].mxu1 }
  0xe9   : > { %v682_v2 = vpop.f32.mrb[2].mxu1 }
  0xea   : > { %v1768_v11 = vpop.f32.mrb[3].mxu1 }
  0xeb   : > { %1872 = vmatmul.mubr.msk.bf16.gmra.mrb[104].mxu0 %vm378_vm2, %v2228_v3 }
  0xec   : > { %1875 = vmatprep.mubr.msk.bf16.mxu0 %vm1998_vm1, %v1997_v0 }
  0xed   : > { %1946 = vmatmul.mubr.msk.bf16.gmra.mrb[108].mxu1 %vm378_vm2, %v1093_v12 }
  0xee   : > { %v468_v21 = vpop.f32.mrb[0].mxu0  ;;  %1949 = vmatprep.mubr.msk.bf16.mxu1 %vm1998_vm1, %v1997_v0 }
  0xef   : > { %v2422_v29 = vadd.f32 %v679_v57, %v468_v21  ;;  %v1697_v31 = vpop.f32.mrb[1].mxu0 }
  0xf0   : > { %v471_v33 = vpop.f32.mrb[2].mxu0  ;;  %v687_v41 = vpop.f32.mrb[4].mxu1  ;;  %v815_v31 = vpack.c.bf16 %v208_v54, %v208_v54 }
  0xf1   : > { %v2424_v42 = vadd.f32 %v682_v2, %v471_v33  ;;  %v1698_v43 = vpop.f32.mrb[3].mxu0  ;;  %v1771_v44 = vpop.f32.mrb[5].mxu1  ;;  %v820_v2 = vshll.u32 %v814_v6, 16 }
  0xf2   : > { %v690_v51 = vpop.f32.mrb[6].mxu1  ;;  %v1104_v44 = vrot.slane %v815_v31, 1 }
  0xf3   : > { %1876 = vmatmul.mubr.msk.bf16.gmra.mrb[108].mxu0 %vm378_vm2, %v2245_v13  ;;  %v1772_v63 = vpop.f32.mrb[7].mxu1 }
  0xf4   : > { %1879 = vmatprep.mubr.msk.bf16.mxu0 %vm1998_vm1, %v1997_v0 }
  0xf5   : > { %1950 = vmatmul.mubr.msk.bf16.gmra.mrb[112].mxu1 %vm378_vm2, %v1095_v55 }
  0xf6   : > { %v476_v3 = vpop.f32.mrb[4].mxu0  ;;  %1953 = vmatprep.mubr.msk.bf16.mxu1 %vm1998_vm1, %v1997_v0 }
  0xf7   : > { %v2435_v9 = vadd.f32 %v687_v41, %v476_v3  ;;  %v1701_v10 = vpop.f32.mrb[5].mxu0  ;;  %v822_v41 = vrot.slane %v820_v2, 1 }
  0xf8   : > { %v479_v14 = vpop.f32.mrb[6].mxu0  ;;  %v695_v15 = vpop.f32.mrb[8].mxu1  ;;  %v828_v10 = vshll.u32 %v815_v31, 16 }
  0xf9   : > { %v2437_v16 = vadd.f32 %v690_v51, %v479_v14  ;;  %v1702_v13 = vpop.f32.mrb[7].mxu0  ;;  %v1775_v17 = vpop.f32.mrb[9].mxu1  ;;  %v823_v3 = vsel %vm232_vm3, %v2321_v5, %v822_v41 }
  0xfa   : > { %v698_v18 = vpop.f32.mrb[10].mxu1 }
  0xfb   : > { %1880 = vmatmul.mubr.msk.bf16.gmra.mrb[112].mxu0 %vm378_vm2, %v2262_v23  ;;  %v1776_v24 = vpop.f32.mrb[11].mxu1 }
  0xfc   : > { %1883 = vmatprep.mubr.msk.bf16.mxu0 %vm1998_vm1, %v1997_v0  ;;  %v826_v24 = vor.u32 %v824_v8, %v822_v41 }
  0xfd   : > { %1954 = vmatmul.mubr.msk.bf16.gmra.mrb[116].mxu1 %vm378_vm2, %v1097_v19 }
  0xfe   : > { %v484_v20 = vpop.f32.mrb[8].mxu0  ;;  %1957 = vmatprep.mubr.msk.bf16.mxu1 %vm1998_vm1, %v1997_v0 }
  0xff   : > { %v2448_v26 = vadd.f32 %v695_v15, %v484_v20  ;;  %v1705_v27 = vpop.f32.mrb[9].mxu0  ;;  %v830_v20 = vrot.slane %v828_v10, 1 }
 0x100   : > { %v487_v28 = vpop.f32.mrb[10].mxu0  ;;  %v703_v30 = vpop.f32.mrb[12].mxu1 }
 0x101   : > { %v2450_v36 = vadd.f32 %v698_v18, %v487_v28  ;;  %v1706_v23 = vpop.f32.mrb[11].mxu0  ;;  %v1779_v37 = vpop.f32.mrb[13].mxu1  ;;  %v1105_v18 = vsel %vm1070_vm4, %v1102_v52, %v1104_v44 }
 0x102   : > { %v706_v38 = vpop.f32.mrb[14].mxu1 }
 0x103   : > { %1884 = vmatmul.mubr.msk.bf16.gmra.mrb[116].mxu0 %vm378_vm2, %v2279_v35  ;;  %v1780_v45 = vpop.f32.mrb[15].mxu1 }
 0x104   : > { %1887 = vmatprep.mubr.msk.bf16.mxu0 %vm1998_vm1, %v1997_v0 }
 0x105   : > { %1958 = vmatmul.mubr.msk.bf16.gmra.mrb[120].mxu1 %vm378_vm2, %v1099_v39 }
 0x106   : > { %v492_v34 = vpop.f32.mrb[12].mxu0  ;;  %1961 = vmatprep.mubr.msk.bf16.mxu1 %vm1998_vm1, %v1997_v0 }
 0x107   : > { %v2462_v50 = vadd.f32 %v703_v30, %v492_v34  ;;  %v1709_v58 = vpop.f32.mrb[13].mxu0  ;;  %v831_v30 = vsel %vm232_vm3, %v826_v24, %v830_v20 }
 0x108   : > { %v495_v59 = vpop.f32.mrb[14].mxu0  ;;  %v711_v60 = vpop.f32.mrb[16].mxu1 }
 0x109   : > { %v2464_v35 = vadd.f32 %v706_v38, %v495_v59  ;;  %v1710_v62 = vpop.f32.mrb[15].mxu0  ;;  %v1783_v4 = vpop.f32.mrb[17].mxu1 }
 0x10a   : > { %v714_v7 = vpop.f32.mrb[18].mxu1 }
 0x10b   : > { %1888 = vmatmul.mubr.msk.bf16.gmra.mrb[120].mxu0 %vm378_vm2, %v2296_v48  ;;  %v1784_v47 = vpop.f32.mrb[19].mxu1 }
 0x10c   : > { %1891 = vmatprep.mubr.msk.bf16.mxu0 %vm1998_vm1, %v1997_v0 }
 0x10d   : > { %1962 = vmatmul.mubr.msk.bf16.gmra.mrb[124].mxu1 %vm378_vm2, %v1101_v32 }
 0x10e   : > { %v500_v40 = vpop.f32.mrb[16].mxu0  ;;  %1965 = vmatprep.mubr.msk.bf16.mxu1 %vm1998_vm1, %v1997_v0 }
 0x10f   : > { %v2475_v53 = vadd.f32 %v711_v60, %v500_v40  ;;  %v1713_v56 = vpop.f32.mrb[17].mxu0 }
 0x110   : > { %v503_v57 = vpop.f32.mrb[18].mxu0  ;;  %v719_v1 = vpop.f32.mrb[20].mxu1 }
 0x111   : > { %v2478_v11 = vadd.f32 %v714_v7, %v503_v57  ;;  %v1714_v48 = vpop.f32.mrb[19].mxu0  ;;  %v1787_v12 = vpop.f32.mrb[21].mxu1 }
 0x112   : > { %v722_v21 = vpop.f32.mrb[22].mxu1 }
 0x113   : > { %1892 = vmatmul.mubr.msk.bf16.gmra.mrb[124].mxu0 %vm378_vm2, %v2314_v61  ;;  %v1788_v33 = vpop.f32.mrb[23].mxu1 }
 0x114   : > { %1895 = vmatprep.mubr.msk.bf16.mxu0 %vm1998_vm1, %v1997_v0 }
 0x115   : > { %1966 = vmatmul.mubr.msk.bf16.gmra.mrb[128].mxu1 %vm378_vm2, %v1103_v22 }
 0x116   : > { %v508_v43 = vpop.f32.mrb[20].mxu0  ;;  %1969 = vmatprep.mubr.msk.bf16.mxu1 %vm1998_vm1, %v1997_v0 }
 0x117   : > { %v2488_v51 = vadd.f32 %v719_v1, %v508_v43  ;;  %v1717_v55 = vpop.f32.mrb[21].mxu0 }
 0x118   : > { %v511_v63 = vpop.f32.mrb[22].mxu0  ;;  %v727_v61 = vpop.f32.mrb[24].mxu1 }
 0x119   : > { %v2492_v14 = vadd.f32 %v722_v21, %v511_v63  ;;  %v1718_v15 = vpop.f32.mrb[23].mxu0  ;;  %v1791_v13 = vpop.f32.mrb[25].mxu1 }
 0x11a   : > { %v730_v17 = vpop.f32.mrb[26].mxu1 }
 0x11b   : > { %1896 = vmatmul.mubr.msk.bf16.gmra.mrb[128].mxu0 %vm378_vm2, %v823_v3  ;;  %v1792_v19 = vpop.f32.mrb[27].mxu1 }
 0x11c   : > { %1899 = vmatprep.mubr.msk.bf16.mxu0 %vm1998_vm1, %v1997_v0 }
 0x11d   : > { %1970 = vmatmul.mubr.msk.bf16.gmra.mrb[132].mxu1 %vm378_vm2, %v1105_v18 }
 0x11e   : > { %v516_v5 = vpop.f32.mrb[24].mxu0 }
 0x11f   : > { %v2499_v25 = vadd.f32 %v727_v61, %v516_v5  ;;  %v1721_v27 = vpop.f32.mrb[25].mxu0 }
 0x120   : > { %v519_v28 = vpop.f32.mrb[26].mxu0  ;;  %v735_v23 = vpop.f32.mrb[28].mxu1 }
 0x121   : > { %v2502_v37 = vadd.f32 %v730_v17, %v519_v28  ;;  %v1722_v38 = vpop.f32.mrb[27].mxu0  ;;  %v1795_v39 = vpop.f32.mrb[29].mxu1 }
 0x122   : > { %v738_v45 = vpop.f32.mrb[30].mxu1 }
 0x123   : > { %1900 = vmatmul.mubr.msk.bf16.gmra.mrb[132].mxu0 %vm378_vm2, %v831_v30  ;;  %v1796_v0 = vpop.f32.mrb[31].mxu1 }
 0x126   : > { %v524_v34 = vpop.f32.mrb[28].mxu0 }
 0x127   : > { %v2505_v46 = vadd.f32 %v735_v23, %v524_v34  ;;  %v1725_v49 = vpop.f32.mrb[29].mxu0 }
 0x128   : > { %v527_v58 = vpop.f32.mrb[30].mxu0  ;;  %v743_v59 = vpop.f32.mrb[32].mxu1 }
 0x129   : > { %v2507_v60 = vadd.f32 %v738_v45, %v527_v58  ;;  %v1726_v62 = vpop.f32.mrb[31].mxu0  ;;  %v1799_v4 = vpop.f32.mrb[33].mxu1 }
 0x12a   : > { %v746_v6 = vpop.f32.mrb[34].mxu1 }
 0x12b   : > { %v1800_v7 = vpop.f32.mrb[35].mxu1 }
 0x12e   : > { %v532_v32 = vpop.f32.mrb[32].mxu0 }
 0x12f   : > { %v2509_v47 = vadd.f32 %v743_v59, %v532_v32  ;;  %v1729_v40 = vpop.f32.mrb[33].mxu0 }
 0x130   : > { %v535_v52 = vpop.f32.mrb[34].mxu0  ;;  %v751_v56 = vpop.f32.mrb[36].mxu1 }
 0x131   : > { %v2511_v54 = vadd.f32 %v746_v6, %v535_v52  ;;  %v1730_v57 = vpop.f32.mrb[35].mxu0  ;;  %v1803_v1 = vpop.f32.mrb[37].mxu1 }
 0x132   : > { %v754_v2 = vpop.f32.mrb[38].mxu1 }
 0x133   : > { %v1804_v48 = vpop.f32.mrb[39].mxu1 }
 0x136   : > { %v540_v12 = vpop.f32.mrb[36].mxu0 }
 0x137   : > { %v2513_v21 = vadd.f32 %v751_v56, %v540_v12  ;;  %v1733_v22 = vpop.f32.mrb[37].mxu0 }
 0x138   : > { %v543_v31 = vpop.f32.mrb[38].mxu0  ;;  %v759_v33 = vpop.f32.mrb[40].mxu1 }
 0x139   : > { %v2515_v41 = vadd.f32 %v754_v2, %v543_v31  ;;  %v1734_v43 = vpop.f32.mrb[39].mxu0  ;;  %v1807_v44 = vpop.f32.mrb[41].mxu1 }
 0x13a   : > { %v762_v55 = vpop.f32.mrb[42].mxu1 }
 0x13b   : > { %v1808_v63 = vpop.f32.mrb[43].mxu1 }
 0x13e   : > { %v548_v3 = vpop.f32.mrb[40].mxu0 }
 0x13f   : > { %v2517_v61 = vadd.f32 %v759_v33, %v548_v3  ;;  %v1737_v8 = vpop.f32.mrb[41].mxu0 }
 0x140   : > { %v551_v10 = vpop.f32.mrb[42].mxu0  ;;  %v767_v15 = vpop.f32.mrb[44].mxu1 }
 0x141   : > { %v2519_v13 = vadd.f32 %v762_v55, %v551_v10  ;;  %v1738_v17 = vpop.f32.mrb[43].mxu0  ;;  %v1811_v18 = vpop.f32.mrb[45].mxu1 }
 0x142   : > { %v770_v19 = vpop.f32.mrb[46].mxu1 }
 0x143   : > { %v1812_v24 = vpop.f32.mrb[47].mxu1 }
 0x146   : > { %v556_v20 = vpop.f32.mrb[44].mxu0 }
 0x147   : > { %v2521_v5 = vadd.f32 %v767_v15, %v556_v20  ;;  %v1741_v27 = vpop.f32.mrb[45].mxu0 }
 0x148   : > { %v559_v28 = vpop.f32.mrb[46].mxu0  ;;  %v775_v30 = vpop.f32.mrb[48].mxu1 }
 0x149   : > { %v2523_v23 = vadd.f32 %v770_v19, %v559_v28  ;;  %v1742_v38 = vpop.f32.mrb[47].mxu0  ;;  %v1815_v39 = vpop.f32.mrb[49].mxu1 }
 0x14a   : > { %v778_v45 = vpop.f32.mrb[50].mxu1 }
 0x14b   : > { %v1816_v0 = vpop.f32.mrb[51].mxu1 }
 0x14e   : > { %v564_v34 = vpop.f32.mrb[48].mxu0 }
 0x14f   : > { %v2525_v49 = vadd.f32 %v775_v30, %v564_v34  ;;  %v1745_v58 = vpop.f32.mrb[49].mxu0 }
 0x150   : > { %v567_v59 = vpop.f32.mrb[50].mxu0  ;;  %v783_v62 = vpop.f32.mrb[52].mxu1 }
 0x151   : > { %v2527_v4 = vadd.f32 %v778_v45, %v567_v59  ;;  %v1746_v6 = vpop.f32.mrb[51].mxu0  ;;  %v1819_v7 = vpop.f32.mrb[53].mxu1 }
 0x152   : > { %v786_v32 = vpop.f32.mrb[54].mxu1 }
 0x153   : > { %v1820_v40 = vpop.f32.mrb[55].mxu1 }
 0x156   : > { %v572_v52 = vpop.f32.mrb[52].mxu0 }
 0x157   : > { %v2529_v56 = vadd.f32 %v783_v62, %v572_v52  ;;  %v1749_v57 = vpop.f32.mrb[53].mxu0 }
 0x158   : > { %v575_v1 = vpop.f32.mrb[54].mxu0  ;;  %v791_v2 = vpop.f32.mrb[56].mxu1 }
 0x159   : > { %v2531_v48 = vadd.f32 %v786_v32, %v575_v1  ;;  %v1750_v12 = vpop.f32.mrb[55].mxu0  ;;  %v1823_v22 = vpop.f32.mrb[57].mxu1 }
 0x15a   : > { %v794_v31 = vpop.f32.mrb[58].mxu1  ;;  %v2550_v22 = vld [vmem:[%s2697_s2] ss:$0 sm:$0xff] }
 0x15b   : > { %v1824_v33 = vpop.f32.mrb[59].mxu1 }
 0x15e   : > { %v580_v43 = vpop.f32.mrb[56].mxu0 }
 0x15f   : > { %v2533_v44 = vadd.f32 %v791_v2, %v580_v43  ;;  %v1753_v55 = vpop.f32.mrb[57].mxu0 }
 0x160   : > { %v583_v63 = vpop.f32.mrb[58].mxu0  ;;  %v799_v3 = vpop.f32.mrb[60].mxu1 }
 0x161   : > { %v2535_v8 = vadd.f32 %v794_v31, %v583_v63  ;;  %v1754_v10 = vpop.f32.mrb[59].mxu0  ;;  %v1827_v15 = vpop.f32.mrb[61].mxu1 }
 0x162   : > { %v802_v17 = vpop.f32.mrb[62].mxu1 }
 0x163   : > { %v1828_v18 = vpop.f32.mrb[63].mxu1 }
 0x166   : > { %v588_v19 = vpop.f32.mrb[60].mxu0 }
 0x167   : > { %v2537_v24 = vadd.f32 %v799_v3, %v588_v19  ;;  %v1757_v20 = vpop.f32.mrb[61].mxu0 }
 0x168   : > { %v591_v27 = vpop.f32.mrb[62].mxu0  ;;  %v807_v28 = vpop.f32.mrb[64].mxu1 }
 0x169   : > { %v2539_v30 = vadd.f32 %v802_v17, %v591_v27  ;;  %v1758_v38 = vpop.f32.mrb[63].mxu0  ;;  %v1831_v39 = vpop.f32.mrb[65].mxu1 }
 0x16a   : > { %v810_v45 = vpop.f32.mrb[66].mxu1 }
 0x16b   : > { %v1832_v0 = vpop.f32.mrb[67].mxu1 }
 0x16e   : > { %v596_v34 = vpop.f32.mrb[64].mxu0 }
 0x16f   : > { %v2541_v58 = vadd.f32 %v807_v28, %v596_v34  ;;  %v1761_v59 = vpop.f32.mrb[65].mxu0 }
 0x170   : > { %v599_v62 = vpop.f32.mrb[66].mxu0  ;;  %v1199_v6 = vpop.f32.mrb[68].mxu1 }
 0x171   : > { %v2543_v7 = vadd.f32 %v810_v45, %v599_v62  ;;  %v1762_v32 = vpop.f32.mrb[67].mxu0  ;;  %v1907_v40 = vpop.f32.mrb[69].mxu1 }
 0x172   : > { %v1202_v52 = vpop.f32.mrb[70].mxu1 }
 0x173   : > { %v1908_v57 = vpop.f32.mrb[71].mxu1 }
 0x176   : > { %v880_v1 = vpop.f32.mrb[68].mxu0 }
 0x177   : > { %v1015_v2 = vadd.f32 %v880_v1, %v2422_v29  ;;  %v1837_v12 = vpop.f32.mrb[69].mxu0 }
 0x178   : > { %v883_v31 = vpop.f32.mrb[70].mxu0  ;;  %v1207_v33 = vpop.f32.mrb[72].mxu1 }
 0x179   : > { %v1334_v43 = vadd.f32 %v1199_v6, %v1015_v2  ;;  %v1016_v55 = vadd.f32 %v883_v31, %v2424_v42  ;;  %v1838_v63 = vpop.f32.mrb[71].mxu0  ;;  %v1911_v3 = vpop.f32.mrb[73].mxu1 }
 0x17a   : > { %v1210_v10 = vpop.f32.mrb[74].mxu1 }
 0x17b   : > { %v1375_v15 = vadd.f32 %v2550_v22, %v1334_v43  ;;  %v1335_v17 = vadd.f32 %v1202_v52, %v1016_v55  ;;  %v1912_v18 = vpop.f32.mrb[75].mxu1 }
 0x17d   : > { %v1409_v29 = vmax.f32 %v1375_v15, 0.0  ;;  %v1376_v19 = vadd.f32 %v2550_v22, %v1335_v17 }
 0x17e   : > { %v888_v20 = vpop.f32.mrb[72].mxu0 }
 0x17f   : > { %1444 = vst.msk [vmem:[%s2557_s4] sm:$0xff] %vm1443_vm5, %v1409_v29  ;;  %v1410_v42 = vmax.f32 %v1376_v19, 0.0  ;;  %v1017_v27 = vadd.f32 %v888_v20, %v2435_v9  ;;  %v1841_v28 = vpop.f32.mrb[73].mxu0 }
 0x180   : > { %v891_v38 = vpop.f32.mrb[74].mxu0  ;;  %v1215_v39 = vpop.f32.mrb[76].mxu1 }
 0x181   : > { %1445 = vst.msk [vmem:[%s2557_s4 + $0x8] sm:$0xff] %vm1443_vm5, %v1410_v42  ;;  %v1336_v45 = vadd.f32 %v1207_v33, %v1017_v27  ;;  %v1018_v0 = vadd.f32 %v891_v38, %v2437_v16  ;;  %v1842_v34 = vpop.f32.mrb[75].mxu0  ;;  %v1915_v59 = vpop.f32.mrb[77].mxu1 }
 0x182   : > { %v1218_v62 = vpop.f32.mrb[78].mxu1 }
 0x183   : > { %v1377_v6 = vadd.f32 %v2550_v22, %v1336_v45  ;;  %v1337_v32 = vadd.f32 %v1210_v10, %v1018_v0  ;;  %v1916_v40 = vpop.f32.mrb[79].mxu1 }
 0x185   : > { %v1411_v52 = vmax.f32 %v1377_v6, 0.0  ;;  %v1378_v9 = vadd.f32 %v2550_v22, %v1337_v32 }
 0x186   : > { %v896_v57 = vpop.f32.mrb[76].mxu0 }
 0x187   : > { %1446 = vst.msk [vmem:[%s2557_s4 + $0x10] sm:$0xff] %vm1443_vm5, %v1411_v52  ;;  %v1412_v1 = vmax.f32 %v1378_v9, 0.0  ;;  %v1019_v2 = vadd.f32 %v896_v57, %v2448_v26  ;;  %v1845_v12 = vpop.f32.mrb[77].mxu0 }
 0x188   : > { %v899_v16 = vpop.f32.mrb[78].mxu0  ;;  %v1223_v31 = vpop.f32.mrb[80].mxu1 }
 0x189   : > { %1447 = vst.msk [vmem:[%s2557_s4 + $0x18] sm:$0xff] %vm1443_vm5, %v1412_v1  ;;  %v1338_v33 = vadd.f32 %v1215_v39, %v1019_v2  ;;  %v1020_v43 = vadd.f32 %v899_v16, %v2450_v36  ;;  %v1846_v55 = vpop.f32.mrb[79].mxu0  ;;  %v1919_v63 = vpop.f32.mrb[81].mxu1 }
 0x18a   : > { %v1226_v3 = vpop.f32.mrb[82].mxu1 }
 0x18b   : > { %v1379_v10 = vadd.f32 %v2550_v22, %v1338_v33  ;;  %v1339_v15 = vadd.f32 %v1218_v62, %v1020_v43  ;;  %v1920_v17 = vpop.f32.mrb[83].mxu1 }
 0x18d   : > { %v1413_v18 = vmax.f32 %v1379_v10, 0.0  ;;  %v1380_v26 = vadd.f32 %v2550_v22, %v1339_v15 }
 0x18e   : > { %v904_v29 = vpop.f32.mrb[80].mxu0 }
 0x18f   : > { %1448 = vst.msk [vmem:[%s2557_s4 + $0x20] sm:$0xff] %vm1443_vm5, %v1413_v18  ;;  %v1414_v19 = vmax.f32 %v1380_v26, 0.0  ;;  %v1021_v20 = vadd.f32 %v904_v29, %v2462_v50  ;;  %v1849_v42 = vpop.f32.mrb[81].mxu0 }
 0x190   : > { %v907_v36 = vpop.f32.mrb[82].mxu0  ;;  %v1231_v27 = vpop.f32.mrb[84].mxu1 }
 0x191   : > { %1449 = vst.msk [vmem:[%s2557_s4 + $0x28] sm:$0xff] %vm1443_vm5, %v1414_v19  ;;  %v1340_v28 = vadd.f32 %v1223_v31, %v1021_v20  ;;  %v1022_v38 = vadd.f32 %v907_v36, %v2464_v35  ;;  %v1850_v39 = vpop.f32.mrb[83].mxu0  ;;  %v1923_v45 = vpop.f32.mrb[85].mxu1 }
 0x192   : > { %v1234_v0 = vpop.f32.mrb[86].mxu1 }
 0x193   : > { %v1381_v34 = vadd.f32 %v2550_v22, %v1340_v28  ;;  %v1341_v59 = vadd.f32 %v1226_v3, %v1022_v38  ;;  %v1924_v62 = vpop.f32.mrb[87].mxu1 }
 0x195   : > { %v1415_v6 = vmax.f32 %v1381_v34, 0.0  ;;  %v1382_v50 = vadd.f32 %v2550_v22, %v1341_v59 }
 0x196   : > { %v912_v32 = vpop.f32.mrb[84].mxu0 }
 0x197   : > { %1450 = vst.msk [vmem:[%s2557_s4 + $0x30] sm:$0xff] %vm1443_vm5, %v1415_v6  ;;  %v1416_v40 = vmax.f32 %v1382_v50, 0.0  ;;  %v1023_v52 = vadd.f32 %v912_v32, %v2475_v53  ;;  %v1853_v9 = vpop.f32.mrb[85].mxu0 }
 0x198   : > { %v915_v35 = vpop.f32.mrb[86].mxu0  ;;  %v1239_v57 = vpop.f32.mrb[88].mxu1 }
 0x199   : > { %1451 = vst.msk [vmem:[%s2557_s4 + $0x38] sm:$0xff] %vm1443_vm5, %v1416_v40  ;;  %v1342_v1 = vadd.f32 %v1231_v27, %v1023_v52  ;;  %v1024_v2 = vadd.f32 %v915_v35, %v2478_v11  ;;  %v1854_v12 = vpop.f32.mrb[87].mxu0  ;;  %v1927_v16 = vpop.f32.mrb[89].mxu1 }
 0x19a   : > { %v1242_v31 = vpop.f32.mrb[90].mxu1 }
 0x19b   : > { %v1383_v33 = vadd.f32 %v2550_v22, %v1342_v1  ;;  %v1343_v43 = vadd.f32 %v1234_v0, %v1024_v2  ;;  %v1928_v55 = vpop.f32.mrb[91].mxu1 }
 0x19d   : > { %v1417_v63 = vmax.f32 %v1383_v33, 0.0  ;;  %v1384_v53 = vadd.f32 %v2550_v22, %v1343_v43 }
 0x19e   : > { %v920_v3 = vpop.f32.mrb[88].mxu0 }
 0x19f   : > { %1452 = vst.msk [vmem:[%s2557_s4 + $0x40] sm:$0xff] %vm1443_vm5, %v1417_v63  ;;  %v1418_v10 = vmax.f32 %v1384_v53, 0.0  ;;  %v1025_v15 = vadd.f32 %v920_v3, %v2488_v51  ;;  %v1857_v17 = vpop.f32.mrb[89].mxu0 }
 0x1a0   : > { %v923_v11 = vpop.f32.mrb[90].mxu0  ;;  %v1247_v18 = vpop.f32.mrb[92].mxu1 }
 0x1a1   : > { %1453 = vst.msk [vmem:[%s2557_s4 + $0x48] sm:$0xff] %vm1443_vm5, %v1418_v10  ;;  %v1344_v26 = vadd.f32 %v1239_v57, %v1025_v15  ;;  %v1026_v29 = vadd.f32 %v923_v11, %v2492_v14  ;;  %v1858_v19 = vpop.f32.mrb[91].mxu0  ;;  %v1931_v20 = vpop.f32.mrb[93].mxu1 }
 0x1a2   : > { %v1250_v42 = vpop.f32.mrb[94].mxu1 }
 0x1a3   : > { %v1385_v36 = vadd.f32 %v2550_v22, %v1344_v26  ;;  %v1345_v27 = vadd.f32 %v1242_v31, %v1026_v29  ;;  %v1932_v28 = vpop.f32.mrb[95].mxu1 }
 0x1a5   : > { %v1419_v38 = vmax.f32 %v1385_v36, 0.0  ;;  %v1386_v51 = vadd.f32 %v2550_v22, %v1345_v27 }
 0x1a6   : > { %v928_v39 = vpop.f32.mrb[92].mxu0 }
 0x1a7   : > { %1454 = vst.msk [vmem:[%s2557_s4 + $0x50] sm:$0xff] %vm1443_vm5, %v1419_v38  ;;  %v1420_v45 = vmax.f32 %v1386_v51, 0.0  ;;  %v1027_v0 = vadd.f32 %v928_v39, %v2499_v25  ;;  %v1861_v34 = vpop.f32.mrb[93].mxu0 }
 0x1a8   : > { %v931_v14 = vpop.f32.mrb[94].mxu0  ;;  %v1255_v59 = vpop.f32.mrb[96].mxu1 }
 0x1a9   : > { %1455 = vst.msk [vmem:[%s2557_s4 + $0x58] sm:$0xff] %vm1443_vm5, %v1420_v45  ;;  %v1346_v62 = vadd.f32 %v1247_v18, %v1027_v0  ;;  %v1028_v6 = vadd.f32 %v931_v14, %v2502_v37  ;;  %v1862_v50 = vpop.f32.mrb[95].mxu0  ;;  %v1935_v32 = vpop.f32.mrb[97].mxu1 }
 0x1aa   : > { %v1258_v40 = vpop.f32.mrb[98].mxu1 }
 0x1ab   : > { %v1387_v52 = vadd.f32 %v2550_v22, %v1346_v62  ;;  %v1347_v9 = vadd.f32 %v1250_v42, %v1028_v6  ;;  %v1936_v35 = vpop.f32.mrb[99].mxu1 }
 0x1ad   : > { %v1421_v57 = vmax.f32 %v1387_v52, 0.0  ;;  %v1388_v25 = vadd.f32 %v2550_v22, %v1347_v9 }
 0x1ae   : > { %v936_v1 = vpop.f32.mrb[96].mxu0 }
 0x1af   : > { %1456 = vst.msk [vmem:[%s2557_s4 + $0x60] sm:$0xff] %vm1443_vm5, %v1421_v57  ;;  %v1422_v2 = vmax.f32 %v1388_v25, 0.0  ;;  %v1029_v12 = vadd.f32 %v936_v1, %v2505_v46  ;;  %v1865_v16 = vpop.f32.mrb[97].mxu0 }
 0x1b0   : > { %v939_v37 = vpop.f32.mrb[98].mxu0  ;;  %v1263_v31 = vpop.f32.mrb[100].mxu1 }
 0x1b1   : > { %1457 = vst.msk [vmem:[%s2557_s4 + $0x68] sm:$0xff] %vm1443_vm5, %v1422_v2  ;;  %v1348_v33 = vadd.f32 %v1255_v59, %v1029_v12  ;;  %v1030_v43 = vadd.f32 %v939_v37, %v2507_v60  ;;  %v1866_v55 = vpop.f32.mrb[99].mxu0  ;;  %v1939_v63 = vpop.f32.mrb[101].mxu1 }
 0x1b2   : > { %v1266_v53 = vpop.f32.mrb[102].mxu1 }
 0x1b3   : > { %v1389_v3 = vadd.f32 %v2550_v22, %v1348_v33  ;;  %v1349_v10 = vadd.f32 %v1258_v40, %v1030_v43  ;;  %v1940_v15 = vpop.f32.mrb[103].mxu1 }
 0x1b5   : > { %v1423_v17 = vmax.f32 %v1389_v3, 0.0  ;;  %v1390_v46 = vadd.f32 %v2550_v22, %v1349_v10 }
 0x1b6   : > { %v944_v11 = vpop.f32.mrb[100].mxu0 }
 0x1b7   : > { %1458 = vst.msk [vmem:[%s2557_s4 + $0x70] sm:$0xff] %vm1443_vm5, %v1423_v17  ;;  %v1424_v18 = vmax.f32 %v1390_v46, 0.0  ;;  %v1031_v26 = vadd.f32 %v944_v11, %v2509_v47  ;;  %v1869_v29 = vpop.f32.mrb[101].mxu0 }
 0x1b8   : > { %v947_v60 = vpop.f32.mrb[102].mxu0  ;;  %v1271_v19 = vpop.f32.mrb[104].mxu1 }
 0x1b9   : > { %1459 = vst.msk [vmem:[%s2557_s4 + $0x78] sm:$0xff] %vm1443_vm5, %v1424_v18  ;;  %v1350_v20 = vadd.f32 %v1263_v31, %v1031_v26  ;;  %v1032_v42 = vadd.f32 %v947_v60, %v2511_v54  ;;  %v1870_v36 = vpop.f32.mrb[103].mxu0  ;;  %v1943_v27 = vpop.f32.mrb[105].mxu1 }
 0x1ba   : > { %v1274_v28 = vpop.f32.mrb[106].mxu1 }
 0x1bb   : > { %v1391_v38 = vadd.f32 %v2550_v22, %v1350_v20  ;;  %v1351_v51 = vadd.f32 %v1266_v53, %v1032_v42  ;;  %v1944_v39 = vpop.f32.mrb[107].mxu1 }
 0x1bd   : > { %v1425_v45 = vmax.f32 %v1391_v38, 0.0  ;;  %v1392_v47 = vadd.f32 %v2550_v22, %v1351_v51 }
 0x1be   : > { %v952_v0 = vpop.f32.mrb[104].mxu0 }
 0x1bf   : > { %1460 = vst.msk [vmem:[%s2557_s4 + $0x80] sm:$0xff] %vm1443_vm5, %v1425_v45  ;;  %v1426_v34 = vmax.f32 %v1392_v47, 0.0  ;;  %v1033_v14 = vadd.f32 %v952_v0, %v2513_v21  ;;  %v1873_v59 = vpop.f32.mrb[105].mxu0 }
 0x1c0   : > { %v955_v54 = vpop.f32.mrb[106].mxu0  ;;  %v1279_v62 = vpop.f32.mrb[108].mxu1 }
 0x1c1   : > { %1461 = vst.msk [vmem:[%s2557_s4 + $0x88] sm:$0xff] %vm1443_vm5, %v1426_v34  ;;  %v1352_v6 = vadd.f32 %v1271_v19, %v1033_v14  ;;  %v1034_v50 = vadd.f32 %v955_v54, %v2515_v41  ;;  %v1874_v32 = vpop.f32.mrb[107].mxu0  ;;  %v1947_v40 = vpop.f32.mrb[109].mxu1 }
 0x1c2   : > { %v1282_v52 = vpop.f32.mrb[110].mxu1 }
 0x1c3   : > { %v1393_v9 = vadd.f32 %v2550_v22, %v1352_v6  ;;  %v1353_v35 = vadd.f32 %v1274_v28, %v1034_v50  ;;  %v1948_v57 = vpop.f32.mrb[111].mxu1 }
 0x1c5   : > { %v1427_v25 = vmax.f32 %v1393_v9, 0.0  ;;  %v1394_v21 = vadd.f32 %v2550_v22, %v1353_v35 }
 0x1c6   : > { %v960_v1 = vpop.f32.mrb[108].mxu0 }
 0x1c7   : > { %1462 = vst.msk [vmem:[%s2557_s4 + $0x90] sm:$0xff] %vm1443_vm5, %v1427_v25  ;;  %v1428_v2 = vmax.f32 %v1394_v21, 0.0  ;;  %v1035_v12 = vadd.f32 %v960_v1, %v2517_v61  ;;  %v1877_v16 = vpop.f32.mrb[109].mxu0 }
 0x1c8   : > { %v963_v41 = vpop.f32.mrb[110].mxu0  ;;  %v1287_v37 = vpop.f32.mrb[112].mxu1 }
 0x1c9   : > { %1463 = vst.msk [vmem:[%s2557_s4 + $0x98] sm:$0xff] %vm1443_vm5, %v1428_v2  ;;  %v1354_v31 = vadd.f32 %v1279_v62, %v1035_v12  ;;  %v1036_v33 = vadd.f32 %v963_v41, %v2519_v13  ;;  %v1878_v43 = vpop.f32.mrb[111].mxu0  ;;  %v1951_v55 = vpop.f32.mrb[113].mxu1 }
 0x1ca   : > { %v1290_v63 = vpop.f32.mrb[114].mxu1 }
 0x1cb   : > { %v1395_v53 = vadd.f32 %v2550_v22, %v1354_v31  ;;  %v1355_v3 = vadd.f32 %v1282_v52, %v1036_v33  ;;  %v1952_v10 = vpop.f32.mrb[115].mxu1 }
 0x1cd   : > { %v1429_v15 = vmax.f32 %v1395_v53, 0.0  ;;  %v1396_v61 = vadd.f32 %v2550_v22, %v1355_v3 }
 0x1ce   : > { %v968_v17 = vpop.f32.mrb[112].mxu0 }
 0x1cf   : > { %1464 = vst.msk [vmem:[%s2557_s4 + $0xa0] sm:$0xff] %vm1443_vm5, %v1429_v15  ;;  %v1430_v46 = vmax.f32 %v1396_v61, 0.0  ;;  %v1037_v11 = vadd.f32 %v968_v17, %v2521_v5  ;;  %v1881_v18 = vpop.f32.mrb[113].mxu0 }
 0x1d0   : > { %v971_v13 = vpop.f32.mrb[114].mxu0  ;;  %v1295_v26 = vpop.f32.mrb[116].mxu1 }
 0x1d1   : > { %1465 = vst.msk [vmem:[%s2557_s4 + $0xa8] sm:$0xff] %vm1443_vm5, %v1430_v46  ;;  %v1356_v29 = vadd.f32 %v1287_v37, %v1037_v11  ;;  %v1038_v60 = vadd.f32 %v971_v13, %v2523_v23  ;;  %v1882_v19 = vpop.f32.mrb[115].mxu0  ;;  %v1955_v20 = vpop.f32.mrb[117].mxu1 }
 0x1d2   : > { %v1298_v42 = vpop.f32.mrb[118].mxu1 }
 0x1d3   : > { %v1397_v36 = vadd.f32 %v2550_v22, %v1356_v29  ;;  %v1357_v27 = vadd.f32 %v1290_v63, %v1038_v60  ;;  %v1956_v28 = vpop.f32.mrb[119].mxu1 }
 0x1d5   : > { %v1431_v38 = vmax.f32 %v1397_v36, 0.0  ;;  %v1398_v5 = vadd.f32 %v2550_v22, %v1357_v27 }
 0x1d6   : > { %v976_v51 = vpop.f32.mrb[116].mxu0 }
 0x1d7   : > { %1466 = vst.msk [vmem:[%s2557_s4 + $0xb0] sm:$0xff] %vm1443_vm5, %v1431_v38  ;;  %v1432_v39 = vmax.f32 %v1398_v5, 0.0  ;;  %v1039_v45 = vadd.f32 %v976_v51, %v2525_v49  ;;  %v1885_v47 = vpop.f32.mrb[117].mxu0 }
 0x1d8   : > { %v979_v23 = vpop.f32.mrb[118].mxu0  ;;  %v1303_v0 = vpop.f32.mrb[120].mxu1 }
 0x1d9   : > { %1467 = vst.msk [vmem:[%s2557_s4 + $0xb8] sm:$0xff] %vm1443_vm5, %v1432_v39  ;;  %v1358_v34 = vadd.f32 %v1295_v26, %v1039_v45  ;;  %v1040_v14 = vadd.f32 %v979_v23, %v2527_v4  ;;  %v1886_v59 = vpop.f32.mrb[119].mxu0  ;;  %v1959_v54 = vpop.f32.mrb[121].mxu1 }
 0x1da   : > { %v1306_v62 = vpop.f32.mrb[122].mxu1 }
 0x1db   : > { %v1399_v6 = vadd.f32 %v2550_v22, %v1358_v34  ;;  %v1359_v50 = vadd.f32 %v1298_v42, %v1040_v14  ;;  %v1960_v32 = vpop.f32.mrb[123].mxu1 }
 0x1dd   : > { %v1433_v40 = vmax.f32 %v1399_v6, 0.0  ;;  %v1400_v49 = vadd.f32 %v2550_v22, %v1359_v50 }
 0x1de   : > { %v984_v52 = vpop.f32.mrb[120].mxu0 }
 0x1df   : > { %1468 = vst.msk [vmem:[%s2557_s4 + $0xc0] sm:$0xff] %vm1443_vm5, %v1433_v40  ;;  %v1434_v9 = vmax.f32 %v1400_v49, 0.0  ;;  %v1041_v35 = vadd.f32 %v984_v52, %v2529_v56  ;;  %v1889_v57 = vpop.f32.mrb[121].mxu0 }
 0x1e0   : > { %v987_v4 = vpop.f32.mrb[122].mxu0  ;;  %v1311_v25 = vpop.f32.mrb[124].mxu1 }
 0x1e1   : > { %1469 = vst.msk [vmem:[%s2557_s4 + $0xc8] sm:$0xff] %vm1443_vm5, %v1434_v9  ;;  %v1360_v21 = vadd.f32 %v1303_v0, %v1041_v35  ;;  %v1042_v1 = vadd.f32 %v987_v4, %v2531_v48  ;;  %v1890_v2 = vpop.f32.mrb[123].mxu0  ;;  %v1963_v12 = vpop.f32.mrb[125].mxu1 }
 0x1e2   : > { %v1314_v16 = vpop.f32.mrb[126].mxu1 }
 0x1e3   : > { %v1401_v41 = vadd.f32 %v2550_v22, %v1360_v21  ;;  %v1361_v37 = vadd.f32 %v1306_v62, %v1042_v1  ;;  %v1964_v31 = vpop.f32.mrb[127].mxu1 }
 0x1e5   : > { %v1435_v33 = vmax.f32 %v1401_v41, 0.0  ;;  %v1402_v56 = vadd.f32 %v2550_v22, %v1361_v37 }
 0x1e6   : > { %v992_v43 = vpop.f32.mrb[124].mxu0 }
 0x1e7   : > { %1470 = vst.msk [vmem:[%s2557_s4 + $0xd0] sm:$0xff] %vm1443_vm5, %v1435_v33  ;;  %v1436_v55 = vmax.f32 %v1402_v56, 0.0  ;;  %v1043_v63 = vadd.f32 %v992_v43, %v2533_v44  ;;  %v1893_v53 = vpop.f32.mrb[125].mxu0 }
 0x1e8   : > { %v995_v48 = vpop.f32.mrb[126].mxu0  ;;  %v1319_v3 = vpop.f32.mrb[128].mxu1 }
 0x1e9   : > { %1471 = vst.msk [vmem:[%s2557_s4 + $0xd8] sm:$0xff] %vm1443_vm5, %v1436_v55  ;;  %v1362_v10 = vadd.f32 %v1311_v25, %v1043_v63  ;;  %v1044_v15 = vadd.f32 %v995_v48, %v2535_v8  ;;  %v1894_v61 = vpop.f32.mrb[127].mxu0  ;;  %v1967_v17 = vpop.f32.mrb[129].mxu1 }
 0x1ea   : > { %v1322_v46 = vpop.f32.mrb[130].mxu1 }
 0x1eb   : > { %v1403_v11 = vadd.f32 %v2550_v22, %v1362_v10  ;;  %v1363_v18 = vadd.f32 %v1314_v16, %v1044_v15  ;;  %v1968_v13 = vpop.f32.mrb[131].mxu1 }
 0x1ed   : > { %v1437_v26 = vmax.f32 %v1403_v11, 0.0  ;;  %v1404_v44 = vadd.f32 %v2550_v22, %v1363_v18 }
 0x1ee   : > { %v1000_v29 = vpop.f32.mrb[128].mxu0 }
 0x1ef   : > { %1472 = vst.msk [vmem:[%s2557_s4 + $0xe0] sm:$0xff] %vm1443_vm5, %v1437_v26  ;;  %v1438_v60 = vmax.f32 %v1404_v44, 0.0  ;;  %v1045_v19 = vadd.f32 %v1000_v29, %v2537_v24  ;;  %v1897_v20 = vpop.f32.mrb[129].mxu0 }
 0x1f0   : > { %v1003_v8 = vpop.f32.mrb[130].mxu0  ;;  %v1327_v42 = vpop.f32.mrb[132].mxu1 }
 0x1f1   : > { %1473 = vst.msk [vmem:[%s2557_s4 + $0xe8] sm:$0xff] %vm1443_vm5, %v1438_v60  ;;  %v1364_v36 = vadd.f32 %v1319_v3, %v1045_v19  ;;  %v1046_v27 = vadd.f32 %v1003_v8, %v2539_v30  ;;  %v1898_v28 = vpop.f32.mrb[131].mxu0  ;;  %v1971_v38 = vpop.f32.mrb[133].mxu1 }
 0x1f2   : > { %v1330_v5 = vpop.f32.mrb[134].mxu1 }
 0x1f3   : > { %v1405_v51 = vadd.f32 %v2550_v22, %v1364_v36  ;;  %v1365_v39 = vadd.f32 %v1322_v46, %v1046_v27  ;;  %v1972_v45 = vpop.f32.mrb[135].mxu1 }
 0x1f5   : > { %v1439_v47 = vmax.f32 %v1405_v51, 0.0  ;;  %v1406_v24 = vadd.f32 %v2550_v22, %v1365_v39 }
 0x1f6   : > { %v1008_v23 = vpop.f32.mrb[132].mxu0 }
 0x1f7   : > { %1474 = vst.msk [vmem:[%s2557_s4 + $0xf0] sm:$0xff] %vm1443_vm5, %v1439_v47  ;;  %v1440_v0 = vmax.f32 %v1406_v24, 0.0  ;;  %v1047_v34 = vadd.f32 %v1008_v23, %v2541_v58  ;;  %v1901_v14 = vpop.f32.mrb[133].mxu0 }
 0x1f8   : > { %v1011_v30 = vpop.f32.mrb[134].mxu0 }
 0x1f9   : > { %1475 = vst.msk [vmem:[%s2557_s4 + $0xf8] sm:$0xff] %vm1443_vm5, %v1440_v0  ;;  %v1366_v59 = vadd.f32 %v1327_v42, %v1047_v34  ;;  %v1048_v54 = vadd.f32 %v1011_v30, %v2543_v7  ;;  %v1902_v62 = vpop.f32.mrb[135].mxu0 }
 0x1fb   : > { %v1407_v6 = vadd.f32 %v2550_v22, %v1366_v59  ;;  %v1367_v50 = vadd.f32 %v1330_v5, %v1048_v54 }
 0x1fd   : > { %v1441_v32 = vmax.f32 %v1407_v6, 0.0  ;;  %v1408_v40 = vadd.f32 %v2550_v22, %v1367_v50 }
 0x1ff   : > { %1476 = vst.msk [vmem:[%s2557_s4 + $0x100] sm:$0xff] %vm1443_vm5, %v1441_v32  ;;  %v1442_v49 = vmax.f32 %v1408_v40, 0.0 }
 0x201   : > { %1477 = vst.msk [vmem:[%s2557_s4 + $0x108] sm:$0xff] %vm1443_vm5, %v1442_v49 }
 0x202 PF: > { %s13_s12 = sadd.s32 1, %s1995_s12  }
 0x203   : > { %p10_p4 = scmp.ge.s32.totalorder %s13_s12, 6  }
 0x205   :  { %12 = sbr.rel (!%p10_p4) target bundleno = 1 (0x1), region = 65 }

// kernel: encoder_vae_conv_forward.5
= control target key start
LH: loop header
LB: loop body
LE: loop exit
PB: predicated region body
PF: predicated region fallthrough
CT: control target
= control target key end

     0   :  { %s1318_s12 = smov 0   ;;  %s1647_s0 = inlined_call_operand.vmem [shape: f32[4,88,128], index: 0, kind: input, shape index: {}]   ;;  %s1648_s1 = inlined_call_operand.vmem [shape: bf16[4,128,32], index: 1, kind: input, shape index: {}]   ;;  %s1649_s2 = inlined_call_operand.vmem [shape: f32[1,32], index: 2, kind: input, shape index: {}]   ;;  %s1650_s3 = inlined_call_operand.vmem [shape: f32[4,72,32], index: 3, kind: output, shape index: {}]  }
   0x1 LB: > { %s958_s13 = sadd.s32 4294967295, %s1294_s12   ;;  %p962_p0 = scmp.ge.s32.totalorder %s1294_s12, 1  ;;  %s1294_s12 = sphi %s1318_s12, %s13_s12  }
   0x2   : > { %p137_p1 = scmp.lt.s32.totalorder %s1294_s12, 5 }
   0x4   : > { %p138_p2 = pnand %p962_p0, %p137_p1 }
   0x5   : > { %v1256_v0 = vld [vmem:[%s1648_s1 + $0x40] sm:$0xff] (!%p138_p2)   ;;  %v1296_v1 = vmov (!%p138_p2), 0.0   ;;  %v1258_v3 = vld [vmem:[%s1648_s1 + $0x48] sm:$0xff] (!%p138_p2)   ;;  %vm1297_vm0 = vmmov (!%p138_p2), 0   ;;  %p161_p3 = scmp.lt.s32.totalorder (!%p138_p2), %s958_s13, 3  ;;  %v1260_v5 = vld [vmem:[%s1648_s1 + $0x50] sm:$0xff] (!%p138_p2)  }
   0x6   : > { %141 = sbr.rel (%p138_p2) target bundleno = 331 (0x14b), region = 32  ;;  %1100 = vmatprep.subr.bf16.mxu0 (!%p138_p2), %v1296_v1  ;;  %1136 = vmatprep.subr.bf16.mxu1 (!%p138_p2), %v1296_v1  ;;  %v1257_v2 = vld [vmem:[%s1648_s1] sm:$0xff] (!%p138_p2)   ;;  %v1259_v4 = vld [vmem:[%s1648_s1 + $0x8] sm:$0xff] (!%p138_p2)   ;;  %v1261_v6 = vld [vmem:[%s1648_s1 + $0x10] sm:$0xff] (!%p138_p2)   ;;  %vm222_vm1 = vsmask.f32 (!%p138_p2), 7424 }
   0x7   : > { %1101 = vmatpush3.bf16.msra.mxu0 (!%p138_p2), %v1256_v0  ;;  %1116 = vmatprep.mubr.msk.bf16.mxu0 (!%p138_p2), %vm1297_vm0, %v1296_v1  ;;  %v1262_v7 = vld [vmem:[%s1648_s1 + $0x58] sm:$0xff] (!%p138_p2)   ;;  %v1264_v9 = vld [vmem:[%s1648_s1 + $0x60] sm:$0xff] (!%p138_p2)   ;;  %v1266_v16 = vld [vmem:[%s1648_s1 + $0x68] sm:$0xff] (!%p138_p2)   ;;  %vm724_vm2 = vcmask (!%p138_p2), 1046528   ;;  %vm893_vm3 = vcmask (!%p138_p2), 261120  }
   0x8   : > { %1137 = vmatpush3.bf16.msra.mxu1 (!%p138_p2), %v1257_v2  ;;  %1102 = vmatprep.subr.bf16.mxu0 (!%p138_p2), %v1296_v1  ;;  %v1263_v8 = vld [vmem:[%s1648_s1 + $0x18] sm:$0xff] (!%p138_p2)   ;;  %v1265_v10 = vld [vmem:[%s1648_s1 + $0x20] sm:$0xff] (!%p138_p2)   ;;  %v1267_v18 = vld [vmem:[%s1648_s1 + $0x28] sm:$0xff] (!%p138_p2)  }
   0x9   : > { %1138 = vmatprep.subr.bf16.mxu1 (!%p138_p2), %v1296_v1  ;;  %1152 = vmatprep.mubr.msk.bf16.mxu1 (!%p138_p2), %vm1297_vm0, %v1296_v1  ;;  %v1268_v20 = vld [vmem:[%s1648_s1 + $0x70] sm:$0xff] (!%p138_p2)   ;;  %v1270_v27 = vld [vmem:[%s1648_s1 + $0x78] sm:$0xff] (!%p138_p2)   ;;  %v1272_v32 = vld [vmem:[%s1648_s1 + $0x80] sm:$0xff] (!%p138_p2)  }
   0xa   : > { %v1269_v21 = vld [vmem:[%s1648_s1 + $0x30] sm:$0xff] (!%p138_p2)   ;;  %v1271_v28 = vld [vmem:[%s1648_s1 + $0x38] sm:$0xff] (!%p138_p2)   ;;  %v1273_v33 = vld [vmem:[%s1648_s1 + $0xc0] sm:$0xff] (!%p138_p2)  }
   0xb   : > { %1103 = vmatpush3.bf16.msra.mxu0 (!%p138_p2), %v1258_v3  ;;  %v1274_v43 = vld [vmem:[%s1648_s1 + $0x88] sm:$0xff] (!%p138_p2)   ;;  %v1276_v52 = vld [vmem:[%s1648_s1 + $0x90] sm:$0xff] (!%p138_p2)   ;;  %v1278_v62 = vld [vmem:[%s1648_s1 + $0x98] sm:$0xff] (!%p138_p2)  }
   0xc   : > { %1139 = vmatpush3.bf16.msra.mxu1 (!%p138_p2), %v1259_v4  ;;  %1104 = vmatprep.subr.bf16.mxu0 (!%p138_p2), %v1296_v1  ;;  %v1275_v48 = vld [vmem:[%s1648_s1 + $0xc8] sm:$0xff] (!%p138_p2)   ;;  %v1277_v56 = vld [vmem:[%s1648_s1 + $0xd0] sm:$0xff] (!%p138_p2)   ;;  %v1279_v0 = vld [vmem:[%s1648_s1 + $0xd8] sm:$0xff] (!%p138_p2)  }
   0xd   : > { %s1652_s13 = smov (!%p161_p3, %s958_s13), 3  ;;  %1140 = vmatprep.subr.bf16.mxu1 %v1296_v1  ;;  %v1280_v4 = vld [vmem:[%s1648_s1 + $0xa0] sm:$0xff]  }
   0xe   : > { %s1244_s26 = smul.u32 88, %s1652_s13 }
   0xf   : > { %1105 = vmatpush3.bf16.msra.mxu0 %v1260_v5  ;;  %s1245_s5 = smul.u32 72, %s1652_s13 }
  0x10   : > { %1141 = vmatpush3.bf16.msra.mxu1 %v1261_v6  ;;  %1106 = vmatprep.subr.bf16.mxu0 %v1296_v1  ;;  %s1368_s6 = scalar_lea.vmem %s1647_s0, %s1244_s26 }
  0x11   : > { %1142 = vmatprep.subr.bf16.mxu1 %v1296_v1  ;;  %v172_v11 = vld [vmem:[%s1368_s6] sm:$0xff]  ;;  %v1380_v12 = vld [vmem:[%s1368_s6 + $0x8] sm:$0xff]  ;;  %v1383_v13 = vld [vmem:[%s1368_s6 + $0x10] sm:$0xff]  ;;  %s1611_s10 = scalar_lea.vmem %s1650_s3, %s1245_s5 }
  0x12   : > { %v1386_v14 = vld [vmem:[%s1368_s6 + $0x18] sm:$0xff]  ;;  %v183_v15 = vpack.c.bf16 %v1380_v12, %v172_v11  ;;  %v1409_v25 = vld [vmem:[%s1368_s6 + $0x20] sm:$0xff]  ;;  %v1413_v26 = vld [vmem:[%s1368_s6 + $0x28] sm:$0xff] }
  0x13   : > { %1107 = vmatpush3.bf16.msra.mxu0 %v1262_v7  ;;  %v1394_v17 = vpack.c.bf16 %v1386_v14, %v1383_v13  ;;  %v1424_v31 = vpack.c.bf16 %v1413_v26, %v1409_v25  ;;  %v1436_v35 = vld [vmem:[%s1368_s6 + $0x30] sm:$0xff]  ;;  %v179_v38 = vld [vmem:[%s1368_s6 + $0x38] sm:$0xff]  ;;  %v1445_v40 = vld [vmem:[%s1368_s6 + $0x40] sm:$0xff] }
  0x14   : > { %1143 = vmatpush3.bf16.msra.mxu1 %v1263_v8  ;;  %1108 = vmatprep.subr.bf16.mxu0 %v1296_v1  ;;  %v226_v19 = vshll.u32 %v183_v15, 16  ;;  %v224_v22 = vshrl.u32 %v183_v15, 16  ;;  %v182_v39 = vld [vmem:[%s1368_s6 + $0x50] sm:$0xff]  ;;  %v181_v41 = vld [vmem:[%s1368_s6 + $0x48] sm:$0xff]  ;;  %v1449_v42 = vpack.c.bf16 %v1445_v40, %v179_v38  ;;  %v1455_v46 = vpack.c.bf16 %v179_v38, %v1436_v35  ;;  %v1281_v7 = vld [vmem:[%s1648_s1 + $0xe0] sm:$0xff]  }
  0x15   : > { %1144 = vmatprep.subr.bf16.mxu1 %v1296_v1  ;;  %v231_v23 = vshll.u32 %v1394_v17, 16  ;;  %v235_v34 = vshrl.u32 %v1394_v17, 16  ;;  %v239_v37 = vshll.u32 %v1424_v31, 16  ;;  %v1457_v47 = vpack.c.bf16 %v182_v39, %v181_v41  ;;  %v1283_v11 = vld [vmem:[%s1648_s1 + $0xe8] sm:$0xff]  }
  0x16   : > { %v228_v24 = vrot.slane %v226_v19, 1  ;;  %v243_v49 = vshrl.u32 %v1424_v31, 16  ;;  %v553_v50 = vshll.u32 %v1449_v42, 16  ;;  %v247_v53 = vshll.u32 %v1455_v46, 16 }
  0x17   : > { %1109 = vmatpush3.bf16.msra.mxu0 %v1264_v9  ;;  %v233_v30 = vrot.slane %v231_v23, 1  ;;  %v241_v45 = vrot.slane %v239_v37, 1  ;;  %v557_v54 = vshrl.u32 %v1449_v42, 16  ;;  %v561_v55 = vshll.u32 %v1457_v47, 16 }
  0x18   : > { %1145 = vmatpush3.bf16.msra.mxu1 %v1265_v10  ;;  %1110 = vmatprep.subr.bf16.mxu0 %v1296_v1  ;;  %v229_v29 = vor.u32 %v228_v24, %v224_v22  ;;  %v1481_v57 = vrot.slane %v553_v50, 1  ;;  %v249_v61 = vrot.slane %v247_v53, 1  ;;  %v204_v63 = vpack.c.bf16 %v181_v41, %v1445_v40  ;;  %v1282_v10 = vld [vmem:[%s1648_s1 + $0xa8] sm:$0xff]  }
  0x19   : > { %1146 = vmatprep.subr.bf16.mxu1 %v1296_v1  ;;  %v237_v44 = vor.u32 %v235_v34, %v233_v30  ;;  %v1484_v58 = vrot.slane %v561_v55, 1  ;;  %v245_v60 = vor.u32 %v243_v49, %v241_v45  ;;  %v251_v5 = vshrl.u32 %v1455_v46, 16 }
  0x1a   : > { %v234_v36 = vsel %vm222_vm1, %v229_v29, %v233_v30  ;;  %v559_v59 = vor.u32 %v557_v54, %v1481_v57  ;;  %v255_v6 = vshll.u32 %v204_v63, 16  ;;  %v259_v19 = vshrl.u32 %v204_v63, 16 }
  0x1b   : > { %1111 = vmatpush3.bf16.msra.mxu0 %v1266_v16  ;;  %v242_v51 = vsel %vm222_vm1, %v237_v44, %v241_v45  ;;  %v250_v3 = vsel %vm222_vm1, %v245_v60, %v249_v61  ;;  %v253_v8 = vor.u32 %v251_v5, %v249_v61  ;;  %v187_v22 = vpack.c.bf16 %v1445_v40, %v1445_v40 }
  0x1c   : > { %1147 = vmatpush3.bf16.msra.mxu1 %v1267_v18  ;;  %1112 = vmatprep.subr.bf16.mxu0 %v1296_v1  ;;  %v1499_v2 = vsel %vm222_vm1, %v559_v59, %v1484_v58  ;;  %v257_v9 = vrot.slane %v255_v6, 1  ;;  %v1285_v18 = vld [vmem:[%s1648_s1 + $0xf0] sm:$0xff]   ;;  %v509_v29 = vpack.c.bf16 %v1436_v35, %v1413_v26 }
  0x1d   : > { %1148 = vmatprep.subr.bf16.mxu1 %v1296_v1 }
  0x1e   : > { %v258_v16 = vsel %vm222_vm1, %v253_v8, %v257_v9  ;;  %v545_v34 = vshll.u32 %v509_v29, 16  ;;  %v728_v26 = vrot.slane %v509_v29, 1  ;;  %v549_v39 = vshrl.u32 %v509_v29, 16 }
  0x1f   : > { %1113 = vmatpush3.bf16.msra.mxu0 %v1268_v20  ;;  %v1286_v20 = vld [vmem:[%s1648_s1 + $0xb8] sm:$0xff]  }
  0x20   : > { %1149 = vmatpush3.bf16.msra.mxu1 %v1269_v21  ;;  %1114 = vmatprep.subr.bf16.mxu0 %v1296_v1  ;;  %v261_v21 = vor.u32 %v259_v19, %v257_v9  ;;  %v547_v38 = vrot.slane %v545_v34, 1 }
  0x21   : > { %1150 = vmatprep.subr.bf16.mxu1 %v1296_v1 }
  0x22   : > { %v551_v41 = vor.u32 %v549_v39, %v547_v38 }
  0x23   : > { %1115 = vmatpush3.bf16.msra.mxu0 %v1270_v27 }
  0x24   : > { %1151 = vmatpush3.bf16.msra.mxu1 %v1271_v28  ;;  %1172 = vmatprep.subr.bf16.mxu0 %v1296_v1  ;;  %v556_v44 = vsel %vm222_vm1, %v551_v41, %v1481_v57 }
  0x25   : > { %1208 = vmatprep.subr.bf16.mxu1 %v1296_v1 }
  0x26   : > { %1117 = vmatmul.mubr.bf16.vlgmr.msra.gmra.mrb[0].mxu0 %v234_v36 }
  0x27   : > { %1153 = vmatmul.mubr.bf16.vlgmr.msra.gmra.mrb[0].mxu1 %v183_v15  ;;  %1173 = vmatpush3.bf16.msra.mxu0 %v1272_v32  ;;  %v507_v15 = vpack.c.bf16 %v1383_v13, %v1380_v12  ;;  %v508_v12 = vpack.c.bf16 %v1409_v25, %v1386_v14  ;;  %v1287_v14 = vld [vmem:[%s1648_s1 + $0xf8] sm:$0xff]  }
  0x28   : > { %1209 = vmatpush3.bf16.msra.mxu1 %v1273_v33  ;;  %1174 = vmatprep.subr.bf16.mxu0 %v1296_v1 }
  0x29   : > { %1120 = vmatprep.mubr.msk.bf16.mxu0 %vm1297_vm0, %v1296_v1  ;;  %1156 = vmatprep.mubr.msk.bf16.mxu1 %vm1297_vm0, %v1296_v1  ;;  %v532_v13 = vshll.u32 %v507_v15, 16  ;;  %v530_v23 = vshrl.u32 %v507_v15, 16  ;;  %v537_v25 = vshll.u32 %v508_v12, 16  ;;  %v725_v30 = vrot.slane %v507_v15, 1 }
  0x2a   : > { %1210 = vmatprep.subr.bf16.mxu1 %v1296_v1  ;;  %v541_v33 = vshrl.u32 %v508_v12, 16 }
  0x2b   : > { %1175 = vmatpush3.bf16.msra.mxu0 %v1274_v43  ;;  %v534_v24 = vrot.slane %v532_v13, 1  ;;  %v539_v28 = vrot.slane %v537_v25, 1  ;;  %v730_v43 = vrot.slane %v1449_v42, 1  ;;  %v565_v42 = vshrl.u32 %v1457_v47, 16 }
  0x2c   : > { %1211 = vmatpush3.bf16.msra.mxu1 %v1275_v48  ;;  %1176 = vmatprep.subr.bf16.mxu0 %v1296_v1 }
  0x2d   : > { %1212 = vmatprep.subr.bf16.mxu1 %v1296_v1  ;;  %v535_v27 = vor.u32 %v534_v24, %v530_v23  ;;  %v543_v37 = vor.u32 %v541_v33, %v539_v28  ;;  %v731_v45 = vsel %vm724_vm2, %v728_v26, %v730_v43  ;;  %v567_v49 = vor.u32 %v565_v42, %v1484_v58 }
  0x2e   : > { %1121 = vmatmul.mubr.bf16.gmra.mrb[4].mxu0 %v242_v51 }
  0x2f   : > { %1157 = vmatmul.mubr.bf16.gmra.mrb[4].mxu1 %v1394_v17  ;;  %1177 = vmatpush3.bf16.msra.mxu0 %v1276_v52  ;;  %v1284_v17 = vld [vmem:[%s1648_s1 + $0xb0] sm:$0xff]   ;;  %v540_v32 = vsel %vm222_vm1, %v535_v27, %v539_v28  ;;  %v548_v35 = vsel %vm222_vm1, %v543_v37, %v547_v38 }
  0x30   : > { %1213 = vmatpush3.bf16.msra.mxu1 %v1277_v56  ;;  %1124 = vmatprep.mubr.msk.bf16.mxu0 %vm1297_vm0, %v1296_v1 }
  0x31   : > { %1160 = vmatprep.mubr.msk.bf16.mxu1 %vm1297_vm0, %v1296_v1  ;;  %1178 = vmatprep.subr.bf16.mxu0 %v1296_v1 }
  0x32   : > { %1214 = vmatprep.subr.bf16.mxu1 %v1296_v1 }
  0x33   : > { %1179 = vmatpush3.bf16.msra.mxu0 %v1278_v62 }
  0x34   : > { %1215 = vmatpush3.bf16.msra.mxu1 %v1279_v0  ;;  %1180 = vmatprep.subr.bf16.mxu0 %v1296_v1 }
  0x35   : > { %1216 = vmatprep.subr.bf16.mxu1 %v1296_v1 }
  0x36   : > { %1125 = vmatmul.mubr.bf16.gmra.mrb[8].mxu0 %v250_v3 }
  0x37   : > { %1161 = vmatmul.mubr.bf16.gmra.mrb[8].mxu1 %v1424_v31  ;;  %1181 = vmatpush3.bf16.msra.mxu0 %v1280_v4  ;;  %v726_v31 = vrot.slane %v508_v12, 1 }
  0x38   : > { %1128 = vmatprep.mubr.msk.bf16.mxu0 %vm1297_vm0, %v1296_v1  ;;  %1164 = vmatprep.mubr.msk.bf16.mxu1 %vm1297_vm0, %v1296_v1 }
  0x39   : > { %1217 = vmatpush3.bf16.msra.mxu1 %v1281_v7  ;;  %1182 = vmatprep.subr.bf16.mxu0 %v1296_v1  ;;  %v727_v36 = vsel %vm724_vm2, %v725_v30, %v726_v31  ;;  %v729_v40 = vsel %vm724_vm2, %v726_v31, %v728_v26 }
  0x3a   : > { %1218 = vmatprep.subr.bf16.mxu1 %v1296_v1 }
  0x3b   : > { %1183 = vmatpush3.bf16.msra.mxu0 %v1282_v10 }
  0x3c   : > { %1184 = vmatprep.subr.bf16.mxu0 %v1296_v1 }
  0x3d   : > { %1219 = vmatpush3.bf16.msra.mxu1 %v1283_v11 }
  0x3e   : > { %1129 = vmatmul.mubr.bf16.gmra.mrb[12].mxu0 %v258_v16  ;;  %1220 = vmatprep.subr.bf16.mxu1 %v1296_v1 }
  0x3f   : > { %1165 = vmatmul.mubr.bf16.gmra.mrb[12].mxu1 %v1455_v46  ;;  %1132 = vmatprep.mubr.msk.bf16.mxu0 %vm1297_vm0, %v1296_v1  ;;  %v732_v46 = vrot.slane %v1457_v47, 1 }
  0x40   : > { %1168 = vmatprep.mubr.msk.bf16.mxu1 %vm1297_vm0, %v1296_v1  ;;  %1185 = vmatpush3.bf16.msra.mxu0 %v1284_v17 }
  0x41   : > { %1221 = vmatpush3.bf16.msra.mxu1 %v1285_v18  ;;  %1186 = vmatprep.subr.bf16.mxu0 %v1296_v1  ;;  %v733_v48 = vsel %vm724_vm2, %v730_v43, %v732_v46 }
  0x42   : > { %1222 = vmatprep.subr.bf16.mxu1 %v1296_v1 }
  0x44   : > { %1187 = vmatpush3.bf16.msra.mxu0 %v1286_v20 }
  0x45   : > { %1223 = vmatpush3.bf16.msra.mxu1 %v1287_v14 }
  0x46   : > { %1133 = vmatmul.mubr.bf16.gmra.mrb[16].mxu0 %v261_v21 }
  0x47   : > { %1169 = vmatmul.mubr.bf16.gmra.mrb[16].mxu1 %v187_v22  ;;  %1188 = vmatprep.mubr.msk.bf16.mxu0 %vm1297_vm0, %v1296_v1 }
  0x48   : > { %1224 = vmatprep.mubr.msk.bf16.mxu1 %vm1297_vm0, %v1296_v1 }
  0x4e   : > { %1189 = vmatmul.mubr.bf16.vlgmr.msra.gmra.mrb[20].mxu0 %v540_v32 }
  0x4f   : > { %1225 = vmatmul.mubr.bf16.vlgmr.msra.gmra.mrb[20].mxu1 %v727_v36  ;;  %1192 = vmatprep.mubr.msk.bf16.mxu0 %vm1297_vm0, %v1296_v1 }
  0x50   : > { %1228 = vmatprep.mubr.msk.bf16.mxu1 %vm1297_vm0, %v1296_v1 }
  0x56   : > { %1193 = vmatmul.mubr.bf16.gmra.mrb[24].mxu0 %v548_v35  ;;  %v1605_v35 = vld [vmem:[%s1649_s2] ss:$0 sm:$0xff] }
  0x57   : > { %1229 = vmatmul.mubr.bf16.gmra.mrb[24].mxu1 %v729_v40  ;;  %1196 = vmatprep.mubr.msk.bf16.mxu0 %vm1297_vm0, %v1296_v1 }
  0x58   : > { %1232 = vmatprep.mubr.msk.bf16.mxu1 %vm1297_vm0, %v1296_v1 }
  0x5e   : > { %1197 = vmatmul.mubr.bf16.gmra.mrb[28].mxu0 %v556_v44 }
  0x5f   : > { %1233 = vmatmul.mubr.bf16.gmra.mrb[28].mxu1 %v731_v45  ;;  %1200 = vmatprep.mubr.msk.bf16.mxu0 %vm1297_vm0, %v1296_v1 }
  0x60   : > { %1236 = vmatprep.mubr.msk.bf16.mxu1 %vm1297_vm0, %v1296_v1 }
  0x66   : > { %1201 = vmatmul.mubr.bf16.gmra.mrb[32].mxu0 %v1499_v2 }
  0x67   : > { %1237 = vmatmul.mubr.bf16.gmra.mrb[32].mxu1 %v733_v48  ;;  %1204 = vmatprep.mubr.msk.bf16.mxu0 %vm1297_vm0, %v1296_v1 }
  0x68   : > { %1240 = vmatprep.mubr.msk.bf16.mxu1 %vm1297_vm0, %v1296_v1 }
  0x6e   : > { %1205 = vmatmul.mubr.bf16.gmra.mrb[36].mxu0 %v567_v49 }
  0x6f   : > { %1241 = vmatmul.mubr.bf16.gmra.mrb[36].mxu1 %v732_v46 }
  0xf9   : > { %v349_v50 = vpop.f32.mrb[0].mxu0 }
  0xfa   : > { %v469_v51 = vpop.f32.mrb[0].mxu1  ;;  %v1118_v52 = vpop.f32.mrb[1].mxu0 }
  0xfb   : > { %v470_v53 = vadd.f32 %v469_v51, %v349_v50  ;;  %v1154_v54 = vpop.f32.mrb[1].mxu1  ;;  %v352_v55 = vpop.f32.mrb[2].mxu0 }
  0xfc   : > { %v472_v56 = vpop.f32.mrb[2].mxu1  ;;  %v1119_v57 = vpop.f32.mrb[3].mxu0 }
  0xfd   : > { %v473_v47 = vadd.f32 %v472_v56, %v352_v55  ;;  %v1155_v59 = vpop.f32.mrb[3].mxu1 }
 0x101   : > { %v357_v60 = vpop.f32.mrb[4].mxu0 }
 0x102   : > { %v477_v61 = vpop.f32.mrb[4].mxu1  ;;  %v1122_v62 = vpop.f32.mrb[5].mxu0 }
 0x103   : > { %v478_v63 = vadd.f32 %v477_v61, %v357_v60  ;;  %v1158_v0 = vpop.f32.mrb[5].mxu1  ;;  %v360_v1 = vpop.f32.mrb[6].mxu0 }
 0x104   : > { %v480_v2 = vpop.f32.mrb[6].mxu1  ;;  %v1123_v58 = vpop.f32.mrb[7].mxu0 }
 0x105   : > { %v481_v3 = vadd.f32 %v480_v2, %v360_v1  ;;  %v1159_v4 = vpop.f32.mrb[7].mxu1 }
 0x109   : > { %v365_v5 = vpop.f32.mrb[8].mxu0 }
 0x10a   : > { %v485_v6 = vpop.f32.mrb[8].mxu1  ;;  %v1126_v7 = vpop.f32.mrb[9].mxu0 }
 0x10b   : > { %v1591_v8 = vadd.f32 %v485_v6, %v365_v5  ;;  %v1162_v9 = vpop.f32.mrb[9].mxu1  ;;  %v368_v10 = vpop.f32.mrb[10].mxu0 }
 0x10c   : > { %v488_v11 = vpop.f32.mrb[10].mxu1  ;;  %v1127_v15 = vpop.f32.mrb[11].mxu0 }
 0x10d   : > { %v1593_v16 = vadd.f32 %v488_v11, %v368_v10  ;;  %v1163_v17 = vpop.f32.mrb[11].mxu1 }
 0x111   : > { %v373_v18 = vpop.f32.mrb[12].mxu0 }
 0x112   : > { %v493_v19 = vpop.f32.mrb[12].mxu1  ;;  %v1130_v12 = vpop.f32.mrb[13].mxu0 }
 0x113   : > { %v1595_v13 = vadd.f32 %v493_v19, %v373_v18  ;;  %v1166_v20 = vpop.f32.mrb[13].mxu1  ;;  %v376_v14 = vpop.f32.mrb[14].mxu0 }
 0x114   : > { %v496_v21 = vpop.f32.mrb[14].mxu1  ;;  %v1131_v22 = vpop.f32.mrb[15].mxu0 }
 0x115   : > { %v1597_v23 = vadd.f32 %v496_v21, %v376_v14  ;;  %v1167_v24 = vpop.f32.mrb[15].mxu1 }
 0x119   : > { %v381_v25 = vpop.f32.mrb[16].mxu0 }
 0x11a   : > { %v501_v27 = vpop.f32.mrb[16].mxu1  ;;  %v1134_v28 = vpop.f32.mrb[17].mxu0 }
 0x11b   : > { %v1599_v29 = vadd.f32 %v501_v27, %v381_v25  ;;  %v1170_v30 = vpop.f32.mrb[17].mxu1  ;;  %v384_v31 = vpop.f32.mrb[18].mxu0 }
 0x11c   : > { %v504_v32 = vpop.f32.mrb[18].mxu1  ;;  %v1135_v33 = vpop.f32.mrb[19].mxu0 }
 0x11d   : > { %v1171_v34 = vpop.f32.mrb[19].mxu1 }
 0x121   : > { %v655_v36 = vpop.f32.mrb[20].mxu0 }
 0x122   : > { %v693_v37 = vadd.f32 %v655_v36, %v470_v53  ;;  %v821_v38 = vpop.f32.mrb[20].mxu1  ;;  %v1190_v26 = vpop.f32.mrb[21].mxu0 }
 0x123   : > { %v1226_v39 = vpop.f32.mrb[21].mxu1  ;;  %v658_v40 = vpop.f32.mrb[22].mxu0 }
 0x124   : > { %v859_v41 = vadd.f32 %v821_v38, %v693_v37  ;;  %v694_v43 = vadd.f32 %v658_v40, %v473_v47  ;;  %v824_v44 = vpop.f32.mrb[22].mxu1  ;;  %v1191_v45 = vpop.f32.mrb[23].mxu0 }
 0x125   : > { %v1227_v46 = vpop.f32.mrb[23].mxu1 }
 0x126   : > { %v875_v48 = vadd.f32 %v1605_v35, %v859_v41  ;;  %v860_v42 = vadd.f32 %v824_v44, %v694_v43 }
 0x128   : > { %v884_v49 = vmax.f32 %v875_v48, 0.0  ;;  %v876_v50 = vadd.f32 %v1605_v35, %v860_v42 }
 0x129   : > { %v663_v51 = vpop.f32.mrb[24].mxu0 }
 0x12a   : > { %894 = vst.msk [vmem:[%s1611_s10] sm:$0xff] %vm893_vm3, %v884_v49  ;;  %v885_v52 = vmax.f32 %v876_v50, 0.0  ;;  %v695_v53 = vadd.f32 %v663_v51, %v478_v63  ;;  %v829_v54 = vpop.f32.mrb[24].mxu1  ;;  %v1194_v55 = vpop.f32.mrb[25].mxu0 }
 0x12b   : > { %v1230_v56 = vpop.f32.mrb[25].mxu1  ;;  %v666_v57 = vpop.f32.mrb[26].mxu0 }
 0x12c   : > { %895 = vst.msk [vmem:[%s1611_s10 + $0x8] sm:$0xff] %vm893_vm3, %v885_v52  ;;  %v861_v47 = vadd.f32 %v829_v54, %v695_v53  ;;  %v696_v59 = vadd.f32 %v666_v57, %v481_v3  ;;  %v832_v60 = vpop.f32.mrb[26].mxu1  ;;  %v1195_v61 = vpop.f32.mrb[27].mxu0 }
 0x12d   : > { %v1231_v62 = vpop.f32.mrb[27].mxu1 }
 0x12e   : > { %v877_v0 = vadd.f32 %v1605_v35, %v861_v47  ;;  %v862_v1 = vadd.f32 %v832_v60, %v696_v59 }
 0x130   : > { %v886_v2 = vmax.f32 %v877_v0, 0.0  ;;  %v878_v58 = vadd.f32 %v1605_v35, %v862_v1 }
 0x131   : > { %v671_v63 = vpop.f32.mrb[28].mxu0 }
 0x132   : > { %896 = vst.msk [vmem:[%s1611_s10 + $0x10] sm:$0xff] %vm893_vm3, %v886_v2  ;;  %v887_v4 = vmax.f32 %v878_v58, 0.0  ;;  %v697_v5 = vadd.f32 %v671_v63, %v1591_v8  ;;  %v837_v6 = vpop.f32.mrb[28].mxu1  ;;  %v1198_v7 = vpop.f32.mrb[29].mxu0 }
 0x133   : > { %v1234_v3 = vpop.f32.mrb[29].mxu1  ;;  %v674_v9 = vpop.f32.mrb[30].mxu0 }
 0x134   : > { %897 = vst.msk [vmem:[%s1611_s10 + $0x18] sm:$0xff] %vm893_vm3, %v887_v4  ;;  %v863_v10 = vadd.f32 %v837_v6, %v697_v5  ;;  %v698_v11 = vadd.f32 %v674_v9, %v1593_v16  ;;  %v840_v15 = vpop.f32.mrb[30].mxu1  ;;  %v1199_v17 = vpop.f32.mrb[31].mxu0 }
 0x135   : > { %v1235_v18 = vpop.f32.mrb[31].mxu1 }
 0x136   : > { %v879_v19 = vadd.f32 %v1605_v35, %v863_v10  ;;  %v864_v12 = vadd.f32 %v840_v15, %v698_v11 }
 0x138   : > { %v888_v20 = vmax.f32 %v879_v19, 0.0  ;;  %v880_v8 = vadd.f32 %v1605_v35, %v864_v12 }
 0x139   : > { %v679_v14 = vpop.f32.mrb[32].mxu0 }
 0x13a   : > { %898 = vst.msk [vmem:[%s1611_s10 + $0x20] sm:$0xff] %vm893_vm3, %v888_v20  ;;  %v889_v21 = vmax.f32 %v880_v8, 0.0  ;;  %v699_v22 = vadd.f32 %v679_v14, %v1595_v13  ;;  %v845_v24 = vpop.f32.mrb[32].mxu1  ;;  %v1202_v25 = vpop.f32.mrb[33].mxu0 }
 0x13b   : > { %v1238_v16 = vpop.f32.mrb[33].mxu1  ;;  %v682_v27 = vpop.f32.mrb[34].mxu0 }
 0x13c   : > { %899 = vst.msk [vmem:[%s1611_s10 + $0x28] sm:$0xff] %vm893_vm3, %v889_v21  ;;  %v865_v28 = vadd.f32 %v845_v24, %v699_v22  ;;  %v700_v30 = vadd.f32 %v682_v27, %v1597_v23  ;;  %v848_v31 = vpop.f32.mrb[34].mxu1  ;;  %v1203_v32 = vpop.f32.mrb[35].mxu0 }
 0x13d   : > { %v1239_v33 = vpop.f32.mrb[35].mxu1 }
 0x13e   : > { %v881_v34 = vadd.f32 %v1605_v35, %v865_v28  ;;  %v866_v36 = vadd.f32 %v848_v31, %v700_v30 }
 0x140   : > { %v890_v37 = vmax.f32 %v881_v34, 0.0  ;;  %v882_v13 = vadd.f32 %v1605_v35, %v866_v36 }
 0x141   : > { %v687_v38 = vpop.f32.mrb[36].mxu0 }
 0x142   : > { %900 = vst.msk [vmem:[%s1611_s10 + $0x30] sm:$0xff] %vm893_vm3, %v890_v37  ;;  %v891_v26 = vmax.f32 %v882_v13, 0.0  ;;  %v701_v39 = vadd.f32 %v687_v38, %v1599_v29  ;;  %v853_v40 = vpop.f32.mrb[36].mxu1  ;;  %v1206_v41 = vpop.f32.mrb[37].mxu0 }
 0x143   : > { %v1242_v23 = vpop.f32.mrb[37].mxu1  ;;  %v690_v43 = vpop.f32.mrb[38].mxu0 }
 0x144   : > { %901 = vst.msk [vmem:[%s1611_s10 + $0x38] sm:$0xff] %vm893_vm3, %v891_v26  ;;  %v867_v44 = vadd.f32 %v853_v40, %v701_v39  ;;  %v856_v45 = vpop.f32.mrb[38].mxu1  ;;  %v1207_v46 = vpop.f32.mrb[39].mxu0 }
 0x145   : > { %v1243_v48 = vpop.f32.mrb[39].mxu1 }
 0x146   : > { %v883_v42 = vadd.f32 %v1605_v35, %v867_v44 }
 0x148   : > { %v892_v49 = vmax.f32 %v883_v42, 0.0 }
 0x14a   : > { %902 = vst.msk [vmem:[%s1611_s10 + $0x40] sm:$0xff] %vm893_vm3, %v892_v49 }
 0x14b PF: > { %s13_s12 = sadd.s32 1, %s1294_s12  }
 0x14c   : > { %p10_p4 = scmp.ge.s32.totalorder %s13_s12, 6  }
 0x14e   :  { %12 = sbr.rel (!%p10_p4) target bundleno = 1 (0x1), region = 65 }

// kernel: encoder_vae_conv_forward.6
= control target key start
LH: loop header
LB: loop body
LE: loop exit
PB: predicated region body
PF: predicated region fallthrough
CT: control target
= control target key end

     0   :  { %s1031_s12 = smov 0   ;;  %s1156_s0 = inlined_call_operand.vmem [shape: f32[4,32,128], index: 0, kind: input, shape index: {}]   ;;  %s1157_s1 = inlined_call_operand.vmem [shape: bf16[4,128,64], index: 1, kind: input, shape index: {}]   ;;  %s1158_s2 = inlined_call_operand.vmem [shape: f32[1,64], index: 2, kind: input, shape index: {}]   ;;  %s1159_s3 = inlined_call_operand.vmem [shape: f32[4,20,64], index: 3, kind: output, shape index: {}]  }
   0x1 LB: > { %s750_s13 = sadd.s32 4294967295, %s1009_s12   ;;  %p754_p0 = scmp.ge.s32.totalorder %s1009_s12, 1  ;;  %s1009_s12 = sphi %s1031_s12, %s13_s12  }
   0x2   : > { %p137_p1 = scmp.lt.s32.totalorder %s1009_s12, 5 }
   0x4   : > { %p138_p2 = pnand %p754_p0, %p137_p1 }
   0x5   : > { %v971_v0 = vld [vmem:[%s1157_s1 + $0x40] sm:$0xff] (!%p138_p2)   ;;  %v973_v2 = vld [vmem:[%s1157_s1 + $0x48] sm:$0xff] (!%p138_p2)   ;;  %p161_p3 = scmp.lt.s32.totalorder (!%p138_p2), %s750_s13, 3  ;;  %v975_v4 = vld [vmem:[%s1157_s1 + $0x50] sm:$0xff] (!%p138_p2)   ;;  %vm211_vm0 = vsmask.f32 (!%p138_p2), 7424 }
   0x6   : > { %141 = sbr.rel (%p138_p2) target bundleno = 294 (0x126), region = 32  ;;  %v972_v1 = vld [vmem:[%s1157_s1] sm:$0xff] (!%p138_p2)   ;;  %882 = vmatprep.subr.bf16.mxu0 (!%p138_p2), %v971_v0  ;;  %v974_v3 = vld [vmem:[%s1157_s1 + $0x8] sm:$0xff] (!%p138_p2)   ;;  %v976_v5 = vld [vmem:[%s1157_s1 + $0x10] sm:$0xff] (!%p138_p2)   ;;  %vm572_vm1 = vcmask (!%p138_p2), 1044480   ;;  %vm693_vm3 = vcmask (!%p138_p2), 519168  }
   0x7   : > { %902 = vmatprep.subr.bf16.mxu1 (!%p138_p2), %v972_v1  ;;  %883 = vmatpush3.bf16.msra.mxu0 (!%p138_p2), %v971_v0  ;;  %v977_v6 = vld [vmem:[%s1157_s1 + $0x58] sm:$0xff] (!%p138_p2)   ;;  %v979_v8 = vld [vmem:[%s1157_s1 + $0x60] sm:$0xff] (!%p138_p2)   ;;  %v981_v10 = vld [vmem:[%s1157_s1 + $0x68] sm:$0xff] (!%p138_p2)   ;;  %vm439_vm2 = vsmask.f32 (!%p138_p2), 5376  ;;  %vm690_vm4 = vcmask (!%p138_p2), 523264  }
   0x8   : > { %903 = vmatpush3.bf16.msra.mxu1 (!%p138_p2), %v972_v1  ;;  %884 = vmatprep.subr.bf16.mxu0 (!%p138_p2), %v973_v2  ;;  %v978_v7 = vld [vmem:[%s1157_s1 + $0x18] sm:$0xff] (!%p138_p2)   ;;  %v980_v9 = vld [vmem:[%s1157_s1 + $0x20] sm:$0xff] (!%p138_p2)   ;;  %v982_v14 = vld [vmem:[%s1157_s1 + $0x28] sm:$0xff] (!%p138_p2)  }
   0x9   : > { %904 = vmatprep.subr.bf16.mxu1 (!%p138_p2), %v974_v3  ;;  %v983_v18 = vld [vmem:[%s1157_s1 + $0x70] sm:$0xff] (!%p138_p2)   ;;  %v985_v26 = vld [vmem:[%s1157_s1 + $0x78] sm:$0xff] (!%p138_p2)   ;;  %v987_v36 = vld [vmem:[%s1157_s1 + $0x80] sm:$0xff] (!%p138_p2)  }
   0xa   : > { %v984_v19 = vld [vmem:[%s1157_s1 + $0x30] sm:$0xff] (!%p138_p2)   ;;  %v986_v28 = vld [vmem:[%s1157_s1 + $0x38] sm:$0xff] (!%p138_p2)   ;;  %v988_v38 = vld [vmem:[%s1157_s1 + $0xc0] sm:$0xff] (!%p138_p2)  }
   0xb   : > { %885 = vmatpush3.bf16.msra.mxu0 (!%p138_p2), %v973_v2  ;;  %v989_v44 = vld [vmem:[%s1157_s1 + $0x88] sm:$0xff] (!%p138_p2)   ;;  %v991_v48 = vld [vmem:[%s1157_s1 + $0x90] sm:$0xff] (!%p138_p2)   ;;  %v993_v50 = vld [vmem:[%s1157_s1 + $0x98] sm:$0xff] (!%p138_p2)  }
   0xc   : > { %905 = vmatpush3.bf16.msra.mxu1 (!%p138_p2), %v974_v3  ;;  %886 = vmatprep.subr.bf16.mxu0 (!%p138_p2), %v975_v4  ;;  %v990_v45 = vld [vmem:[%s1157_s1 + $0xc8] sm:$0xff] (!%p138_p2)   ;;  %v992_v49 = vld [vmem:[%s1157_s1 + $0xd0] sm:$0xff] (!%p138_p2)   ;;  %v994_v51 = vld [vmem:[%s1157_s1 + $0xd8] sm:$0xff] (!%p138_p2)  }
   0xd   : > { %s1161_s13 = smov (!%p161_p3, %s750_s13), 3  ;;  %906 = vmatprep.subr.bf16.mxu1 %v976_v5  ;;  %v995_v52 = vld [vmem:[%s1157_s1 + $0xa0] sm:$0xff]   ;;  %v997_v54 = vld [vmem:[%s1157_s1 + $0xa8] sm:$0xff]   ;;  %v999_v56 = vld [vmem:[%s1157_s1 + $0xb0] sm:$0xff]  }
   0xe   : > { %s841_s30 = sshll.u32 %s1161_s13, 5  ;;  %v996_v53 = vld [vmem:[%s1157_s1 + $0xe0] sm:$0xff]   ;;  %v998_v55 = vld [vmem:[%s1157_s1 + $0xe8] sm:$0xff]   ;;  %v1000_v57 = vld [vmem:[%s1157_s1 + $0xf0] sm:$0xff]   ;;  %s962_s5 = smul.u32 24, %s1161_s13 }
   0xf   : > { %887 = vmatpush3.bf16.msra.mxu0 %v975_v4  ;;  %s165_s10 = scalar_lea.vmem %s1156_s0, %s841_s30  ;;  %v1001_v58 = vld [vmem:[%s1157_s1 + $0xb8] sm:$0xff]  }
  0x10   : > { %907 = vmatpush3.bf16.msra.mxu1 %v976_v5  ;;  %888 = vmatprep.subr.bf16.mxu0 %v977_v6  ;;  %v172_v11 = vld [vmem:[%s165_s10] sm:$0xff]  ;;  %v173_v12 = vld [vmem:[%s165_s10 + $0x8] sm:$0xff]  ;;  %v174_v13 = vld [vmem:[%s165_s10 + $0x10] sm:$0xff] }
  0x11   : > { %908 = vmatprep.subr.bf16.mxu1 %v978_v7  ;;  %v176_v15 = vpack.c.bf16 %v173_v12, %v172_v11  ;;  %v177_v16 = vpack.c.bf16 %v174_v13, %v174_v13  ;;  %v175_v17 = vld [vmem:[%s165_s10 + $0x18] sm:$0xff]  ;;  %v838_v11 = vld [vmem:[%s1158_s2] ss:$0 sm:$0xff]  ;;  %s170_s10 = scalar_lea.vmem %s1159_s3, %s962_s5 }
  0x12   : > { %v1087_v25 = vpack.c.bf16 %v175_v17, %v174_v13  ;;  %v1002_v59 = vld [vmem:[%s1157_s1 + $0xf8] sm:$0xff]  }
  0x13   : > { %889 = vmatpush3.bf16.msra.mxu0 %v977_v6  ;;  %v213_v20 = vshrl.u32 %v176_v15, 16  ;;  %v215_v21 = vshll.u32 %v176_v15, 16  ;;  %v220_v22 = vshll.u32 %v177_v16, 16  ;;  %918 = vmatprep.mubr.bf16.mxu1 %v176_v15  ;;  %v224_v29 = vshrl.u32 %v177_v16, 16 }
  0x14   : > { %909 = vmatpush3.bf16.msra.mxu1 %v978_v7  ;;  %890 = vmatprep.subr.bf16.mxu0 %v979_v8  ;;  %v444_v32 = vshrl.u32 %v1087_v25, 16  ;;  %v447_v34 = vshll.u32 %v1087_v25, 16  ;;  %v573_v42 = vrot.slane %v176_v15, 3  ;;  %v574_v43 = vrot.slane %v1087_v25, 3 }
  0x15   : > { %910 = vmatprep.subr.bf16.mxu1 %v980_v9  ;;  %v217_v23 = vrot.slane %v215_v21, 1  ;;  %v222_v24 = vrot.slane %v220_v22, 1  ;;  %v440_v31 = vrot.slane %v213_v20, 2  ;;  %v441_v33 = vrot.slane %v215_v21, 3 }
  0x16   : > { %v446_v35 = vrot.slane %v444_v32, 2  ;;  %v449_v37 = vrot.slane %v447_v34, 3  ;;  %v575_v47 = vsel %vm572_vm1, %v573_v42, %v574_v43 }
  0x17   : > { %891 = vmatpush3.bf16.msra.mxu0 %v979_v8  ;;  %v218_v27 = vor.u32 %v217_v23, %v213_v20  ;;  %v226_v39 = vor.u32 %v224_v29, %v222_v24  ;;  %v442_v40 = vor.u32 %v441_v33, %v440_v31 }
  0x18   : > { %911 = vmatpush3.bf16.msra.mxu1 %v980_v9  ;;  %892 = vmatprep.subr.bf16.mxu0 %v981_v10  ;;  %v450_v41 = vor.u32 %v449_v37, %v446_v35 }
  0x19   : > { %912 = vmatprep.subr.bf16.mxu1 %v982_v14  ;;  %v223_v30 = vsel %vm211_vm0, %v218_v27, %v222_v24 }
  0x1a   : > { %898 = vmatprep.mubr.bf16.mxu0 %v223_v30  ;;  %v451_v46 = vsel %vm439_vm2, %v442_v40, %v450_v41 }
  0x1b   : > { %893 = vmatpush3.bf16.msra.mxu0 %v981_v10 }
  0x1c   : > { %913 = vmatpush3.bf16.msra.mxu1 %v982_v14  ;;  %894 = vmatprep.subr.bf16.mxu0 %v983_v18 }
  0x1d   : > { %914 = vmatprep.subr.bf16.mxu1 %v984_v19 }
  0x1f   : > { %895 = vmatpush3.bf16.msra.mxu0 %v983_v18 }
  0x20   : > { %915 = vmatpush3.bf16.msra.mxu1 %v984_v19  ;;  %896 = vmatprep.subr.bf16.mxu0 %v985_v26 }
  0x21   : > { %916 = vmatprep.subr.bf16.mxu1 %v986_v28 }
  0x23   : > { %897 = vmatpush3.bf16.msra.mxu0 %v985_v26 }
  0x24   : > { %917 = vmatpush3.bf16.msra.mxu1 %v986_v28  ;;  %922 = vmatprep.subr.bf16.mxu0 %v987_v36 }
  0x25   : > { %942 = vmatprep.subr.bf16.mxu1 %v988_v38 }
  0x26   : > { %899 = vmatmul.mubr.bf16.vlgmr.msra.gmra.mrb[0].mxu0 %v226_v39 }
  0x27   : > { %919 = vmatmul.mubr.bf16.vlgmr.msra.gmra.mrb[0].mxu1 %v177_v16  ;;  %923 = vmatpush3.bf16.msra.mxu0 %v987_v36 }
  0x28   : > { %943 = vmatpush3.bf16.msra.mxu1 %v988_v38  ;;  %924 = vmatprep.subr.bf16.mxu0 %v989_v44 }
  0x29   : > { %944 = vmatprep.subr.bf16.mxu1 %v990_v45  ;;  %938 = vmatprep.mubr.bf16.mxu0 %v451_v46 }
  0x2a   : > { %958 = vmatprep.mubr.bf16.mxu1 %v575_v47 }
  0x2b   : > { %925 = vmatpush3.bf16.msra.mxu0 %v989_v44 }
  0x2c   : > { %945 = vmatpush3.bf16.msra.mxu1 %v990_v45  ;;  %926 = vmatprep.subr.bf16.mxu0 %v991_v48 }
  0x2d   : > { %946 = vmatprep.subr.bf16.mxu1 %v992_v49 }
  0x2f   : > { %927 = vmatpush3.bf16.msra.mxu0 %v991_v48 }
  0x30   : > { %947 = vmatpush3.bf16.msra.mxu1 %v992_v49  ;;  %928 = vmatprep.subr.bf16.mxu0 %v993_v50 }
  0x31   : > { %948 = vmatprep.subr.bf16.mxu1 %v994_v51 }
  0x33   : > { %929 = vmatpush3.bf16.msra.mxu0 %v993_v50 }
  0x34   : > { %949 = vmatpush3.bf16.msra.mxu1 %v994_v51  ;;  %930 = vmatprep.subr.bf16.mxu0 %v995_v52 }
  0x35   : > { %950 = vmatprep.subr.bf16.mxu1 %v996_v53 }
  0x37   : > { %931 = vmatpush3.bf16.msra.mxu0 %v995_v52 }
  0x38   : > { %951 = vmatpush3.bf16.msra.mxu1 %v996_v53  ;;  %932 = vmatprep.subr.bf16.mxu0 %v997_v54 }
  0x39   : > { %952 = vmatprep.subr.bf16.mxu1 %v998_v55 }
  0x3b   : > { %933 = vmatpush3.bf16.msra.mxu0 %v997_v54 }
  0x3c   : > { %953 = vmatpush3.bf16.msra.mxu1 %v998_v55  ;;  %934 = vmatprep.subr.bf16.mxu0 %v999_v56 }
  0x3d   : > { %954 = vmatprep.subr.bf16.mxu1 %v1000_v57 }
  0x3f   : > { %935 = vmatpush3.bf16.msra.mxu0 %v999_v56 }
  0x40   : > { %955 = vmatpush3.bf16.msra.mxu1 %v1000_v57  ;;  %936 = vmatprep.subr.bf16.mxu0 %v1001_v58 }
  0x41   : > { %956 = vmatprep.subr.bf16.mxu1 %v1002_v59 }
  0x43   : > { %937 = vmatpush3.bf16.msra.mxu0 %v1001_v58 }
  0x44   : > { %957 = vmatpush3.bf16.msra.mxu1 %v1002_v59 }
  0x46   : > { %939 = vmatmul.mubr.bf16.vlgmr.msra.gmra.mrb[4].mxu0 %v450_v41 }
  0x47   : > { %959 = vmatmul.mubr.bf16.vlgmr.msra.gmra.mrb[4].mxu1 %v574_v43 }
  0xf9   : > { %v900_v60 = vpop.f32.mrb[0].mxu0 }
  0xfa   : > { %v920_v61 = vpop.f32.mrb[0].mxu1  ;;  %v311_v62 = vpop.f32.mrb[1].mxu0 }
  0xfb   : > { %v416_v63 = vadd.f32 %v920_v61, %v900_v60  ;;  %v407_v0 = vpop.f32.mrb[1].mxu1  ;;  %v901_v1 = vpop.f32.mrb[2].mxu0 }
  0xfc   : > { %v408_v2 = vadd.f32 %v407_v0, %v311_v62  ;;  %v921_v3 = vpop.f32.mrb[2].mxu1  ;;  %v314_v4 = vpop.f32.mrb[3].mxu0 }
  0xfd   : > { %v410_v5 = vpop.f32.mrb[3].mxu1 }
  0xfe   : > { %v411_v6 = vadd.f32 %v410_v5, %v314_v4 }
 0x119   : > { %v940_v7 = vpop.f32.mrb[4].mxu0 }
 0x11a   : > { %v552_v8 = vadd.f32 %v940_v7, %v416_v63  ;;  %v960_v9 = vpop.f32.mrb[4].mxu1  ;;  %v536_v10 = vpop.f32.mrb[5].mxu0 }
 0x11b   : > { %v550_v12 = vadd.f32 %v536_v10, %v408_v2  ;;  %v660_v13 = vpop.f32.mrb[5].mxu1  ;;  %v941_v14 = vpop.f32.mrb[6].mxu0 }
 0x11c   : > { %v676_v15 = vadd.f32 %v960_v9, %v552_v8  ;;  %v961_v16 = vpop.f32.mrb[6].mxu1  ;;  %v539_v17 = vpop.f32.mrb[7].mxu0 }
 0x11d   : > { %v674_v18 = vadd.f32 %v660_v13, %v550_v12  ;;  %v551_v19 = vadd.f32 %v539_v17, %v411_v6  ;;  %v663_v20 = vpop.f32.mrb[7].mxu1 }
 0x11e   : > { %v686_v21 = vadd.f32 %v838_v11, %v676_v15 }
 0x11f   : > { %v684_v22 = vadd.f32 %v838_v11, %v674_v18  ;;  %v675_v23 = vadd.f32 %v663_v20, %v551_v19 }
 0x120   : > { %v689_v24 = vmax.f32 %v686_v21, 0.0 }
 0x121   : > { %v687_v25 = vmax.f32 %v684_v22, 0.0  ;;  %v685_v26 = vadd.f32 %v838_v11, %v675_v23 }
 0x122   : > { %694 = vst.msk [vmem:[%s170_s10 + $0x10] sm:$0xf] %vm693_vm3, %v689_v24 }
 0x123   : > { %691 = vst.msk [vmem:[%s170_s10] sm:$0xff] %vm690_vm4, %v687_v25  ;;  %v688_v27 = vmax.f32 %v685_v26, 0.0 }
 0x125   : > { %692 = vst.msk [vmem:[%s170_s10 + $0x8] sm:$0xff] %vm690_vm4, %v688_v27 }
 0x126 PF: > { %s13_s12 = sadd.s32 1, %s1009_s12  }
 0x127   : > { %p10_p4 = scmp.ge.s32.totalorder %s13_s12, 6  }
 0x129   :  { %12 = sbr.rel (!%p10_p4) target bundleno = 1 (0x1), region = 65 }

// kernel: encoder_vae_conv_forward.7
= control target key start
LH: loop header
LB: loop body
LE: loop exit
PB: predicated region body
PF: predicated region fallthrough
CT: control target
= control target key end

     0   :  { %s1702_s0 = inlined_call_operand.vmem [shape: f32[4,1280], index: 0, kind: input, shape index: {}]   ;;  %s1703_s1 = inlined_call_operand.vmem [shape: bf16[1280,32], index: 1, kind: input, shape index: {}]   ;;  %s1704_s2 = inlined_call_operand.vmem [shape: f32[1,32], index: 2, kind: input, shape index: {}]   ;;  %s1705_s3 = inlined_call_operand.vmem [shape: bf16[32,128], index: 3, kind: input, shape index: {}]   ;;  %s1706_s4 = inlined_call_operand.vmem [shape: f32[1,128], index: 4, kind: input, shape index: {}]   ;;  %s1707_s5 = inlined_call_operand.hbm [shape: f32[4,32], index: 5, kind: output, shape index: {0}]   ;;  %s1708_s6 = inlined_call_operand.vmem [shape: f32[4,128], index: 6, kind: output, shape index: {1}]  }
   0x1   :  { %v1239_v0 = vld [vmem:[%s1703_s1 + $0x40] sm:$0xff]   ;;  %v1243_v4 = vld [vmem:[%s1703_s1 + $0x48] sm:$0xff]   ;;  %v1247_v8 = vld [vmem:[%s1703_s1 + $0x50] sm:$0xff]  }
   0x2   :  { %v1240_v1 = vld [vmem:[%s1703_s1] sm:$0xff]   ;;  %1115 = vmatprep.subr.bf16.mxu0 %v1239_v0  ;;  %v1244_v5 = vld [vmem:[%s1703_s1 + $0x8] sm:$0xff]   ;;  %v1248_v9 = vld [vmem:[%s1703_s1 + $0x10] sm:$0xff]  }
   0x3   :  { %v1241_v2 = vld [vmem:[%s1703_s1 + $0xc0] sm:$0xff]   ;;  %1116 = vmatpush3.bf16.msra.mxu0 %v1240_v1  ;;  %v1245_v6 = vld [vmem:[%s1703_s1 + $0xc8] sm:$0xff]   ;;  %v1249_v10 = vld [vmem:[%s1703_s1 + $0xd0] sm:$0xff]  }
   0x4   :  { %v1242_v3 = vld [vmem:[%s1703_s1 + $0x80] sm:$0xff]   ;;  %1137 = vmatprep.subr.bf16.mxu1 %v1241_v2  ;;  %1117 = vmatprep.subr.bf16.mxu0 %v1243_v4  ;;  %v1246_v7 = vld [vmem:[%s1703_s1 + $0x88] sm:$0xff]   ;;  %v1250_v11 = vld [vmem:[%s1703_s1 + $0x90] sm:$0xff]  }
   0x5   :  { %1138 = vmatpush3.bf16.msra.mxu1 %v1242_v3  ;;  %v1251_v12 = vld [vmem:[%s1703_s1 + $0x58] sm:$0xff]   ;;  %v1255_v16 = vld [vmem:[%s1703_s1 + $0x60] sm:$0xff]   ;;  %v1259_v20 = vld [vmem:[%s1703_s1 + $0x68] sm:$0xff]  }
   0x6   :  { %1139 = vmatprep.subr.bf16.mxu1 %v1245_v6  ;;  %v1252_v13 = vld [vmem:[%s1703_s1 + $0x18] sm:$0xff]   ;;  %v1256_v17 = vld [vmem:[%s1703_s1 + $0x20] sm:$0xff]   ;;  %v1260_v21 = vld [vmem:[%s1703_s1 + $0x28] sm:$0xff]  }
   0x7   :  { %1118 = vmatpush3.bf16.msra.mxu0 %v1244_v5  ;;  %v1253_v14 = vld [vmem:[%s1703_s1 + $0xd8] sm:$0xff]   ;;  %v1257_v18 = vld [vmem:[%s1703_s1 + $0xe0] sm:$0xff]   ;;  %v1261_v22 = vld [vmem:[%s1703_s1 + $0xe8] sm:$0xff]  }
   0x8   :  { %1119 = vmatprep.subr.bf16.mxu0 %v1247_v8  ;;  %v1254_v15 = vld [vmem:[%s1703_s1 + $0x98] sm:$0xff]   ;;  %v1258_v19 = vld [vmem:[%s1703_s1 + $0xa0] sm:$0xff]   ;;  %v1262_v23 = vld [vmem:[%s1703_s1 + $0xa8] sm:$0xff]  }
   0x9   :  { %1140 = vmatpush3.bf16.msra.mxu1 %v1246_v7  ;;  %v1263_v24 = vld [vmem:[%s1703_s1 + $0x70] sm:$0xff]   ;;  %v1267_v28 = vld [vmem:[%s1703_s1 + $0x78] sm:$0xff]   ;;  %v24_v31 = vld [vmem:[%s1702_s0] sm:$0xff] }
   0xa   :  { %1141 = vmatprep.subr.bf16.mxu1 %v1249_v10  ;;  %v1264_v25 = vld [vmem:[%s1703_s1 + $0x30] sm:$0xff]   ;;  %v1268_v29 = vld [vmem:[%s1703_s1 + $0x38] sm:$0xff]   ;;  %v34_v32 = vcombine.high %v24_v31, %v24_v31  ;;  %v44_v34 = vpack.c.bf16 %v24_v31, %v24_v31  ;;  %v1272_v35 = vld [vmem:[%s1703_s1 + $0x140] sm:$0xff]  }
   0xb   :  { %1120 = vmatpush3.bf16.msra.mxu0 %v1248_v9  ;;  %v1265_v26 = vld [vmem:[%s1703_s1 + $0xf0] sm:$0xff]   ;;  %v1269_v30 = vld [vmem:[%s1703_s1 + $0xf8] sm:$0xff]   ;;  %v25_v36 = vld [vmem:[%s1702_s0 + $0x8] sm:$0xff] }
   0xc   :  { %1121 = vmatprep.subr.bf16.mxu0 %v1251_v12  ;;  %v1266_v27 = vld [vmem:[%s1703_s1 + $0xb0] sm:$0xff]   ;;  %v1271_v33 = vld [vmem:[%s1703_s1 + $0xb8] sm:$0xff]   ;;  %v45_v37 = vpack.c.bf16 %v34_v32, %v34_v32  ;;  %v35_v38 = vcombine.high %v25_v36, %v25_v36  ;;  %v1274_v39 = vld [vmem:[%s1703_s1 + $0x100] sm:$0xff]   ;;  %v46_v40 = vpack.c.bf16 %v25_v36, %v25_v36 }
   0xd   :  { %1142 = vmatpush3.bf16.msra.mxu1 %v1250_v11  ;;  %v1275_v41 = vld [vmem:[%s1703_s1 + $0x1c0] sm:$0xff]   ;;  %v1277_v44 = vld [vmem:[%s1703_s1 + $0x148] sm:$0xff]   ;;  %v1281_v48 = vld [vmem:[%s1703_s1 + $0x150] sm:$0xff]  }
   0xe   :  { %1143 = vmatprep.subr.bf16.mxu1 %v1253_v14  ;;  %733 = vmatprep.mubr.bf16.mxu0 %v45_v37  ;;  %v47_v42 = vpack.c.bf16 %v35_v38, %v35_v38  ;;  %v1276_v43 = vld [vmem:[%s1703_s1 + $0x180] sm:$0xff]   ;;  %v1278_v45 = vld [vmem:[%s1703_s1 + $0x108] sm:$0xff]   ;;  %v1282_v49 = vld [vmem:[%s1703_s1 + $0x110] sm:$0xff]  }
   0xf   :  { %1122 = vmatpush3.bf16.msra.mxu0 %v1252_v13  ;;  %v1279_v46 = vld [vmem:[%s1703_s1 + $0x1c8] sm:$0xff]   ;;  %v1283_v50 = vld [vmem:[%s1703_s1 + $0x1d0] sm:$0xff]   ;;  %v1285_v52 = vld [vmem:[%s1703_s1 + $0x158] sm:$0xff]  }
  0x10   :  { %1123 = vmatprep.subr.bf16.mxu0 %v1255_v16  ;;  %773 = vmatprep.mubr.bf16.mxu1 %v47_v42  ;;  %v1280_v47 = vld [vmem:[%s1703_s1 + $0x188] sm:$0xff]   ;;  %v1284_v51 = vld [vmem:[%s1703_s1 + $0x190] sm:$0xff]   ;;  %v1286_v53 = vld [vmem:[%s1703_s1 + $0x118] sm:$0xff]  }
  0x11   :  { %1144 = vmatpush3.bf16.msra.mxu1 %v1254_v15  ;;  %v1287_v54 = vld [vmem:[%s1703_s1 + $0x1d8] sm:$0xff]   ;;  %v1289_v56 = vld [vmem:[%s1703_s1 + $0x160] sm:$0xff]   ;;  %v1293_v60 = vld [vmem:[%s1703_s1 + $0x168] sm:$0xff]  }
  0x12   :  { %1145 = vmatprep.subr.bf16.mxu1 %v1257_v18  ;;  %v1288_v55 = vld [vmem:[%s1703_s1 + $0x198] sm:$0xff]   ;;  %v1290_v57 = vld [vmem:[%s1703_s1 + $0x120] sm:$0xff]   ;;  %v1294_v61 = vld [vmem:[%s1703_s1 + $0x128] sm:$0xff]  }
  0x13   :  { %1124 = vmatpush3.bf16.msra.mxu0 %v1256_v17  ;;  %v1291_v58 = vld [vmem:[%s1703_s1 + $0x1e0] sm:$0xff]   ;;  %v1295_v62 = vld [vmem:[%s1703_s1 + $0x1e8] sm:$0xff]   ;;  %v1297_v0 = vld [vmem:[%s1703_s1 + $0x170] sm:$0xff]  }
  0x14   :  { %1125 = vmatprep.subr.bf16.mxu0 %v1259_v20  ;;  %v1292_v59 = vld [vmem:[%s1703_s1 + $0x1a0] sm:$0xff]   ;;  %v1296_v63 = vld [vmem:[%s1703_s1 + $0x1a8] sm:$0xff]   ;;  %v1298_v1 = vld [vmem:[%s1703_s1 + $0x130] sm:$0xff]  }
  0x15   :  { %1146 = vmatpush3.bf16.msra.mxu1 %v1258_v19  ;;  %v1299_v2 = vld [vmem:[%s1703_s1 + $0x1f0] sm:$0xff]   ;;  %v1301_v4 = vld [vmem:[%s1703_s1 + $0x178] sm:$0xff]   ;;  %v1306_v11 = vld [vmem:[%s1703_s1 + $0x240] sm:$0xff]  }
  0x16   :  { %1147 = vmatprep.subr.bf16.mxu1 %v1261_v22  ;;  %v1300_v3 = vld [vmem:[%s1703_s1 + $0x1b0] sm:$0xff]   ;;  %v1302_v5 = vld [vmem:[%s1703_s1 + $0x138] sm:$0xff]   ;;  %v1308_v15 = vld [vmem:[%s1703_s1 + $0x200] sm:$0xff]  }
  0x17   :  { %1126 = vmatpush3.bf16.msra.mxu0 %v1260_v21  ;;  %v1303_v6 = vld [vmem:[%s1703_s1 + $0x1f8] sm:$0xff]   ;;  %v26_v7 = vld [vmem:[%s1702_s0 + $0x10] sm:$0xff]  ;;  %v1309_v17 = vld [vmem:[%s1703_s1 + $0x248] sm:$0xff]  }
  0x18   :  { %1127 = vmatprep.subr.bf16.mxu0 %v1263_v24  ;;  %v36_v8 = vcombine.high %v26_v7, %v26_v7  ;;  %v1305_v9 = vld [vmem:[%s1703_s1 + $0x1b8] sm:$0xff]   ;;  %v48_v10 = vpack.c.bf16 %v26_v7, %v26_v7  ;;  %v1310_v19 = vld [vmem:[%s1703_s1 + $0x208] sm:$0xff]   ;;  %v1311_v20 = vld [vmem:[%s1703_s1 + $0x250] sm:$0xff]  }
  0x19   :  { %1148 = vmatpush3.bf16.msra.mxu1 %v1262_v23  ;;  %v27_v13 = vld [vmem:[%s1702_s0 + $0x18] sm:$0xff]  ;;  %v1312_v21 = vld [vmem:[%s1703_s1 + $0x210] sm:$0xff]   ;;  %v1315_v24 = vld [vmem:[%s1703_s1 + $0x260] sm:$0xff]  }
  0x1a   :  { %1149 = vmatprep.subr.bf16.mxu1 %v1265_v26  ;;  %v49_v12 = vpack.c.bf16 %v36_v8, %v36_v8  ;;  %v37_v14 = vcombine.high %v27_v13, %v27_v13  ;;  %v50_v16 = vpack.c.bf16 %v27_v13, %v27_v13  ;;  %v1313_v22 = vld [vmem:[%s1703_s1 + $0x258] sm:$0xff]   ;;  %v28_v26 = vld [vmem:[%s1702_s0 + $0x20] sm:$0xff] }
  0x1b   :  { %1128 = vmatpush3.bf16.msra.mxu0 %v1264_v25  ;;  %v1314_v23 = vld [vmem:[%s1703_s1 + $0x218] sm:$0xff]   ;;  %v1316_v25 = vld [vmem:[%s1703_s1 + $0x220] sm:$0xff]  }
  0x1c   :  { %1129 = vmatprep.subr.bf16.mxu0 %v1267_v28  ;;  %v51_v18 = vpack.c.bf16 %v37_v14, %v37_v14  ;;  %v1317_v28 = vld [vmem:[%s1703_s1 + $0x268] sm:$0xff]  }
  0x1d   :  { %1150 = vmatpush3.bf16.msra.mxu1 %v1266_v27  ;;  %v38_v27 = vcombine.high %v28_v26, %v28_v26 }
  0x1e   :  { %1151 = vmatprep.subr.bf16.mxu1 %v1269_v30 }
  0x1f   :  { %1130 = vmatpush3.bf16.msra.mxu0 %v1268_v29 }
  0x20   :  { %1159 = vmatprep.subr.bf16.mxu0 %v1272_v35 }
  0x21   :  { %1152 = vmatpush3.bf16.msra.mxu1 %v1271_v33 }
  0x22   :  { %734 = vmatmul.mubr.bf16.vlgmr.msra.gmra.mrb[0].mxu0 %v44_v34  ;;  %1181 = vmatprep.subr.bf16.mxu1 %v1275_v41 }
  0x23   :  { %1160 = vmatpush3.bf16.msra.mxu0 %v1274_v39  ;;  %813 = vmatprep.mubr.bf16.mxu0 %v49_v12 }
  0x24   :  { %774 = vmatmul.mubr.bf16.vlgmr.msra.gmra.mrb[0].mxu1 %v46_v40  ;;  %1161 = vmatprep.subr.bf16.mxu0 %v1277_v44 }
  0x25   :  { %1182 = vmatpush3.bf16.msra.mxu1 %v1276_v43  ;;  %853 = vmatprep.mubr.bf16.mxu1 %v51_v18 }
  0x26   :  { %1183 = vmatprep.subr.bf16.mxu1 %v1279_v46 }
  0x27   :  { %1162 = vmatpush3.bf16.msra.mxu0 %v1278_v45 }
  0x28   :  { %1163 = vmatprep.subr.bf16.mxu0 %v1281_v48 }
  0x29   :  { %1184 = vmatpush3.bf16.msra.mxu1 %v1280_v47 }
  0x2a   :  { %1185 = vmatprep.subr.bf16.mxu1 %v1283_v50 }
  0x2b   :  { %1164 = vmatpush3.bf16.msra.mxu0 %v1282_v49 }
  0x2c   :  { %1165 = vmatprep.subr.bf16.mxu0 %v1285_v52 }
  0x2d   :  { %1186 = vmatpush3.bf16.msra.mxu1 %v1284_v51 }
  0x2e   :  { %1187 = vmatprep.subr.bf16.mxu1 %v1287_v54 }
  0x2f   :  { %1166 = vmatpush3.bf16.msra.mxu0 %v1286_v53 }
  0x30   :  { %1167 = vmatprep.subr.bf16.mxu0 %v1289_v56 }
  0x31   :  { %1188 = vmatpush3.bf16.msra.mxu1 %v1288_v55 }
  0x32   :  { %1189 = vmatprep.subr.bf16.mxu1 %v1291_v58 }
  0x33   :  { %1168 = vmatpush3.bf16.msra.mxu0 %v1290_v57 }
  0x34   :  { %1169 = vmatprep.subr.bf16.mxu0 %v1293_v60 }
  0x35   :  { %1190 = vmatpush3.bf16.msra.mxu1 %v1292_v59 }
  0x36   :  { %1191 = vmatprep.subr.bf16.mxu1 %v1295_v62 }
  0x37   :  { %1170 = vmatpush3.bf16.msra.mxu0 %v1294_v61 }
  0x38   :  { %1171 = vmatprep.subr.bf16.mxu0 %v1297_v0 }
  0x39   :  { %1192 = vmatpush3.bf16.msra.mxu1 %v1296_v63 }
  0x3a   :  { %1193 = vmatprep.subr.bf16.mxu1 %v1299_v2 }
  0x3b   :  { %1172 = vmatpush3.bf16.msra.mxu0 %v1298_v1 }
  0x3c   :  { %1173 = vmatprep.subr.bf16.mxu0 %v1301_v4 }
  0x3d   :  { %1194 = vmatpush3.bf16.msra.mxu1 %v1300_v3 }
  0x3e   :  { %1195 = vmatprep.subr.bf16.mxu1 %v1303_v6 }
  0x3f   :  { %1174 = vmatpush3.bf16.msra.mxu0 %v1302_v5 }
  0x40   :  { %1203 = vmatprep.subr.bf16.mxu0 %v1306_v11 }
  0x41   :  { %1196 = vmatpush3.bf16.msra.mxu1 %v1305_v9 }
  0x42   :  { %814 = vmatmul.mubr.bf16.vlgmr.msra.gmra.mrb[4].mxu0 %v48_v10 }
  0x43   :  { %1204 = vmatpush3.bf16.msra.mxu0 %v1308_v15 }
  0x44   :  { %1205 = vmatprep.subr.bf16.mxu0 %v1309_v17  ;;  %854 = vmatmul.mubr.bf16.vlgmr.msra.gmra.mrb[4].mxu1 %v50_v16 }
  0x47   :  { %1206 = vmatpush3.bf16.msra.mxu0 %v1310_v19 }
  0x48   :  { %1207 = vmatprep.subr.bf16.mxu0 %v1311_v20 }
  0x4b   :  { %1208 = vmatpush3.bf16.msra.mxu0 %v1312_v21 }
  0x4c   :  { %1209 = vmatprep.subr.bf16.mxu0 %v1313_v22 }
  0x4f   :  { %1210 = vmatpush3.bf16.msra.mxu0 %v1314_v23 }
  0x50   :  { %1211 = vmatprep.subr.bf16.mxu0 %v1315_v24 }
  0x51   :  { %12 = vsyncpa [#allocation3], 0  ;;  %v53_v29 = vpack.c.bf16 %v38_v27, %v38_v27  ;;  %v1318_v30 = vld [vmem:[%s1703_s1 + $0x228] sm:$0xff]   ;;  %v1319_v31 = vld [vmem:[%s1703_s1 + $0x270] sm:$0xff]   ;;  %v52_v35 = vpack.c.bf16 %v28_v26, %v28_v26  ;;  %v1358_v37 = vmov 0.0   ;;  %vm1359_vm0 = vmmov 0  }
  0x52   :  { %v1320_v32 = vld [vmem:[%s1703_s1 + $0x230] sm:$0xff]   ;;  %v1321_v33 = vld [vmem:[%s1703_s1 + $0x278] sm:$0xff]   ;;  %v1324_v36 = vld [vmem:[%s1705_s3] sm:$0xff]   ;;  %1228 = vmatprep.subr.bf16.mxu1 %v1358_v37  ;;  %1232 = vmatprep.mubr.msk.bf16.mxu1 %vm1359_vm0, %v1358_v37  ;;  %vm1009_vm1 = vcmask 257024   ;;  %vm926_vm2 = vcmask 261120   ;;  %v970_v8 = vlaneseq  ;;  %vm976_vm6 = vcmask 1043456  }
  0x53   :  { %1212 = vmatpush3.bf16.msra.mxu0 %v1316_v25  ;;  %893 = vmatprep.mubr.bf16.mxu0 %v53_v29  ;;  %v1322_v34 = vld [vmem:[%s1703_s1 + $0x238] sm:$0xff]   ;;  %v1325_v38 = vld [vmem:[%s1705_s3 + $0x8] sm:$0xff]   ;;  %v1030_v40 = vld [vmem:[%s1704_s2] ss:$0 sm:$0xff] }
  0x54   :  { %1213 = vmatprep.subr.bf16.mxu0 %v1317_v28  ;;  %1229 = vmatpush3.bf16.msra.mxu1 %v1324_v36  ;;  %v971_v9 = vand.u32 127, %v970_v8  ;;  %v1111_v10 = vld [vmem:[%s1706_s4] ss:$0 sm:$0xff]  ;;  %s1360_s4 = smov [#allocation2]  }
  0x55   :  { %1230 = vmatprep.subr.bf16.mxu1 %v1358_v37  ;;  %s1018_s27 = sshll.u32 %s1360_s4, 4  ;;  %s1019_s27 = int_to_ptr.vmem [resolvable:$true] %s1018_s27 }
  0x56   :  { %vm972_vm3 = vcmp.ge.s32.totalorder %v971_v9, 16  ;;  %vm973_vm4 = vcmp.lt.s32.totalorder %v971_v9, 19  ;;  %vm991_vm7 = vcmp.ge.s32.totalorder %v971_v9, 19  ;;  %vm992_vm8 = vcmp.lt.s32.totalorder %v971_v9, 23  ;;  %s1334_s28 = scalar_lea.vmem %s1019_s27, 64  ;;  %p1339_p1 = scmp.lt.s32.totalorder %s1019_s27, %s1019_s27 }
  0x57   :  { %1214 = vmatpush3.bf16.msra.mxu0 %v1318_v30  ;;  %vm1663_vm5 = vmand %vm972_vm3, %vm973_vm4  ;;  %p1335_p0 = scmp.ne.s32.totalorder %s1019_s27, %s1334_s28  ;;  %p1340_p2 = scmp.lt.s32.totalorder %s1334_s28, %s1334_s28 }
  0x58   :  { %1215 = vmatprep.subr.bf16.mxu0 %v1319_v31  ;;  %1231 = vmatpush3.bf16.msra.mxu1 %v1325_v38  ;;  %vm1673_vm9 = vmand %vm991_vm7, %vm992_vm8 }
  0x59   :  { %p1341_p3 = por %p1340_p2, %p1339_p1 }
  0x5b   :  { %1216 = vmatpush3.bf16.msra.mxu0 %v1320_v32  ;;  %p1342_p4 = pnand %p1341_p3, %p1335_p0 }
  0x5c   :  { %1217 = vmatprep.subr.bf16.mxu0 %v1321_v33 }
  0x5f   :  { %1218 = vmatpush3.bf16.msra.mxu0 %v1322_v34 }
  0x62   :  { %894 = vmatmul.mubr.bf16.vlgmr.msra.gmra.mrb[8].mxu0 %v52_v35 }
  0xf5   :  { %v1131_v39 = vpop.f32.mrb[0].mxu0 }
  0xf6   :  { %v1132_v41 = vpop.f32.mrb[1].mxu0 }
  0xf7   :  { %v1133_v42 = vadd.f32 %v1132_v41, %v1131_v39  ;;  %v1134_v43 = vpop.f32.mrb[2].mxu0  ;;  %v1153_v44 = vpop.f32.mrb[0].mxu1 }
  0xf8   :  { %v1135_v45 = vpop.f32.mrb[3].mxu0  ;;  %v1154_v46 = vpop.f32.mrb[1].mxu1 }
  0xf9   :  { %v736_v47 = vadd.f32 %v1133_v42, %v1030_v40  ;;  %v1155_v48 = vadd.f32 %v1154_v46, %v1153_v44  ;;  %v1156_v49 = vpop.f32.mrb[2].mxu1 }
  0xfa   :  { %v1157_v50 = vpop.f32.mrb[3].mxu1 }
  0xfb   :  { %v776_v51 = vadd.f32 %v1155_v48, %v736_v47 }
 0x115   :  { %v1175_v52 = vpop.f32.mrb[4].mxu0 }
 0x116   :  { %v1176_v53 = vpop.f32.mrb[5].mxu0 }
 0x117   :  { %v1177_v54 = vadd.f32 %v1176_v53, %v1175_v52  ;;  %v1178_v55 = vpop.f32.mrb[6].mxu0  ;;  %v1197_v56 = vpop.f32.mrb[4].mxu1 }
 0x118   :  { %v1179_v57 = vpop.f32.mrb[7].mxu0  ;;  %v1198_v59 = vpop.f32.mrb[5].mxu1 }
 0x119   :  { %v816_v58 = vadd.f32 %v1177_v54, %v776_v51  ;;  %v1199_v60 = vadd.f32 %v1198_v59, %v1197_v56  ;;  %v1200_v61 = vpop.f32.mrb[6].mxu1 }
 0x11a   :  { %v1201_v62 = vpop.f32.mrb[7].mxu1 }
 0x11b   :  { %v856_v63 = vadd.f32 %v1199_v60, %v816_v58 }
 0x135   :  { %v1219_v0 = vpop.f32.mrb[8].mxu0 }
 0x136   :  { %v1220_v1 = vpop.f32.mrb[9].mxu0 }
 0x137   :  { %v1221_v2 = vadd.f32 %v1220_v1, %v1219_v0  ;;  %v1222_v3 = vpop.f32.mrb[10].mxu0 }
 0x138   :  { %v1223_v4 = vpop.f32.mrb[11].mxu0 }
 0x139   :  { %v896_v5 = vadd.f32 %v1221_v2, %v856_v63 }
 0x13b   :  { %v901_v6 = vmax.f32 %v896_v5, 0.0 }
 0x13d   :  { %v902_v7 = vpack.c.bf16 %v901_v6, %v901_v6  ;;  %1010 = vst.msk [vmem:[#allocation2] sm:$0xf] %vm1009_vm1, %v901_v6 }
 0x13f   :  { %1233 = vmatmul.mubr.msk.bf16.vlgmr.msra.gmra.mrb[8].mxu1 %vm926_vm2, %v902_v7 }
 0x212   :  { %v964_v11 = vpop.f32.mrb[8].mxu1 }
 0x213   :  { %v965_v13 = vadd.f32 %v1111_v10, %v964_v11  ;;  %v1234_v14 = vpop.f32.mrb[9].mxu1 }
 0x214   :  { %v967_v15 = vpop.f32.mrb[10].mxu1 }
 0x215   :  { %v1235_v16 = vpop.f32.mrb[11].mxu1  ;;  %v975_v17 = vsel %vm1663_vm5, %v965_v13, -inf }
 0x216   :  { %v977_v18 = vsel %vm976_vm6, %v975_v17, -inf }
 0x217   :  { %978 = vmax.xlane.f32.xlu0 %v977_v18 }
 0x2a4   :  { %v979_v19 = vpop.xlane.xlu0 %978 }
 0x2a5   :  { %v980_v20 = vsub.f32 %v965_v13, %v979_v19 }
 0x2a7   :  { %v981_v21 = vmin.f32 %v980_v20, 0.0 }
 0x2a9   :  { %v982_v22 = vmul.f32 1.442695, %v981_v21 }
 0x2ab   :  { %1326 = vpow2.f32 %v982_v22 }
 0x2b5   :  { %v1327_v23 = vpop.eup %1326 }
 0x2b6   :  { %v984_v24 = vsel %vm1663_vm5, %v1327_v23, 0.0 }
 0x2b7   :  { %v985_v25 = vsel %vm976_vm6, %v984_v24, 0.0 }
 0x2b8   :  { %986 = vadd.xlane.f32.xlu0 %v985_v25 }
 0x345   :  { %v987_v26 = vpop.xlane.xlu0 %986 }
 0x346   :  { %1328 = vrcp.f32 %v987_v26 }
 0x350   :  { %v1329_v27 = vpop.eup %1328 }
 0x351   :  { %v989_v28 = vmul.f32 %v1329_v27, %v984_v24 }
 0x353   :  { %v990_v30 = vsel %vm1663_vm5, %v989_v28, %v965_v13 }
 0x354   :  { %v994_v31 = vsel %vm1673_vm9, %v990_v30, -inf }
 0x355   :  { %v995_v32 = vsel %vm976_vm6, %v994_v31, -inf }
 0x356   :  { %996 = vmax.xlane.f32.xlu1 %v995_v32 }
 0x3e3   :  { %v997_v33 = vpop.xlane.xlu1 %996 }
 0x3e4   :  { %v998_v34 = vsub.f32 %v990_v30, %v997_v33 }
 0x3e6   :  { %v999_v35 = vmin.f32 %v998_v34, 0.0 }
 0x3e8   :  { %v1000_v36 = vmul.f32 1.442695, %v999_v35 }
 0x3ea   :  { %1330 = vpow2.f32 %v1000_v36 }
 0x3f4   :  { %v1331_v37 = vpop.eup %1330 }
 0x3f5   :  { %v1002_v38 = vsel %vm1673_vm9, %v1331_v37, 0.0 }
 0x3f6   :  { %v1003_v39 = vsel %vm976_vm6, %v1002_v38, 0.0 }
 0x3f7   :  { %1004 = vadd.xlane.f32.xlu1 %v1003_v39 }
 0x3f8   :  { %1345 = shalt.err (!%p1342_p4)
}
 0x3f9   :  { %s1346_s7 = scalar_lea.hbm %s1707_s5, 64 }
 0x3fa   :  { %p1347_p5 = scmp.ne.s32.totalorder %s1707_s5, %s1346_s7  ;;  %p1350_p6 = scmp.lt.u32.totalorder %s1346_s7, %s1707_s5 }
 0x3fc   :  { %p1352_p7 = pnand %p1350_p6, %p1347_p5 }
 0x3fe   :  { %1355 = shalt.err (!%p1352_p7)
}
 0x3ff   :  { %1021 = dma.vmem_to_hbm [thread:$0]  %s1019_s27, 64, %s1707_s5, [#allocation3]  }
 0x484   :  { %v1005_v40 = vpop.xlane.xlu1 %1004 }
 0x485   :  { %1332 = vrcp.f32 %v1005_v40 }
 0x48f   :  { %v1333_v41 = vpop.eup %1332 }
 0x490   :  { %v1007_v42 = vmul.f32 %v1333_v41, %v1002_v38 }
 0x492   :  { %v1008_v43 = vsel %vm1673_vm9, %v1007_v42, %v990_v30 }
 0x493   :  { %1011 = vst [vmem:[%s1708_s6] sm:$0xf] %v1008_v43 }
 0x494   :  { %1356 = dma.done.wait [#allocation3], 64  }
 0x495   :  { %1357 = vsyncadd [#allocation3], 4294967232 }
 0x496   :  { %1029 = vsyncpa [#allocation3], 1 }

</bundles_post_ra>
